<compile_context>
chip_gen: v5e
topology: v5e:2x2
jax: 0.10.0
libtpu: 0.0.40
codegen_flags: <defaults>
</compile_context>

<pallas_src>
import functools

import jax
import jax.numpy as jnp
from jax import lax
from jax.experimental import pallas as pl
from jax.experimental.pallas import tpu as pltpu


def _round_up(x, m):
    return (x + m - 1) // m * m


def _pick_row_block(h, w):
    # Largest divisor of H with TH*W <= 128 so the f32 accumulator stays
    # within ~16 vregs (128x128) as recommended.
    best = 1
    for th in range(1, h + 1):
        if h % th == 0 and th * w <= 128:
            best = th
    return best


def _pick_pool_block(half_h, w):
    # Pooled rows per grid step for pass B2 (input rows per step = 2*TP).
    best = 1
    for tp in range(1, half_h + 1):
        if half_h % tp == 0 and 2 * tp * w <= 512:
            best = tp
    return best


# --------------------------------------------------------------------------
# Pass A: 3x3 conv + bias on a TH-row block, emitting bf16 pre-BN activations
# plus per-block channel sum / sum-of-squares (single-pass BN statistics).
# --------------------------------------------------------------------------
def _conv_bias_stats_kernel(x_ref, w_ref, b_ref, y_ref, sum_ref, sq_ref,
                            *, th, out_w, widen_k):
    cp_in = x_ref.shape[-1]
    cp_out = w_ref.shape[-1]
    m = th * out_w

    acc = jnp.zeros((m, cp_out), jnp.float32)
    if widen_k:
        # 3 matmuls of K = 3*Cin: concatenate the kx-shifted taps (lane-aligned
        # pieces, Cin % 128 == 0) so the MXU sees a deeper contraction.
        for ky in range(3):
            taps = [x_ref[0, ky:ky + th, kx:kx + out_w, :] for kx in range(3)]
            lhs = jnp.concatenate(taps, axis=-1).reshape(m, 3 * cp_in)
            rhs = w_ref[ky * 3:ky * 3 + 3].reshape(3 * cp_in, cp_out)
            acc += jnp.dot(lhs, rhs, preferred_element_type=jnp.float32)
    else:
        # Small Cin (conv1): 9 shifted-window matmuls with M = TH*W.
        for ky in range(3):
            for kx in range(3):
                tap = x_ref[0, ky:ky + th, kx:kx + out_w, :].reshape(m, cp_in)
                acc += jnp.dot(tap, w_ref[ky * 3 + kx],
                               preferred_element_type=jnp.float32)

    acc = acc + b_ref[...]                               # (M, Cout_p) f32
    y_ref[0] = acc.reshape(th, out_w, cp_out).astype(y_ref.dtype)

    # BN statistics from the f32 accumulator; per-block partials (no cross-step
    # accumulation -> both grid axes stay "parallel"), reduced in JAX glue.
    sum_ref[0] = jnp.sum(acc, axis=0, keepdims=True)
    sq_ref[0] = jnp.sum(acc * acc, axis=0, keepdims=True)


def _conv_bias_stats(x_blocks, w9, bias, *, n, hb, th, out_h, out_w):
    """x_blocks: (N*HB, TH+2, WP2, Cin_p) bf16 (overlapping, spatially padded
    row blocks);  w9: (9, Cin_p, Cout_p) bf16;  bias: (1, Cout_p) f32."""
    wp2 = x_blocks.shape[2]
    cp_in = x_blocks.shape[3]
    cp_out = w9.shape[-1]
    widen_k = (cp_in % 128 == 0)

    kernel = functools.partial(_conv_bias_stats_kernel,
                               th=th, out_w=out_w, widen_k=widen_k)

    flops = 2 * n * out_h * out_w * 9 * cp_in * cp_out
    bytes_acc = (x_blocks.size * x_blocks.dtype.itemsize
                 + w9.size * w9.dtype.itemsize
                 + n * out_h * out_w * cp_out * 2)

    return pl.pallas_call(
        kernel,
        grid=(n, hb),
        in_specs=[
            pl.BlockSpec((1, th + 2, wp2, cp_in),
                         lambda i, h: (i * hb + h, 0, 0, 0)),
            pl.BlockSpec((9, cp_in, cp_out), lambda i, h: (0, 0, 0)),
            pl.BlockSpec((1, cp_out), lambda i, h: (0, 0)),
        ],
        out_specs=[
            pl.BlockSpec((1, th, out_w, cp_out), lambda i, h: (i, h, 0, 0)),
            pl.BlockSpec((1, 1, cp_out), lambda i, h: (i * hb + h, 0, 0)),
            pl.BlockSpec((1, 1, cp_out), lambda i, h: (i * hb + h, 0, 0)),
        ],
        out_shape=[
            jax.ShapeDtypeStruct((n, out_h, out_w, cp_out), jnp.bfloat16),
            jax.ShapeDtypeStruct((n * hb, 1, cp_out), jnp.float32),
            jax.ShapeDtypeStruct((n * hb, 1, cp_out), jnp.float32),
        ],
        compiler_params=pltpu.CompilerParams(
            dimension_semantics=("parallel", "parallel")),
        cost_estimate=pl.CostEstimate(flops=flops, transcendentals=0,
                                      bytes_accessed=bytes_acc),
    )(x_blocks, w9, bias)


# --------------------------------------------------------------------------
# Pass B1 (after conv1): BN-apply + ReLU + zero-pad, written directly in
# conv2's overlapping-row-block operand layout (bf16), so conv2's Pass A
# reads its input exactly once (no 3x halo re-read, no extra pad pass).
# --------------------------------------------------------------------------
def _bn_relu_pad_kernel(ytop_ref, ymid_ref, ybot_ref, scale_ref, shift_ref,
                        o_ref, *, th, out_w):
    h = pl.program_id(1)
    last = pl.num_programs(1) - 1
    s = scale_ref[...]
    t = shift_ref[...]
    wp2 = o_ref.shape[2]
    cp = o_ref.shape[3]
    dt = o_ref.dtype

    # interior rows
    z = jnp.maximum(ymid_ref[0].astype(jnp.float32) * s + t, 0.0)
    o_ref[0, 1:th + 1, 1:out_w + 1, :] = z.astype(dt)

    # top / bottom halo rows (zero at the image borders)
    zt = jnp.maximum(ytop_ref[0, 0].astype(jnp.float32) * s + t, 0.0)
    zb = jnp.maximum(ybot_ref[0, 0].astype(jnp.float32) * s + t, 0.0)
    o_ref[0, 0, 1:out_w + 1, :] = jnp.where(h > 0, zt, 0.0).astype(dt)
    o_ref[0, th + 1, 1:out_w + 1, :] = jnp.where(h < last, zb, 0.0).astype(dt)

    # halo / lane-alignment columns only (no full-block zero fill)
    o_ref[0, :, 0:1, :] = jnp.zeros((th + 2, 1, cp), dt)
    o_ref[0, :, out_w + 1:wp2, :] = jnp.zeros((th + 2, wp2 - out_w - 1, cp), dt)


def _bn_relu_to_blocks(y, scale, shift, *, th, wp2):
    n, out_h, out_w, cp = y.shape
    hb = out_h // th
    kernel = functools.partial(_bn_relu_pad_kernel, th=th, out_w=out_w)
    return pl.pallas_call(
        kernel,
        grid=(n, hb),
        in_specs=[
            # single halo row above the block (clamped; masked out at h == 0)
            pl.BlockSpec((1, 1, out_w, cp),
                         lambda i, h: (i, jnp.maximum(h * th - 1, 0), 0, 0)),
            # the TH interior rows
            pl.BlockSpec((1, th, out_w, cp), lambda i, h: (i, h, 0, 0)),
            # single halo row below (clamped; masked out at h == last)
            pl.BlockSpec((1, 1, out_w, cp),
                         lambda i, h: (i, jnp.minimum(h * th + th, out_h - 1),
                                       0, 0)),
            pl.BlockSpec((1, cp), lambda i, h: (0, 0)),
            pl.BlockSpec((1, cp), lambda i, h: (0, 0)),
        ],
        out_specs=pl.BlockSpec((1, th + 2, wp2, cp),
                               lambda i, h: (i * hb + h, 0, 0, 0)),
        out_shape=jax.ShapeDtypeStruct((n * hb, th + 2, wp2, cp), jnp.bfloat16),
        compiler_params=pltpu.CompilerParams(
            dimension_semantics=("parallel", "parallel")),
    )(y, y, y, scale, shift)


# --------------------------------------------------------------------------
# Pass B2 (after conv2): BN-apply + ReLU fused with the 2x2/stride-2 max-pool.
# One input block per step, TP pooled rows per step, no strided ref indexing.
# --------------------------------------------------------------------------
def _bn_relu_pool_kernel(y_ref, scale_ref, shift_ref, o_ref, *, tp, half_w):
    s = scale_ref[...]
    t = shift_ref[...]
    cp = o_ref.shape[-1]
    z = jnp.maximum(y_ref[0].astype(jnp.float32) * s + t, 0.0)  # (2*tp, W, Cp)
    z = z.reshape(tp, 2, 2 * half_w, cp)
    z = jnp.max(z, axis=1)                                      # row-pair max
    z = z.reshape(tp, half_w, 2, cp)
    z = jnp.max(z, axis=2)                                      # col-pair max
    o_ref[0] = z.astype(o_ref.dtype)


def _bn_relu_pool(y, scale, shift, *, tp):
    n, out_h, out_w, cp = y.shape
    half_h, half_w = out_h // 2, out_w // 2
    kernel = functools.partial(_bn_relu_pool_kernel, tp=tp, half_w=half_w)
    return pl.pallas_call(
        kernel,
        grid=(n, half_h // tp),
        in_specs=[
            pl.BlockSpec((1, 2 * tp, out_w, cp), lambda i, h: (i, h, 0, 0)),
            pl.BlockSpec((1, cp), lambda i, h: (0, 0)),
            pl.BlockSpec((1, cp), lambda i, h: (0, 0)),
        ],
        out_specs=pl.BlockSpec((1, tp, half_w, cp), lambda i, h: (i, h, 0, 0)),
        out_shape=jax.ShapeDtypeStruct((n, half_h, half_w, cp), jnp.float32),
        compiler_params=pltpu.CompilerParams(
            dimension_semantics=("parallel", "parallel")),
    )(y, scale, shift)


# ------------------------------ JAX glue ------------------------------------

def _bn_scale_shift(ch_sum, ch_sq, gamma_p, beta_p, count, eps):
    # Finish the tiny per-block reduction and fold BN into scale/shift.
    # NOTE: single-pass E[x^2]-E[x]^2 variance in f32 (adequate here; a
    # Welford-style combine would be more robust for huge N*H*W).
    total = jnp.sum(ch_sum, axis=0)               # (1, Cp)
    total_sq = jnp.sum(ch_sq, axis=0)             # (1, Cp)
    mean = total / count
    var = jnp.maximum(total_sq / count - mean * mean, 0.0)   # biased variance
    inv = lax.rsqrt(var + eps)
    scale = gamma_p * inv
    shift = beta_p - mean * scale
    return scale, shift


def _prep_conv_params(w, b, gamma, beta, cp_in, cp_out):
    cout, cin = w.shape[0], w.shape[1]
    # PyTorch (Cout, Cin, 3, 3) -> (ky, kx, Cin, Cout) -> (9, Cin_p, Cout_p)
    w9 = jnp.transpose(w, (2, 3, 1, 0)).reshape(9, cin, cout)
    w9 = jnp.pad(w9, ((0, 0), (0, cp_in - cin), (0, cp_out - cout)))
    b_p = jnp.pad(b, (0, cp_out - cout)).reshape(1, cp_out).astype(jnp.float32)
    g_p = jnp.pad(gamma, (0, cp_out - cout),
                  constant_values=1.0).reshape(1, cp_out).astype(jnp.float32)
    be_p = jnp.pad(beta, (0, cp_out - cout)).reshape(1, cp_out).astype(jnp.float32)
    return w9.astype(jnp.bfloat16), b_p, g_p, be_p


def init_unet_down_params(key, in_size, out_size):
    k1, k2, k3, k4 = jax.random.split(key, 4)
    f32 = jnp.float32
    return {
        "conv1_w": (0.1 * jax.random.normal(k1, (out_size, in_size, 3, 3))).astype(f32),
        "conv1_b": (0.1 * jax.random.normal(k2, (out_size,))).astype(f32),
        "bn1_gamma": jnp.ones((out_size,), f32),
        "bn1_beta": jnp.zeros((out_size,), f32),
        "conv2_w": (0.1 * jax.random.normal(k3, (out_size, out_size, 3, 3))).astype(f32),
        "conv2_b": (0.1 * jax.random.normal(k4, (out_size,))).astype(f32),
        "bn2_gamma": jnp.ones((out_size,), f32),
        "bn2_beta": jnp.zeros((out_size,), f32),
    }


@jax.jit
def unet_down_forward(params, x_nchw):
    eps = 1e-5
    n, cin, h, w = x_nchw.shape
    # TODO(synk): MaxPool2d ceil_mode=True partial windows for odd H/W.
    assert h % 2 == 0 and w % 2 == 0, "even spatial dims assumed"
    cout = params["conv1_w"].shape[0]
    cp_in = _round_up(max(cin, 8), 8)             # sublane-aligned input chans
    cp_mid = _round_up(max(cout, 128), 128)       # lane-dense output chans
    wp2 = _round_up(w + 2, 8)                     # padded width, 8-aligned

    th = _pick_row_block(h, w)                    # conv row-block height
    hb = h // th
    tp = _pick_pool_block(h // 2, w)              # pooled rows per B2 step

    # Layout glue: NCHW -> NHWC, channel pad, spatial zero-pad (1 top/bottom,
    # 1 left, wp2-w-1 right), bf16, then overlapping (TH+2)-row blocks.
    x = jnp.transpose(x_nchw, (0, 2, 3, 1)).astype(jnp.float32)
    x = jnp.pad(x, ((0, 0), (1, 1), (1, wp2 - w - 1), (0, cp_in - cin)))
    x = x.astype(jnp.bfloat16)
    x1_blocks = jnp.stack([x[:, r * th:r * th + th + 2] for r in range(hb)],
                          axis=1).reshape(n * hb, th + 2, wp2, cp_in)

    w1, b1, g1, be1 = _prep_conv_params(params["conv1_w"], params["conv1_b"],
                                        params["bn1_gamma"], params["bn1_beta"],
                                        cp_in, cp_mid)
    w2, b2, g2, be2 = _prep_conv_params(params["conv2_w"], params["conv2_b"],
                                        params["bn2_gamma"], params["bn2_beta"],
                                        cp_mid, cp_mid)
    count = float(n * h * w)

    # conv1: conv+bias+stats (bf16 y1), then BN+ReLU fused with zero-padding,
    # written directly in conv2's overlapping-block operand layout.
    y1, s1, q1 = _conv_bias_stats(x1_blocks, w1, b1,
                                  n=n, hb=hb, th=th, out_h=h, out_w=w)
    sc1, sh1 = _bn_scale_shift(s1, q1, g1, be1, count, eps)
    x2_blocks = _bn_relu_to_blocks(y1, sc1, sh1, th=th, wp2=wp2)

    # conv2: conv+bias+stats (bf16 y2), then BN+ReLU fused with 2x2 max-pool.
    y2, s2, q2 = _conv_bias_stats(x2_blocks, w2, b2,
                                  n=n, hb=hb, th=th, out_h=h, out_w=w)
    sc2, sh2 = _bn_scale_shift(s2, q2, g2, be2, count, eps)
    pooled = _bn_relu_pool(y2, sc2, sh2, tp=tp)   # (N, H/2, W/2, Cp) f32

    out = pooled[:, :, :, :cout]
    return jnp.transpose(out, (0, 3, 1, 2))       # back to NCHW


# ------------------------- pure-JAX reference (test) ------------------------

def _reference_forward(params, x_nchw, eps=1e-5):
    x = jnp.transpose(x_nchw, (0, 2, 3, 1)).astype(jnp.float32)

    def conv_bn_relu(x, w, b, gamma, beta):
        w_hwio = jnp.transpose(w, (2, 3, 1, 0))
        y = lax.conv_general_dilated(x, w_hwio, (1, 1), "SAME",
                                     dimension_numbers=("NHWC", "HWIO", "NHWC"))
        y = y + b
        mean = jnp.mean(y, axis=(0, 1, 2))
        var = jnp.mean((y - mean) ** 2, axis=(0, 1, 2))
        y = (y - mean) * lax.rsqrt(var + eps) * gamma + beta
        return jnp.maximum(y, 0.0)

    x = conv_bn_relu(x, params["conv1_w"], params["conv1_b"],
                     params["bn1_gamma"], params["bn1_beta"])
    x = conv_bn_relu(x, params["conv2_w"], params["conv2_b"],
                     params["bn2_gamma"], params["bn2_beta"])
    n, h, w, c = x.shape
    x = x.reshape(n, h // 2, 2, w // 2, 2, c).max(axis=(2, 4))
    return jnp.transpose(x, (0, 3, 1, 2))


# ----------------------------------- main -----------------------------------

if __name__ == "__main__":
    key = jax.random.PRNGKey(0)
    kx, kp = jax.random.split(key)

    N, Cin, H, W = 2, 4, 16, 16
    Cout = 8

    x = jax.random.normal(kx, (N, Cin, H, W), dtype=jnp.float32)
    params = init_unet_down_params(kp, Cin, Cout)

    out = unet_down_forward(params, x)
    jax.block_until_ready(out)
    assert out.shape == (N, Cout, H // 2, W // 2), out.shape

    ref = _reference_forward(params, x)
    err = float(jnp.max(jnp.abs(out - ref)))
    assert err < 5e-2, f"max abs err vs reference: {err}"

    print("KERNEL_OK")
</pallas_src>

<mosaic_0001>
module attributes {stable_mosaic.version = 11 : i64} {
  func.func @_conv_bias_stats_kernel(%arg0: i32, %arg1: i32, %arg2: memref<1x10x24x8xbf16, #tpu.memory_space<vmem>>, %arg3: memref<9x8x128xbf16, #tpu.memory_space<vmem>>, %arg4: memref<1x128xf32, #tpu.memory_space<vmem>>, %arg5: memref<1x8x16x128xbf16, #tpu.memory_space<vmem>>, %arg6: memref<1x1x128xf32, #tpu.memory_space<vmem>>, %arg7: memref<1x1x128xf32, #tpu.memory_space<vmem>>) attributes {dimension_semantics = [#tpu.dimension_semantics<parallel>, #tpu.dimension_semantics<parallel>], iteration_bounds = array<i64: 2, 2>, scalar_prefetch = 0 : i64, scratch_operands = 0 : i64, tpu.core_type = #tpu.core_type<tc>, window_params = [{transform_indices = @transform_0, window_bounds = array<i64: 1, 10, 24, 8>}, {pipeline_mode = #tpu.pipeline_mode<synchronous>, transform_indices = @transform_1, window_bounds = array<i64: 9, 8, 128>}, {pipeline_mode = #tpu.pipeline_mode<synchronous>, transform_indices = @transform_2, window_bounds = array<i64: 1, 128>}, {transform_indices = @transform_3, window_bounds = array<i64: 1, 8, 16, 128>}, {transform_indices = @transform_4, window_bounds = array<i64: 1, 1, 128>}, {transform_indices = @transform_5, window_bounds = array<i64: 1, 1, 128>}]} {
    %cst = arith.constant 0.000000e+00 : f32
    %0 = vector.broadcast %cst : f32 to vector<128x128xf32>
    %c0 = arith.constant 0 : index
    %c0_0 = arith.constant 0 : index
    %c0_1 = arith.constant 0 : index
    %c0_2 = arith.constant 0 : index
    %1 = vector.load %arg2[%c0, %c0_0, %c0_1, %c0_2] : memref<1x10x24x8xbf16, #tpu.memory_space<vmem>>, vector<1x8x16x8xbf16>
    %2 = vector.shape_cast %1 : vector<1x8x16x8xbf16> to vector<8x16x8xbf16>
    %3 = vector.shape_cast %2 : vector<8x16x8xbf16> to vector<128x8xbf16>
    %c0_3 = arith.constant 0 : index
    %c0_4 = arith.constant 0 : index
    %c0_5 = arith.constant 0 : index
    %4 = vector.load %arg3[%c0_3, %c0_4, %c0_5] : memref<9x8x128xbf16, #tpu.memory_space<vmem>>, vector<1x8x128xbf16>
    %5 = vector.shape_cast %4 : vector<1x8x128xbf16> to vector<8x128xbf16>
    %cst_6 = arith.constant dense<0.000000e+00> : vector<128x128xf32>
    %6 = tpu.matmul %3, %5, %cst_6 {dimension_numbers = #tpu.dot_dimension_numbers<[1], [0], [0], [1], [0, 0, 1, 1], [], []>} : vector<128x8xbf16>, vector<8x128xbf16>, vector<128x128xf32> -> vector<128x128xf32>
    %7 = arith.addf %0, %6 : vector<128x128xf32>
    %c0_7 = arith.constant 0 : index
    %c0_8 = arith.constant 0 : index
    %c1 = arith.constant 1 : index
    %c0_9 = arith.constant 0 : index
    %8 = vector.load %arg2[%c0_7, %c0_8, %c1, %c0_9] : memref<1x10x24x8xbf16, #tpu.memory_space<vmem>>, vector<1x8x16x8xbf16>
    %9 = vector.shape_cast %8 : vector<1x8x16x8xbf16> to vector<8x16x8xbf16>
    %10 = vector.shape_cast %9 : vector<8x16x8xbf16> to vector<128x8xbf16>
    %c1_10 = arith.constant 1 : index
    %c0_11 = arith.constant 0 : index
    %c0_12 = arith.constant 0 : index
    %11 = vector.load %arg3[%c1_10, %c0_11, %c0_12] : memref<9x8x128xbf16, #tpu.memory_space<vmem>>, vector<1x8x128xbf16>
    %12 = vector.shape_cast %11 : vector<1x8x128xbf16> to vector<8x128xbf16>
    %cst_13 = arith.constant dense<0.000000e+00> : vector<128x128xf32>
    %13 = tpu.matmul %10, %12, %cst_13 {dimension_numbers = #tpu.dot_dimension_numbers<[1], [0], [0], [1], [0, 0, 1, 1], [], []>} : vector<128x8xbf16>, vector<8x128xbf16>, vector<128x128xf32> -> vector<128x128xf32>
    %14 = arith.addf %7, %13 : vector<128x128xf32>
    %c0_14 = arith.constant 0 : index
    %c0_15 = arith.constant 0 : index
    %c2 = arith.constant 2 : index
    %c0_16 = arith.constant 0 : index
    %15 = vector.load %arg2[%c0_14, %c0_15, %c2, %c0_16] : memref<1x10x24x8xbf16, #tpu.memory_space<vmem>>, vector<1x8x16x8xbf16>
    %16 = vector.shape_cast %15 : vector<1x8x16x8xbf16> to vector<8x16x8xbf16>
    %17 = vector.shape_cast %16 : vector<8x16x8xbf16> to vector<128x8xbf16>
    %c2_17 = arith.constant 2 : index
    %c0_18 = arith.constant 0 : index
    %c0_19 = arith.constant 0 : index
    %18 = vector.load %arg3[%c2_17, %c0_18, %c0_19] : memref<9x8x128xbf16, #tpu.memory_space<vmem>>, vector<1x8x128xbf16>
    %19 = vector.shape_cast %18 : vector<1x8x128xbf16> to vector<8x128xbf16>
    %cst_20 = arith.constant dense<0.000000e+00> : vector<128x128xf32>
    %20 = tpu.matmul %17, %19, %cst_20 {dimension_numbers = #tpu.dot_dimension_numbers<[1], [0], [0], [1], [0, 0, 1, 1], [], []>} : vector<128x8xbf16>, vector<8x128xbf16>, vector<128x128xf32> -> vector<128x128xf32>
    %21 = arith.addf %14, %20 : vector<128x128xf32>
    %c0_21 = arith.constant 0 : index
    %c1_22 = arith.constant 1 : index
    %c0_23 = arith.constant 0 : index
    %c0_24 = arith.constant 0 : index
    %22 = vector.load %arg2[%c0_21, %c1_22, %c0_23, %c0_24] : memref<1x10x24x8xbf16, #tpu.memory_space<vmem>>, vector<1x8x16x8xbf16>
    %23 = vector.shape_cast %22 : vector<1x8x16x8xbf16> to vector<8x16x8xbf16>
    %24 = vector.shape_cast %23 : vector<8x16x8xbf16> to vector<128x8xbf16>
    %c3 = arith.constant 3 : index
    %c0_25 = arith.constant 0 : index
    %c0_26 = arith.constant 0 : index
    %25 = vector.load %arg3[%c3, %c0_25, %c0_26] : memref<9x8x128xbf16, #tpu.memory_space<vmem>>, vector<1x8x128xbf16>
    %26 = vector.shape_cast %25 : vector<1x8x128xbf16> to vector<8x128xbf16>
    %cst_27 = arith.constant dense<0.000000e+00> : vector<128x128xf32>
    %27 = tpu.matmul %24, %26, %cst_27 {dimension_numbers = #tpu.dot_dimension_numbers<[1], [0], [0], [1], [0, 0, 1, 1], [], []>} : vector<128x8xbf16>, vector<8x128xbf16>, vector<128x128xf32> -> vector<128x128xf32>
    %28 = arith.addf %21, %27 : vector<128x128xf32>
    %c0_28 = arith.constant 0 : index
    %c1_29 = arith.constant 1 : index
    %c1_30 = arith.constant 1 : index
    %c0_31 = arith.constant 0 : index
    %29 = vector.load %arg2[%c0_28, %c1_29, %c1_30, %c0_31] : memref<1x10x24x8xbf16, #tpu.memory_space<vmem>>, vector<1x8x16x8xbf16>
    %30 = vector.shape_cast %29 : vector<1x8x16x8xbf16> to vector<8x16x8xbf16>
    %31 = vector.shape_cast %30 : vector<8x16x8xbf16> to vector<128x8xbf16>
    %c4 = arith.constant 4 : index
    %c0_32 = arith.constant 0 : index
    %c0_33 = arith.constant 0 : index
    %32 = vector.load %arg3[%c4, %c0_32, %c0_33] : memref<9x8x128xbf16, #tpu.memory_space<vmem>>, vector<1x8x128xbf16>
    %33 = vector.shape_cast %32 : vector<1x8x128xbf16> to vector<8x128xbf16>
    %cst_34 = arith.constant dense<0.000000e+00> : vector<128x128xf32>
    %34 = tpu.matmul %31, %33, %cst_34 {dimension_numbers = #tpu.dot_dimension_numbers<[1], [0], [0], [1], [0, 0, 1, 1], [], []>} : vector<128x8xbf16>, vector<8x128xbf16>, vector<128x128xf32> -> vector<128x128xf32>
    %35 = arith.addf %28, %34 : vector<128x128xf32>
    %c0_35 = arith.constant 0 : index
    %c1_36 = arith.constant 1 : index
    %c2_37 = arith.constant 2 : index
    %c0_38 = arith.constant 0 : index
    %36 = vector.load %arg2[%c0_35, %c1_36, %c2_37, %c0_38] : memref<1x10x24x8xbf16, #tpu.memory_space<vmem>>, vector<1x8x16x8xbf16>
    %37 = vector.shape_cast %36 : vector<1x8x16x8xbf16> to vector<8x16x8xbf16>
    %38 = vector.shape_cast %37 : vector<8x16x8xbf16> to vector<128x8xbf16>
    %c5 = arith.constant 5 : index
    %c0_39 = arith.constant 0 : index
    %c0_40 = arith.constant 0 : index
    %39 = vector.load %arg3[%c5, %c0_39, %c0_40] : memref<9x8x128xbf16, #tpu.memory_space<vmem>>, vector<1x8x128xbf16>
    %40 = vector.shape_cast %39 : vector<1x8x128xbf16> to vector<8x128xbf16>
    %cst_41 = arith.constant dense<0.000000e+00> : vector<128x128xf32>
    %41 = tpu.matmul %38, %40, %cst_41 {dimension_numbers = #tpu.dot_dimension_numbers<[1], [0], [0], [1], [0, 0, 1, 1], [], []>} : vector<128x8xbf16>, vector<8x128xbf16>, vector<128x128xf32> -> vector<128x128xf32>
    %42 = arith.addf %35, %41 : vector<128x128xf32>
    %c0_42 = arith.constant 0 : index
    %c2_43 = arith.constant 2 : index
    %c0_44 = arith.constant 0 : index
    %c0_45 = arith.constant 0 : index
    %43 = vector.load %arg2[%c0_42, %c2_43, %c0_44, %c0_45] : memref<1x10x24x8xbf16, #tpu.memory_space<vmem>>, vector<1x8x16x8xbf16>
    %44 = vector.shape_cast %43 : vector<1x8x16x8xbf16> to vector<8x16x8xbf16>
    %45 = vector.shape_cast %44 : vector<8x16x8xbf16> to vector<128x8xbf16>
    %c6 = arith.constant 6 : index
    %c0_46 = arith.constant 0 : index
    %c0_47 = arith.constant 0 : index
    %46 = vector.load %arg3[%c6, %c0_46, %c0_47] : memref<9x8x128xbf16, #tpu.memory_space<vmem>>, vector<1x8x128xbf16>
    %47 = vector.shape_cast %46 : vector<1x8x128xbf16> to vector<8x128xbf16>
    %cst_48 = arith.constant dense<0.000000e+00> : vector<128x128xf32>
    %48 = tpu.matmul %45, %47, %cst_48 {dimension_numbers = #tpu.dot_dimension_numbers<[1], [0], [0], [1], [0, 0, 1, 1], [], []>} : vector<128x8xbf16>, vector<8x128xbf16>, vector<128x128xf32> -> vector<128x128xf32>
    %49 = arith.addf %42, %48 : vector<128x128xf32>
    %c0_49 = arith.constant 0 : index
    %c2_50 = arith.constant 2 : index
    %c1_51 = arith.constant 1 : index
    %c0_52 = arith.constant 0 : index
    %50 = vector.load %arg2[%c0_49, %c2_50, %c1_51, %c0_52] : memref<1x10x24x8xbf16, #tpu.memory_space<vmem>>, vector<1x8x16x8xbf16>
    %51 = vector.shape_cast %50 : vector<1x8x16x8xbf16> to vector<8x16x8xbf16>
    %52 = vector.shape_cast %51 : vector<8x16x8xbf16> to vector<128x8xbf16>
    %c7 = arith.constant 7 : index
    %c0_53 = arith.constant 0 : index
    %c0_54 = arith.constant 0 : index
    %53 = vector.load %arg3[%c7, %c0_53, %c0_54] : memref<9x8x128xbf16, #tpu.memory_space<vmem>>, vector<1x8x128xbf16>
    %54 = vector.shape_cast %53 : vector<1x8x128xbf16> to vector<8x128xbf16>
    %cst_55 = arith.constant dense<0.000000e+00> : vector<128x128xf32>
    %55 = tpu.matmul %52, %54, %cst_55 {dimension_numbers = #tpu.dot_dimension_numbers<[1], [0], [0], [1], [0, 0, 1, 1], [], []>} : vector<128x8xbf16>, vector<8x128xbf16>, vector<128x128xf32> -> vector<128x128xf32>
    %56 = arith.addf %49, %55 : vector<128x128xf32>
    %c0_56 = arith.constant 0 : index
    %c2_57 = arith.constant 2 : index
    %c2_58 = arith.constant 2 : index
    %c0_59 = arith.constant 0 : index
    %57 = vector.load %arg2[%c0_56, %c2_57, %c2_58, %c0_59] : memref<1x10x24x8xbf16, #tpu.memory_space<vmem>>, vector<1x8x16x8xbf16>
    %58 = vector.shape_cast %57 : vector<1x8x16x8xbf16> to vector<8x16x8xbf16>
    %59 = vector.shape_cast %58 : vector<8x16x8xbf16> to vector<128x8xbf16>
    %c8 = arith.constant 8 : index
    %c0_60 = arith.constant 0 : index
    %c0_61 = arith.constant 0 : index
    %60 = vector.load %arg3[%c8, %c0_60, %c0_61] : memref<9x8x128xbf16, #tpu.memory_space<vmem>>, vector<1x8x128xbf16>
    %61 = vector.shape_cast %60 : vector<1x8x128xbf16> to vector<8x128xbf16>
    %cst_62 = arith.constant dense<0.000000e+00> : vector<128x128xf32>
    %62 = tpu.matmul %59, %61, %cst_62 {dimension_numbers = #tpu.dot_dimension_numbers<[1], [0], [0], [1], [0, 0, 1, 1], [], []>} : vector<128x8xbf16>, vector<8x128xbf16>, vector<128x128xf32> -> vector<128x128xf32>
    %63 = arith.addf %56, %62 : vector<128x128xf32>
    %c0_63 = arith.constant 0 : index
    %c0_64 = arith.constant 0 : index
    %64 = vector.load %arg4[%c0_63, %c0_64] : memref<1x128xf32, #tpu.memory_space<vmem>>, vector<1x128xf32>
    %65 = vector.broadcast %64 : vector<1x128xf32> to vector<128x128xf32>
    %66 = arith.addf %63, %65 : vector<128x128xf32>
    %67 = vector.shape_cast %66 : vector<128x128xf32> to vector<8x16x128xf32>
    %68 = arith.truncf %67 : vector<8x16x128xf32> to vector<8x16x128xbf16>
    %c0_65 = arith.constant 0 : index
    %c0_66 = arith.constant 0 : index
    %c0_67 = arith.constant 0 : index
    %c0_68 = arith.constant 0 : index
    %69 = vector.load %arg5[%c0_65, %c0_66, %c0_67, %c0_68] : memref<1x8x16x128xbf16, #tpu.memory_space<vmem>>, vector<1x8x16x128xbf16>
    %70 = vector.shape_cast %69 : vector<1x8x16x128xbf16> to vector<8x16x128xbf16>
    %71 = vector.shape_cast %68 : vector<8x16x128xbf16> to vector<1x8x16x128xbf16>
    tpu.vector_store %arg5[%c0_65, %c0_66, %c0_67, %c0_68], %71 {strides = array<i32>} : memref<1x8x16x128xbf16, #tpu.memory_space<vmem>>, vector<1x8x16x128xbf16>,
    %cst_69 = arith.constant dense<0.000000e+00> : vector<128xf32>
    %72 = vector.multi_reduction <add>, %66, %cst_69 [0] : vector<128x128xf32> to vector<128xf32>
    %73 = vector.shape_cast %72 : vector<128xf32> to vector<1x128xf32>
    %c0_70 = arith.constant 0 : index
    %c0_71 = arith.constant 0 : index
    %c0_72 = arith.constant 0 : index
    %74 = vector.load %arg6[%c0_70, %c0_71, %c0_72] : memref<1x1x128xf32, #tpu.memory_space<vmem>>, vector<1x1x128xf32>
    %75 = vector.shape_cast %74 : vector<1x1x128xf32> to vector<1x128xf32>
    %76 = vector.shape_cast %73 : vector<1x128xf32> to vector<1x1x128xf32>
    tpu.vector_store %arg6[%c0_70, %c0_71, %c0_72], %76 {strides = array<i32>} : memref<1x1x128xf32, #tpu.memory_space<vmem>>, vector<1x1x128xf32>,
    %77 = arith.mulf %66, %66 : vector<128x128xf32>
    %cst_73 = arith.constant dense<0.000000e+00> : vector<128xf32>
    %78 = vector.multi_reduction <add>, %77, %cst_73 [0] : vector<128x128xf32> to vector<128xf32>
    %79 = vector.shape_cast %78 : vector<128xf32> to vector<1x128xf32>
    %c0_74 = arith.constant 0 : index
    %c0_75 = arith.constant 0 : index
    %c0_76 = arith.constant 0 : index
    %80 = vector.load %arg7[%c0_74, %c0_75, %c0_76] : memref<1x1x128xf32, #tpu.memory_space<vmem>>, vector<1x1x128xf32>
    %81 = vector.shape_cast %80 : vector<1x1x128xf32> to vector<1x128xf32>
    %82 = vector.shape_cast %79 : vector<1x128xf32> to vector<1x1x128xf32>
    tpu.vector_store %arg7[%c0_74, %c0_75, %c0_76], %82 {strides = array<i32>} : memref<1x1x128xf32, #tpu.memory_space<vmem>>, vector<1x1x128xf32>,
    return
  }
  func.func @transform_0(%arg0: i32, %arg1: i32) -> (i32, i32, i32, i32) {
    %c2_i32 = arith.constant 2 : i32
    %0 = arith.muli %arg0, %c2_i32 : i32
    %1 = arith.addi %0, %arg1 : i32
    %c0_i32 = arith.constant 0 : i32
    %c0_i32_0 = arith.constant 0 : i32
    %c0_i32_1 = arith.constant 0 : i32
    %c0_i32_2 = arith.constant 0 : i32
    return %1, %c0_i32, %c0_i32_0, %c0_i32_1 : i32, i32, i32, i32
  }
  func.func @transform_1(%arg0: i32, %arg1: i32) -> (i32, i32, i32) {
    %c0_i32 = arith.constant 0 : i32
    %c0_i32_0 = arith.constant 0 : i32
    %c0_i32_1 = arith.constant 0 : i32
    %c0_i32_2 = arith.constant 0 : i32
    return %c0_i32, %c0_i32_0, %c0_i32_1 : i32, i32, i32
  }
  func.func @transform_2(%arg0: i32, %arg1: i32) -> (i32, i32) {
    %c0_i32 = arith.constant 0 : i32
    %c0_i32_0 = arith.constant 0 : i32
    %c0_i32_1 = arith.constant 0 : i32
    return %c0_i32, %c0_i32_0 : i32, i32
  }
  func.func @transform_3(%arg0: i32, %arg1: i32) -> (i32, i32, i32, i32) {
    %c0_i32 = arith.constant 0 : i32
    %c0_i32_0 = arith.constant 0 : i32
    %c0_i32_1 = arith.constant 0 : i32
    return %arg0, %arg1, %c0_i32, %c0_i32_0 : i32, i32, i32, i32
  }
  func.func @transform_4(%arg0: i32, %arg1: i32) -> (i32, i32, i32) {
    %c2_i32 = arith.constant 2 : i32
    %0 = arith.muli %arg0, %c2_i32 : i32
    %1 = arith.addi %0, %arg1 : i32
    %c0_i32 = arith.constant 0 : i32
    %c0_i32_0 = arith.constant 0 : i32
    %c0_i32_1 = arith.constant 0 : i32
    return %1, %c0_i32, %c0_i32_0 : i32, i32, i32
  }
  func.func @transform_5(%arg0: i32, %arg1: i32) -> (i32, i32, i32) {
    %c2_i32 = arith.constant 2 : i32
    %0 = arith.muli %arg0, %c2_i32 : i32
    %1 = arith.addi %0, %arg1 : i32
    %c0_i32 = arith.constant 0 : i32
    %c0_i32_0 = arith.constant 0 : i32
    %c0_i32_1 = arith.constant 0 : i32
    return %1, %c0_i32, %c0_i32_0 : i32, i32, i32
  }
}

module attributes {stable_mosaic.version = 11 : i64} {
  func.func @_bn_relu_pad_kernel(%arg0: i32, %arg1: i32, %arg2: memref<1x1x16x128xbf16, #tpu.memory_space<vmem>>, %arg3: memref<1x8x16x128xbf16, #tpu.memory_space<vmem>>, %arg4: memref<1x1x16x128xbf16, #tpu.memory_space<vmem>>, %arg5: memref<1x128xf32, #tpu.memory_space<vmem>>, %arg6: memref<1x128xf32, #tpu.memory_space<vmem>>, %arg7: memref<1x10x24x128xbf16, #tpu.memory_space<vmem>>) attributes {dimension_semantics = [#tpu.dimension_semantics<parallel>, #tpu.dimension_semantics<parallel>], iteration_bounds = array<i64: 2, 2>, scalar_prefetch = 0 : i64, scratch_operands = 0 : i64, tpu.core_type = #tpu.core_type<tc>, window_params = [{transform_indices = @transform_0, window_bounds = array<i64: 1, 1, 16, 128>}, {transform_indices = @transform_1, window_bounds = array<i64: 1, 8, 16, 128>}, {transform_indices = @transform_2, window_bounds = array<i64: 1, 1, 16, 128>}, {pipeline_mode = #tpu.pipeline_mode<synchronous>, transform_indices = @transform_3, window_bounds = array<i64: 1, 128>}, {pipeline_mode = #tpu.pipeline_mode<synchronous>, transform_indices = @transform_4, window_bounds = array<i64: 1, 128>}, {transform_indices = @transform_5, window_bounds = array<i64: 1, 10, 24, 128>}]} {
    %c0 = arith.constant 0 : index
    %c0_0 = arith.constant 0 : index
    %0 = vector.load %arg5[%c0, %c0_0] : memref<1x128xf32, #tpu.memory_space<vmem>>, vector<1x128xf32>
    %c0_1 = arith.constant 0 : index
    %c0_2 = arith.constant 0 : index
    %1 = vector.load %arg6[%c0_1, %c0_2] : memref<1x128xf32, #tpu.memory_space<vmem>>, vector<1x128xf32>
    %c0_3 = arith.constant 0 : index
    %c0_4 = arith.constant 0 : index
    %c0_5 = arith.constant 0 : index
    %c0_6 = arith.constant 0 : index
    %2 = vector.load %arg3[%c0_3, %c0_4, %c0_5, %c0_6] : memref<1x8x16x128xbf16, #tpu.memory_space<vmem>>, vector<1x8x16x128xbf16>
    %3 = vector.shape_cast %2 : vector<1x8x16x128xbf16> to vector<8x16x128xbf16>
    %4 = arith.extf %3 : vector<8x16x128xbf16> to vector<8x16x128xf32>
    %5 = vector.shape_cast %0 : vector<1x128xf32> to vector<1x1x128xf32>
    %6 = vector.broadcast %5 : vector<1x1x128xf32> to vector<8x16x128xf32>
    %7 = arith.mulf %4, %6 : vector<8x16x128xf32>
    %8 = vector.shape_cast %1 : vector<1x128xf32> to vector<1x1x128xf32>
    %9 = vector.broadcast %8 : vector<1x1x128xf32> to vector<8x16x128xf32>
    %10 = arith.addf %7, %9 : vector<8x16x128xf32>
    %cst = arith.constant 0.000000e+00 : f32
    %11 = vector.broadcast %cst : f32 to vector<8x16x128xf32>
    %12 = arith.maximumf %10, %11 : vector<8x16x128xf32>
    %13 = arith.truncf %12 : vector<8x16x128xf32> to vector<8x16x128xbf16>
    %c0_7 = arith.constant 0 : index
    %c1 = arith.constant 1 : index
    %c1_8 = arith.constant 1 : index
    %c0_9 = arith.constant 0 : index
    %14 = vector.load %arg7[%c0_7, %c1, %c1_8, %c0_9] : memref<1x10x24x128xbf16, #tpu.memory_space<vmem>>, vector<1x8x16x128xbf16>
    %15 = vector.shape_cast %14 : vector<1x8x16x128xbf16> to vector<8x16x128xbf16>
    %16 = vector.shape_cast %13 : vector<8x16x128xbf16> to vector<1x8x16x128xbf16>
    tpu.vector_store %arg7[%c0_7, %c1, %c1_8, %c0_9], %16 {strides = array<i32>} : memref<1x10x24x128xbf16, #tpu.memory_space<vmem>>, vector<1x8x16x128xbf16>,
    %c0_10 = arith.constant 0 : index
    %c0_11 = arith.constant 0 : index
    %c0_12 = arith.constant 0 : index
    %c0_13 = arith.constant 0 : index
    %17 = vector.load %arg2[%c0_10, %c0_11, %c0_12, %c0_13] : memref<1x1x16x128xbf16, #tpu.memory_space<vmem>>, vector<1x1x16x128xbf16>
    %18 = vector.shape_cast %17 : vector<1x1x16x128xbf16> to vector<16x128xbf16>
    %19 = arith.extf %18 : vector<16x128xbf16> to vector<16x128xf32>
    %20 = vector.broadcast %0 : vector<1x128xf32> to vector<16x128xf32>
    %21 = arith.mulf %19, %20 : vector<16x128xf32>
    %22 = vector.broadcast %1 : vector<1x128xf32> to vector<16x128xf32>
    %23 = arith.addf %21, %22 : vector<16x128xf32>
    %cst_14 = arith.constant 0.000000e+00 : f32
    %24 = vector.broadcast %cst_14 : f32 to vector<16x128xf32>
    %25 = arith.maximumf %23, %24 : vector<16x128xf32>
    %c0_15 = arith.constant 0 : index
    %c0_16 = arith.constant 0 : index
    %c0_17 = arith.constant 0 : index
    %c0_18 = arith.constant 0 : index
    %26 = vector.load %arg4[%c0_15, %c0_16, %c0_17, %c0_18] : memref<1x1x16x128xbf16, #tpu.memory_space<vmem>>, vector<1x1x16x128xbf16>
    %27 = vector.shape_cast %26 : vector<1x1x16x128xbf16> to vector<16x128xbf16>
    %28 = arith.extf %27 : vector<16x128xbf16> to vector<16x128xf32>
    %29 = vector.broadcast %0 : vector<1x128xf32> to vector<16x128xf32>
    %30 = arith.mulf %28, %29 : vector<16x128xf32>
    %31 = vector.broadcast %1 : vector<1x128xf32> to vector<16x128xf32>
    %32 = arith.addf %30, %31 : vector<16x128xf32>
    %cst_19 = arith.constant 0.000000e+00 : f32
    %33 = vector.broadcast %cst_19 : f32 to vector<16x128xf32>
    %34 = arith.maximumf %32, %33 : vector<16x128xf32>
    %c0_i32 = arith.constant 0 : i32
    %35 = arith.cmpi sgt, %arg1, %c0_i32 : i32
    %cst_20 = arith.constant 0.000000e+00 : f32
    %36 = vector.broadcast %cst_20 : f32 to vector<16x128xf32>
    %37 = arith.select %35, %25, %36 : vector<16x128xf32>
    %38 = arith.truncf %37 : vector<16x128xf32> to vector<16x128xbf16>
    %c0_21 = arith.constant 0 : index
    %c0_22 = arith.constant 0 : index
    %c1_23 = arith.constant 1 : index
    %c0_24 = arith.constant 0 : index
    %39 = vector.load %arg7[%c0_21, %c0_22, %c1_23, %c0_24] : memref<1x10x24x128xbf16, #tpu.memory_space<vmem>>, vector<1x1x16x128xbf16>
    %40 = vector.shape_cast %39 : vector<1x1x16x128xbf16> to vector<16x128xbf16>
    %41 = vector.shape_cast %38 : vector<16x128xbf16> to vector<1x1x16x128xbf16>
    tpu.vector_store %arg7[%c0_21, %c0_22, %c1_23, %c0_24], %41 {strides = array<i32>} : memref<1x10x24x128xbf16, #tpu.memory_space<vmem>>, vector<1x1x16x128xbf16>,
    %c1_i32 = arith.constant 1 : i32
    %42 = arith.cmpi slt, %arg1, %c1_i32 : i32
    %cst_25 = arith.constant 0.000000e+00 : f32
    %43 = vector.broadcast %cst_25 : f32 to vector<16x128xf32>
    %44 = arith.select %42, %34, %43 : vector<16x128xf32>
    %45 = arith.truncf %44 : vector<16x128xf32> to vector<16x128xbf16>
    %c0_26 = arith.constant 0 : index
    %c9 = arith.constant 9 : index
    %c1_27 = arith.constant 1 : index
    %c0_28 = arith.constant 0 : index
    %46 = vector.load %arg7[%c0_26, %c9, %c1_27, %c0_28] : memref<1x10x24x128xbf16, #tpu.memory_space<vmem>>, vector<1x1x16x128xbf16>
    %47 = vector.shape_cast %46 : vector<1x1x16x128xbf16> to vector<16x128xbf16>
    %48 = vector.shape_cast %45 : vector<16x128xbf16> to vector<1x1x16x128xbf16>
    tpu.vector_store %arg7[%c0_26, %c9, %c1_27, %c0_28], %48 {strides = array<i32>} : memref<1x10x24x128xbf16, #tpu.memory_space<vmem>>, vector<1x1x16x128xbf16>,
    %cst_29 = arith.constant 0.000000e+00 : bf16
    %49 = vector.broadcast %cst_29 : bf16 to vector<10x1x128xbf16>
    %c0_30 = arith.constant 0 : index
    %c0_31 = arith.constant 0 : index
    %c0_32 = arith.constant 0 : index
    %c0_33 = arith.constant 0 : index
    %50 = vector.load %arg7[%c0_30, %c0_31, %c0_32, %c0_33] : memref<1x10x24x128xbf16, #tpu.memory_space<vmem>>, vector<1x10x1x128xbf16>
    %51 = vector.shape_cast %50 : vector<1x10x1x128xbf16> to vector<10x1x128xbf16>
    %52 = vector.shape_cast %49 : vector<10x1x128xbf16> to vector<1x10x1x128xbf16>
    tpu.vector_store %arg7[%c0_30, %c0_31, %c0_32, %c0_33], %52 {strides = array<i32>} : memref<1x10x24x128xbf16, #tpu.memory_space<vmem>>, vector<1x10x1x128xbf16>,
    %cst_34 = arith.constant 0.000000e+00 : bf16
    %53 = vector.broadcast %cst_34 : bf16 to vector<10x7x128xbf16>
    %c0_35 = arith.constant 0 : index
    %c0_36 = arith.constant 0 : index
    %c17 = arith.constant 17 : index
    %c0_37 = arith.constant 0 : index
    %54 = vector.load %arg7[%c0_35, %c0_36, %c17, %c0_37] : memref<1x10x24x128xbf16, #tpu.memory_space<vmem>>, vector<1x10x7x128xbf16>
    %55 = vector.shape_cast %54 : vector<1x10x7x128xbf16> to vector<10x7x128xbf16>
    %56 = vector.shape_cast %53 : vector<10x7x128xbf16> to vector<1x10x7x128xbf16>
    tpu.vector_store %arg7[%c0_35, %c0_36, %c17, %c0_37], %56 {strides = array<i32>} : memref<1x10x24x128xbf16, #tpu.memory_space<vmem>>, vector<1x10x7x128xbf16>,
    return
  }
  func.func @transform_0(%arg0: i32, %arg1: i32) -> (i32, i32, i32, i32) {
    %c8_i32 = arith.constant 8 : i32
    %0 = arith.muli %arg1, %c8_i32 : i32
    %c1_i32 = arith.constant 1 : i32
    %1 = arith.subi %0, %c1_i32 : i32
    %c0_i32 = arith.constant 0 : i32
    %2 = arith.maxsi %1, %c0_i32 : i32
    %c0_i32_0 = arith.constant 0 : i32
    %c0_i32_1 = arith.constant 0 : i32
    %c0_i32_2 = arith.constant 0 : i32
    return %arg0, %2, %c0_i32_0, %c0_i32_1 : i32, i32, i32, i32
  }
  func.func @transform_1(%arg0: i32, %arg1: i32) -> (i32, i32, i32, i32) {
    %c0_i32 = arith.constant 0 : i32
    %c0_i32_0 = arith.constant 0 : i32
    %c0_i32_1 = arith.constant 0 : i32
    return %arg0, %arg1, %c0_i32, %c0_i32_0 : i32, i32, i32, i32
  }
  func.func @transform_2(%arg0: i32, %arg1: i32) -> (i32, i32, i32, i32) {
    %c8_i32 = arith.constant 8 : i32
    %0 = arith.muli %arg1, %c8_i32 : i32
    %c8_i32_0 = arith.constant 8 : i32
    %1 = arith.addi %0, %c8_i32_0 : i32
    %c15_i32 = arith.constant 15 : i32
    %2 = arith.minsi %1, %c15_i32 : i32
    %c0_i32 = arith.constant 0 : i32
    %c0_i32_1 = arith.constant 0 : i32
    %c0_i32_2 = arith.constant 0 : i32
    return %arg0, %2, %c0_i32, %c0_i32_1 : i32, i32, i32, i32
  }
  func.func @transform_3(%arg0: i32, %arg1: i32) -> (i32, i32) {
    %c0_i32 = arith.constant 0 : i32
    %c0_i32_0 = arith.constant 0 : i32
    %c0_i32_1 = arith.constant 0 : i32
    return %c0_i32, %c0_i32_0 : i32, i32
  }
  func.func @transform_4(%arg0: i32, %arg1: i32) -> (i32, i32) {
    %c0_i32 = arith.constant 0 : i32
    %c0_i32_0 = arith.constant 0 : i32
    %c0_i32_1 = arith.constant 0 : i32
    return %c0_i32, %c0_i32_0 : i32, i32
  }
  func.func @transform_5(%arg0: i32, %arg1: i32) -> (i32, i32, i32, i32) {
    %c2_i32 = arith.constant 2 : i32
    %0 = arith.muli %arg0, %c2_i32 : i32
    %1 = arith.addi %0, %arg1 : i32
    %c0_i32 = arith.constant 0 : i32
    %c0_i32_0 = arith.constant 0 : i32
    %c0_i32_1 = arith.constant 0 : i32
    %c0_i32_2 = arith.constant 0 : i32
    return %1, %c0_i32, %c0_i32_0, %c0_i32_1 : i32, i32, i32, i32
  }
}

module attributes {stable_mosaic.version = 11 : i64} {
  func.func @_conv_bias_stats_kernel(%arg0: i32, %arg1: i32, %arg2: memref<1x10x24x128xbf16, #tpu.memory_space<vmem>>, %arg3: memref<9x128x128xbf16, #tpu.memory_space<vmem>>, %arg4: memref<1x128xf32, #tpu.memory_space<vmem>>, %arg5: memref<1x8x16x128xbf16, #tpu.memory_space<vmem>>, %arg6: memref<1x1x128xf32, #tpu.memory_space<vmem>>, %arg7: memref<1x1x128xf32, #tpu.memory_space<vmem>>) attributes {dimension_semantics = [#tpu.dimension_semantics<parallel>, #tpu.dimension_semantics<parallel>], iteration_bounds = array<i64: 2, 2>, scalar_prefetch = 0 : i64, scratch_operands = 0 : i64, tpu.core_type = #tpu.core_type<tc>, window_params = [{transform_indices = @transform_0, window_bounds = array<i64: 1, 10, 24, 128>}, {pipeline_mode = #tpu.pipeline_mode<synchronous>, transform_indices = @transform_1, window_bounds = array<i64: 9, 128, 128>}, {pipeline_mode = #tpu.pipeline_mode<synchronous>, transform_indices = @transform_2, window_bounds = array<i64: 1, 128>}, {transform_indices = @transform_3, window_bounds = array<i64: 1, 8, 16, 128>}, {transform_indices = @transform_4, window_bounds = array<i64: 1, 1, 128>}, {transform_indices = @transform_5, window_bounds = array<i64: 1, 1, 128>}]} {
    %cst = arith.constant 0.000000e+00 : f32
    %0 = vector.broadcast %cst : f32 to vector<128x128xf32>
    %c0 = arith.constant 0 : index
    %c0_0 = arith.constant 0 : index
    %c0_1 = arith.constant 0 : index
    %c0_2 = arith.constant 0 : index
    %1 = vector.load %arg2[%c0, %c0_0, %c0_1, %c0_2] : memref<1x10x24x128xbf16, #tpu.memory_space<vmem>>, vector<1x8x16x128xbf16>
    %2 = vector.shape_cast %1 : vector<1x8x16x128xbf16> to vector<8x16x128xbf16>
    %c0_3 = arith.constant 0 : index
    %c0_4 = arith.constant 0 : index
    %c1 = arith.constant 1 : index
    %c0_5 = arith.constant 0 : index
    %3 = vector.load %arg2[%c0_3, %c0_4, %c1, %c0_5] : memref<1x10x24x128xbf16, #tpu.memory_space<vmem>>, vector<1x8x16x128xbf16>
    %4 = vector.shape_cast %3 : vector<1x8x16x128xbf16> to vector<8x16x128xbf16>
    %c0_6 = arith.constant 0 : index
    %c0_7 = arith.constant 0 : index
    %c2 = arith.constant 2 : index
    %c0_8 = arith.constant 0 : index
    %5 = vector.load %arg2[%c0_6, %c0_7, %c2, %c0_8] : memref<1x10x24x128xbf16, #tpu.memory_space<vmem>>, vector<1x8x16x128xbf16>
    %6 = vector.shape_cast %5 : vector<1x8x16x128xbf16> to vector<8x16x128xbf16>
    %7 = tpu.concatenate %2, %4, %6 in 2 : vector<8x16x128xbf16>, vector<8x16x128xbf16>, vector<8x16x128xbf16> -> vector<8x16x384xbf16>
    %8 = vector.shape_cast %7 : vector<8x16x384xbf16> to vector<128x384xbf16>
    %c0_9 = arith.constant 0 : index
    %c0_10 = arith.constant 0 : index
    %c0_11 = arith.constant 0 : index
    %9 = vector.load %arg3[%c0_9, %c0_10, %c0_11] : memref<9x128x128xbf16, #tpu.memory_space<vmem>>, vector<3x128x128xbf16>
    %10 = vector.shape_cast %9 : vector<3x128x128xbf16> to vector<384x128xbf16>
    %cst_12 = arith.constant dense<0.000000e+00> : vector<128x128xf32>
    %11 = tpu.matmul %8, %10, %cst_12 {dimension_numbers = #tpu.dot_dimension_numbers<[1], [0], [0], [1], [0, 0, 1, 1], [], []>} : vector<128x384xbf16>, vector<384x128xbf16>, vector<128x128xf32> -> vector<128x128xf32>
    %12 = arith.addf %0, %11 : vector<128x128xf32>
    %c0_13 = arith.constant 0 : index
    %c1_14 = arith.constant 1 : index
    %c0_15 = arith.constant 0 : index
    %c0_16 = arith.constant 0 : index
    %13 = vector.load %arg2[%c0_13, %c1_14, %c0_15, %c0_16] : memref<1x10x24x128xbf16, #tpu.memory_space<vmem>>, vector<1x8x16x128xbf16>
    %14 = vector.shape_cast %13 : vector<1x8x16x128xbf16> to vector<8x16x128xbf16>
    %c0_17 = arith.constant 0 : index
    %c1_18 = arith.constant 1 : index
    %c1_19 = arith.constant 1 : index
    %c0_20 = arith.constant 0 : index
    %15 = vector.load %arg2[%c0_17, %c1_18, %c1_19, %c0_20] : memref<1x10x24x128xbf16, #tpu.memory_space<vmem>>, vector<1x8x16x128xbf16>
    %16 = vector.shape_cast %15 : vector<1x8x16x128xbf16> to vector<8x16x128xbf16>
    %c0_21 = arith.constant 0 : index
    %c1_22 = arith.constant 1 : index
    %c2_23 = arith.constant 2 : index
    %c0_24 = arith.constant 0 : index
    %17 = vector.load %arg2[%c0_21, %c1_22, %c2_23, %c0_24] : memref<1x10x24x128xbf16, #tpu.memory_space<vmem>>, vector<1x8x16x128xbf16>
    %18 = vector.shape_cast %17 : vector<1x8x16x128xbf16> to vector<8x16x128xbf16>
    %19 = tpu.concatenate %14, %16, %18 in 2 : vector<8x16x128xbf16>, vector<8x16x128xbf16>, vector<8x16x128xbf16> -> vector<8x16x384xbf16>
    %20 = vector.shape_cast %19 : vector<8x16x384xbf16> to vector<128x384xbf16>
    %c3 = arith.constant 3 : index
    %c0_25 = arith.constant 0 : index
    %c0_26 = arith.constant 0 : index
    %21 = vector.load %arg3[%c3, %c0_25, %c0_26] : memref<9x128x128xbf16, #tpu.memory_space<vmem>>, vector<3x128x128xbf16>
    %22 = vector.shape_cast %21 : vector<3x128x128xbf16> to vector<384x128xbf16>
    %cst_27 = arith.constant dense<0.000000e+00> : vector<128x128xf32>
    %23 = tpu.matmul %20, %22, %cst_27 {dimension_numbers = #tpu.dot_dimension_numbers<[1], [0], [0], [1], [0, 0, 1, 1], [], []>} : vector<128x384xbf16>, vector<384x128xbf16>, vector<128x128xf32> -> vector<128x128xf32>
    %24 = arith.addf %12, %23 : vector<128x128xf32>
    %c0_28 = arith.constant 0 : index
    %c2_29 = arith.constant 2 : index
    %c0_30 = arith.constant 0 : index
    %c0_31 = arith.constant 0 : index
    %25 = vector.load %arg2[%c0_28, %c2_29, %c0_30, %c0_31] : memref<1x10x24x128xbf16, #tpu.memory_space<vmem>>, vector<1x8x16x128xbf16>
    %26 = vector.shape_cast %25 : vector<1x8x16x128xbf16> to vector<8x16x128xbf16>
    %c0_32 = arith.constant 0 : index
    %c2_33 = arith.constant 2 : index
    %c1_34 = arith.constant 1 : index
    %c0_35 = arith.constant 0 : index
    %27 = vector.load %arg2[%c0_32, %c2_33, %c1_34, %c0_35] : memref<1x10x24x128xbf16, #tpu.memory_space<vmem>>, vector<1x8x16x128xbf16>
    %28 = vector.shape_cast %27 : vector<1x8x16x128xbf16> to vector<8x16x128xbf16>
    %c0_36 = arith.constant 0 : index
    %c2_37 = arith.constant 2 : index
    %c2_38 = arith.constant 2 : index
    %c0_39 = arith.constant 0 : index
    %29 = vector.load %arg2[%c0_36, %c2_37, %c2_38, %c0_39] : memref<1x10x24x128xbf16, #tpu.memory_space<vmem>>, vector<1x8x16x128xbf16>
    %30 = vector.shape_cast %29 : vector<1x8x16x128xbf16> to vector<8x16x128xbf16>
    %31 = tpu.concatenate %26, %28, %30 in 2 : vector<8x16x128xbf16>, vector<8x16x128xbf16>, vector<8x16x128xbf16> -> vector<8x16x384xbf16>
    %32 = vector.shape_cast %31 : vector<8x16x384xbf16> to vector<128x384xbf16>
    %c6 = arith.constant 6 : index
    %c0_40 = arith.constant 0 : index
    %c0_41 = arith.constant 0 : index
    %33 = vector.load %arg3[%c6, %c0_40, %c0_41] : memref<9x128x128xbf16, #tpu.memory_space<vmem>>, vector<3x128x128xbf16>
    %34 = vector.shape_cast %33 : vector<3x128x128xbf16> to vector<384x128xbf16>
    %cst_42 = arith.constant dense<0.000000e+00> : vector<128x128xf32>
    %35 = tpu.matmul %32, %34, %cst_42 {dimension_numbers = #tpu.dot_dimension_numbers<[1], [0], [0], [1], [0, 0, 1, 1], [], []>} : vector<128x384xbf16>, vector<384x128xbf16>, vector<128x128xf32> -> vector<128x128xf32>
    %36 = arith.addf %24, %35 : vector<128x128xf32>
    %c0_43 = arith.constant 0 : index
    %c0_44 = arith.constant 0 : index
    %37 = vector.load %arg4[%c0_43, %c0_44] : memref<1x128xf32, #tpu.memory_space<vmem>>, vector<1x128xf32>
    %38 = vector.broadcast %37 : vector<1x128xf32> to vector<128x128xf32>
    %39 = arith.addf %36, %38 : vector<128x128xf32>
    %40 = vector.shape_cast %39 : vector<128x128xf32> to vector<8x16x128xf32>
    %41 = arith.truncf %40 : vector<8x16x128xf32> to vector<8x16x128xbf16>
    %c0_45 = arith.constant 0 : index
    %c0_46 = arith.constant 0 : index
    %c0_47 = arith.constant 0 : index
    %c0_48 = arith.constant 0 : index
    %42 = vector.load %arg5[%c0_45, %c0_46, %c0_47, %c0_48] : memref<1x8x16x128xbf16, #tpu.memory_space<vmem>>, vector<1x8x16x128xbf16>
    %43 = vector.shape_cast %42 : vector<1x8x16x128xbf16> to vector<8x16x128xbf16>
    %44 = vector.shape_cast %41 : vector<8x16x128xbf16> to vector<1x8x16x128xbf16>
    tpu.vector_store %arg5[%c0_45, %c0_46, %c0_47, %c0_48], %44 {strides = array<i32>} : memref<1x8x16x128xbf16, #tpu.memory_space<vmem>>, vector<1x8x16x128xbf16>,
    %cst_49 = arith.constant dense<0.000000e+00> : vector<128xf32>
    %45 = vector.multi_reduction <add>, %39, %cst_49 [0] : vector<128x128xf32> to vector<128xf32>
    %46 = vector.shape_cast %45 : vector<128xf32> to vector<1x128xf32>
    %c0_50 = arith.constant 0 : index
    %c0_51 = arith.constant 0 : index
    %c0_52 = arith.constant 0 : index
    %47 = vector.load %arg6[%c0_50, %c0_51, %c0_52] : memref<1x1x128xf32, #tpu.memory_space<vmem>>, vector<1x1x128xf32>
    %48 = vector.shape_cast %47 : vector<1x1x128xf32> to vector<1x128xf32>
    %49 = vector.shape_cast %46 : vector<1x128xf32> to vector<1x1x128xf32>
    tpu.vector_store %arg6[%c0_50, %c0_51, %c0_52], %49 {strides = array<i32>} : memref<1x1x128xf32, #tpu.memory_space<vmem>>, vector<1x1x128xf32>,
    %50 = arith.mulf %39, %39 : vector<128x128xf32>
    %cst_53 = arith.constant dense<0.000000e+00> : vector<128xf32>
    %51 = vector.multi_reduction <add>, %50, %cst_53 [0] : vector<128x128xf32> to vector<128xf32>
    %52 = vector.shape_cast %51 : vector<128xf32> to vector<1x128xf32>
    %c0_54 = arith.constant 0 : index
    %c0_55 = arith.constant 0 : index
    %c0_56 = arith.constant 0 : index
    %53 = vector.load %arg7[%c0_54, %c0_55, %c0_56] : memref<1x1x128xf32, #tpu.memory_space<vmem>>, vector<1x1x128xf32>
    %54 = vector.shape_cast %53 : vector<1x1x128xf32> to vector<1x128xf32>
    %55 = vector.shape_cast %52 : vector<1x128xf32> to vector<1x1x128xf32>
    tpu.vector_store %arg7[%c0_54, %c0_55, %c0_56], %55 {strides = array<i32>} : memref<1x1x128xf32, #tpu.memory_space<vmem>>, vector<1x1x128xf32>,
    return
  }
  func.func @transform_0(%arg0: i32, %arg1: i32) -> (i32, i32, i32, i32) {
    %c2_i32 = arith.constant 2 : i32
    %0 = arith.muli %arg0, %c2_i32 : i32
    %1 = arith.addi %0, %arg1 : i32
    %c0_i32 = arith.constant 0 : i32
    %c0_i32_0 = arith.constant 0 : i32
    %c0_i32_1 = arith.constant 0 : i32
    %c0_i32_2 = arith.constant 0 : i32
    return %1, %c0_i32, %c0_i32_0, %c0_i32_1 : i32, i32, i32, i32
  }
  func.func @transform_1(%arg0: i32, %arg1: i32) -> (i32, i32, i32) {
    %c0_i32 = arith.constant 0 : i32
    %c0_i32_0 = arith.constant 0 : i32
    %c0_i32_1 = arith.constant 0 : i32
    %c0_i32_2 = arith.constant 0 : i32
    return %c0_i32, %c0_i32_0, %c0_i32_1 : i32, i32, i32
  }
  func.func @transform_2(%arg0: i32, %arg1: i32) -> (i32, i32) {
    %c0_i32 = arith.constant 0 : i32
    %c0_i32_0 = arith.constant 0 : i32
    %c0_i32_1 = arith.constant 0 : i32
    return %c0_i32, %c0_i32_0 : i32, i32
  }
  func.func @transform_3(%arg0: i32, %arg1: i32) -> (i32, i32, i32, i32) {
    %c0_i32 = arith.constant 0 : i32
    %c0_i32_0 = arith.constant 0 : i32
    %c0_i32_1 = arith.constant 0 : i32
    return %arg0, %arg1, %c0_i32, %c0_i32_0 : i32, i32, i32, i32
  }
  func.func @transform_4(%arg0: i32, %arg1: i32) -> (i32, i32, i32) {
    %c2_i32 = arith.constant 2 : i32
    %0 = arith.muli %arg0, %c2_i32 : i32
    %1 = arith.addi %0, %arg1 : i32
    %c0_i32 = arith.constant 0 : i32
    %c0_i32_0 = arith.constant 0 : i32
    %c0_i32_1 = arith.constant 0 : i32
    return %1, %c0_i32, %c0_i32_0 : i32, i32, i32
  }
  func.func @transform_5(%arg0: i32, %arg1: i32) -> (i32, i32, i32) {
    %c2_i32 = arith.constant 2 : i32
    %0 = arith.muli %arg0, %c2_i32 : i32
    %1 = arith.addi %0, %arg1 : i32
    %c0_i32 = arith.constant 0 : i32
    %c0_i32_0 = arith.constant 0 : i32
    %c0_i32_1 = arith.constant 0 : i32
    return %1, %c0_i32, %c0_i32_0 : i32, i32, i32
  }
}

module attributes {stable_mosaic.version = 11 : i64} {
  func.func @_bn_relu_pool_kernel(%arg0: i32, %arg1: i32, %arg2: memref<1x16x16x128xbf16, #tpu.memory_space<vmem>>, %arg3: memref<1x128xf32, #tpu.memory_space<vmem>>, %arg4: memref<1x128xf32, #tpu.memory_space<vmem>>, %arg5: memref<1x8x8x128xf32, #tpu.memory_space<vmem>>) attributes {dimension_semantics = [#tpu.dimension_semantics<parallel>, #tpu.dimension_semantics<parallel>], iteration_bounds = array<i64: 2, 1>, scalar_prefetch = 0 : i64, scratch_operands = 0 : i64, tpu.core_type = #tpu.core_type<tc>, window_params = [{transform_indices = @transform_0, window_bounds = array<i64: 1, 16, 16, 128>}, {pipeline_mode = #tpu.pipeline_mode<synchronous>, transform_indices = @transform_1, window_bounds = array<i64: 1, 128>}, {pipeline_mode = #tpu.pipeline_mode<synchronous>, transform_indices = @transform_2, window_bounds = array<i64: 1, 128>}, {transform_indices = @transform_3, window_bounds = array<i64: 1, 8, 8, 128>}]} {
    %c0 = arith.constant 0 : index
    %c0_0 = arith.constant 0 : index
    %0 = vector.load %arg3[%c0, %c0_0] : memref<1x128xf32, #tpu.memory_space<vmem>>, vector<1x128xf32>
    %c0_1 = arith.constant 0 : index
    %c0_2 = arith.constant 0 : index
    %1 = vector.load %arg4[%c0_1, %c0_2] : memref<1x128xf32, #tpu.memory_space<vmem>>, vector<1x128xf32>
    %c0_3 = arith.constant 0 : index
    %c0_4 = arith.constant 0 : index
    %c0_5 = arith.constant 0 : index
    %c0_6 = arith.constant 0 : index
    %2 = vector.load %arg2[%c0_3, %c0_4, %c0_5, %c0_6] : memref<1x16x16x128xbf16, #tpu.memory_space<vmem>>, vector<1x16x16x128xbf16>
    %3 = vector.shape_cast %2 : vector<1x16x16x128xbf16> to vector<16x16x128xbf16>
    %4 = arith.extf %3 : vector<16x16x128xbf16> to vector<16x16x128xf32>
    %5 = vector.shape_cast %0 : vector<1x128xf32> to vector<1x1x128xf32>
    %6 = vector.broadcast %5 : vector<1x1x128xf32> to vector<16x16x128xf32>
    %7 = arith.mulf %4, %6 : vector<16x16x128xf32>
    %8 = vector.shape_cast %1 : vector<1x128xf32> to vector<1x1x128xf32>
    %9 = vector.broadcast %8 : vector<1x1x128xf32> to vector<16x16x128xf32>
    %10 = arith.addf %7, %9 : vector<16x16x128xf32>
    %cst = arith.constant 0.000000e+00 : f32
    %11 = vector.broadcast %cst : f32 to vector<16x16x128xf32>
    %12 = arith.maximumf %10, %11 : vector<16x16x128xf32>
    %13 = vector.shape_cast %12 : vector<16x16x128xf32> to vector<8x2x16x128xf32>
    %cst_7 = arith.constant dense<0xFF800000> : vector<8x16x128xf32>
    %14 = vector.multi_reduction <maximumf>, %13, %cst_7 [1] : vector<8x2x16x128xf32> to vector<8x16x128xf32>
    %15 = vector.shape_cast %14 : vector<8x16x128xf32> to vector<8x8x2x128xf32>
    %cst_8 = arith.constant dense<0xFF800000> : vector<8x8x128xf32>
    %16 = vector.multi_reduction <maximumf>, %15, %cst_8 [2] : vector<8x8x2x128xf32> to vector<8x8x128xf32>
    %c0_9 = arith.constant 0 : index
    %c0_10 = arith.constant 0 : index
    %c0_11 = arith.constant 0 : index
    %c0_12 = arith.constant 0 : index
    %17 = vector.load %arg5[%c0_9, %c0_10, %c0_11, %c0_12] : memref<1x8x8x128xf32, #tpu.memory_space<vmem>>, vector<1x8x8x128xf32>
    %18 = vector.shape_cast %17 : vector<1x8x8x128xf32> to vector<8x8x128xf32>
    %19 = vector.shape_cast %16 : vector<8x8x128xf32> to vector<1x8x8x128xf32>
    tpu.vector_store %arg5[%c0_9, %c0_10, %c0_11, %c0_12], %19 {strides = array<i32>} : memref<1x8x8x128xf32, #tpu.memory_space<vmem>>, vector<1x8x8x128xf32>,
    return
  }
  func.func @transform_0(%arg0: i32, %arg1: i32) -> (i32, i32, i32, i32) {
    %c0_i32 = arith.constant 0 : i32
    %c0_i32_0 = arith.constant 0 : i32
    %c0_i32_1 = arith.constant 0 : i32
    return %arg0, %arg1, %c0_i32, %c0_i32_0 : i32, i32, i32, i32
  }
  func.func @transform_1(%arg0: i32, %arg1: i32) -> (i32, i32) {
    %c0_i32 = arith.constant 0 : i32
    %c0_i32_0 = arith.constant 0 : i32
    %c0_i32_1 = arith.constant 0 : i32
    return %c0_i32, %c0_i32_0 : i32, i32
  }
  func.func @transform_2(%arg0: i32, %arg1: i32) -> (i32, i32) {
    %c0_i32 = arith.constant 0 : i32
    %c0_i32_0 = arith.constant 0 : i32
    %c0_i32_1 = arith.constant 0 : i32
    return %c0_i32, %c0_i32_0 : i32, i32
  }
  func.func @transform_3(%arg0: i32, %arg1: i32) -> (i32, i32, i32, i32) {
    %c0_i32 = arith.constant 0 : i32
    %c0_i32_0 = arith.constant 0 : i32
    %c0_i32_1 = arith.constant 0 : i32
    return %arg0, %arg1, %c0_i32, %c0_i32_0 : i32, i32, i32, i32
  }
}

</mosaic_0001>

<bundles_post_ra>
// kernel: unet_down_forward.5
= control target key start
LH: loop header
LB: loop body
LE: loop exit
PB: predicated region body
PF: predicated region fallthrough
CT: control target
= control target key end

     0   :  { %s1240_s18 = smov 0   ;;  %s1242_s19 = smov 0   ;;  %s1745_s0 = inlined_call_operand.vmem [shape: bf16[2,16,16,128], index: 0, kind: input, shape index: {}, may-alias: {0,1,2}]   ;;  %s1746_s1 = inlined_call_operand.vmem [shape: bf16[2,16,16,128], index: 1, kind: input, shape index: {}, may-alias: {0,1,2}]   ;;  %s1747_s2 = inlined_call_operand.vmem [shape: bf16[2,16,16,128], index: 2, kind: input, shape index: {}, may-alias: {0,1,2}]   ;;  %s1748_s3 = inlined_call_operand.vmem [shape: f32[1,128], index: 3, kind: input, shape index: {}]   ;;  %s1749_s4 = inlined_call_operand.vmem [shape: f32[1,128], index: 4, kind: input, shape index: {}]   ;;  %s1750_s5 = inlined_call_operand.vmem [shape: bf16[4,10,24,128], index: 5, kind: output, shape index: {}]  }
   0x1   :  { %s1244_s20 = smov 0   ;;  %s1246_s21 = smov 0  }
   0x2   :  { %s1248_s22 = smov 0  }
   0x3 LB: > { %s24_s23 = sadd.s32 1, %s1200_s20  ;;  %s27_s24 = sadd.s32 1, %s1204_s21  ;;  %s1208_s22 = sphi %s1248_s22, %s15_s22   ;;  %s1204_s21 = sphi %s1246_s21, %s1765_s21   ;;  %s1200_s20 = sphi %s1244_s20, %s1764_s20   ;;  %s1196_s19 = sphi %s1242_s19, %s1763_s19   ;;  %s1192_s18 = sphi %s1240_s18, %s1762_s18  }
   0x4   : > { %p25_p0 = scmp.ge.s32.totalorder %s24_s23, 2  ;;  %p1007_p1 = scmp.ge.s32.totalorder %s1208_s22, 1 }
   0x5   : > { %p275_p2 = scmp.lt.s32.totalorder %s1208_s22, 5 }
   0x6   : > { %s1767_s23 = smov (%p25_p0, %s24_s23), 0  ;;  %s1769_s24 = smov (!%p25_p0, %s27_s24), %s1204_s21 }
   0x7   : > { %p276_p3 = pnand %p1007_p1, %p275_p2  ;;  %p29_p4 = scmp.ge.s32.totalorder %s1769_s24, 2 }
   0x8   : > { %s1273_s25 = sshll.u32 (!%p276_p3), %s1192_s18, 3  ;;  %p340_p5 = scmp.lt.s32.totalorder (!%p276_p3), %s1196_s19, 1 }
   0x9   : > { %s1771_s24 = smov (%p29_p4, %s1769_s24), 0  ;;  %279 = sbr.rel (%p276_p3) target bundleno = 107 (0x6b), region = 40 }
   0xa   : > { %p356_p6 = scmp.lt.s32.totalorder (!%p276_p3), %s1273_s25, 15  ;;  %s1029_s26 = sshll.u32 (!%p276_p3), %s1196_s19, 1 }
   0xb   : > { %s382_s29 = sadd.s32 (!%p276_p3), %s1192_s18, %s1029_s26  ;;  %s1307_s15 = sadd.s32 (!%p276_p3), 4294967295, %s1273_s25 }
   0xc   : > { %p383_p7 = scmp.lt.s32.totalorder (!%p276_p3), %s382_s29, 3  ;;  %p338_p8 = scmp.gt.s32.totalorder (!%p276_p3), %s1307_s15, 0 }
   0xd   : > { %p1010_p9 = scmp.lt.s32.totalorder (!%p276_p3), %s1307_s15, 15  ;;  %p740_p11 = scmp.gt.s32.totalorder (!%p276_p3), %s1192_s18, 0 }
   0xe   : > { %s1773_s19 = smov (!%p340_p5, %s1196_s19), 1  ;;  %v1289_v0 = vld [vmem:[%s1748_s3] ss:$0 sm:$0xff]  ;;  %s1775_s29 = smov (!%p383_p7, %s382_s29), 3  ;;  %vm659_vm0 = vcmask 1043456   ;;  %vm666_vm3 = vcmask 1040384  }
   0xf   : > { %s357_s27 = scalar_select %p356_p6, %s1273_s25, 15  ;;  %v1299_v5 = vld [vmem:[%s1749_s4] ss:$0 sm:$0xff]  ;;  %vm660_vm1 = vsmask.f32 7938 }
  0x10   : > { %s1277_s28 = sshll.u32 %s1773_s19, 5  ;;  %vm495_vm2 = vsmask.f32 256  ;;  %s1127_s16 = smul.u32 120, %s1775_s29  ;;  %vm1351_vm4 = vmand %vm659_vm0, %vm660_vm1  ;;  %vm496_vm8 = vsmask.f32 4368 }
  0x11   : > { %s1019_s30 = sshll.u32 %s357_s27, 1  ;;  %s365_s29 = sadd.s32 8, %s1273_s25  ;;  %vm1363_vm5 = vmand %vm666_vm3, %vm495_vm2 }
  0x12   : > { %s360_s6 = sadd.s32 %s1019_s30, %s1277_s28  ;;  %s1326_s26 = scalar_lea.vmem %s1750_s5, %s1127_s16  ;;  %vm1562_vm9 = vmor %vm495_vm2, %vm496_vm8 }
  0x13   : > { %s1021_s7 = sshll.u32 %s360_s6, 2  ;;  %v1031_v50 = vld [vmem:[%s1326_s26 + $0xc] sm:$0xf]  ;;  %v1034_v51 = vld [vmem:[%s1326_s26 + $0x14] sm:$0x1]  ;;  %p1374_p10 = scmp.lt.s32.totalorder %s365_s29, 15 }
  0x14   : > { %s1284_s10 = scalar_lea.vmem %s1746_s1, %s1021_s7  ;;  %v1036_v60 = vld [vmem:[%s1326_s26 + $0x18] sm:$0xf]  ;;  %p775_p12 = scmp.lt.s32.totalorder %s1192_s18, 1 }
  0x15   : > { %v1081_v1 = vld [vmem:[%s1284_s10] sm:$0xff]   ;;  %v1120_v2 = vld [vmem:[%s1284_s10 + $0x8] sm:$0xff]   ;;  %v1121_v3 = vld [vmem:[%s1284_s10 + $0x10] sm:$0xff]   ;;  %s1339_s27 = scalar_select %p338_p8, %s1307_s15, 0 }
  0x16   : > { %v1082_v4 = vunpack.c.l.bf16 %v1081_v1  ;;  %v1083_v6 = vunpack.c.h.bf16 %v1081_v1  ;;  %v1086_v7 = vunpack.c.l.bf16 %v1120_v2  ;;  %v1087_v8 = vunpack.c.h.bf16 %v1120_v2  ;;  %v1122_v9 = vld [vmem:[%s1284_s10 + $0x18] sm:$0xff]   ;;  %s1779_s29 = smov (!%p1374_p10, %s365_s29), 15 }
  0x17   : > { %v1090_v10 = vunpack.c.l.bf16 %v1121_v3  ;;  %v1091_v11 = vunpack.c.h.bf16 %v1121_v3  ;;  %v1094_v12 = vunpack.c.l.bf16 %v1122_v9  ;;  %v1095_v13 = vunpack.c.h.bf16 %v1122_v9  ;;  %v1039_v9 = vld [vmem:[%s1326_s26 + $0x20] sm:$0x1]  ;;  %s1777_s27 = smov (!%p1010_p9, %s1339_s27), 15  ;;  %s1781_s29 = smov (!%p1374_p10, %s1779_s29), 15 }
  0x18   : > { %v428_v14 = vmul.f32 %v1289_v0, %v1082_v4  ;;  %v429_v15 = vmul.f32 %v1289_v0, %v1083_v6  ;;  %v430_v16 = vmul.f32 %v1289_v0, %v1086_v7  ;;  %v431_v17 = vmul.f32 %v1289_v0, %v1087_v8  ;;  %v1123_v4 = vld [vmem:[%s1284_s10 + $0x20] sm:$0xff]   ;;  %s1015_s25 = sshll.u32 %s1777_s27, 1  ;;  %s1447_s6 = sshll.u32 %s1781_s29, 1 }
  0x19   : > { %v432_v18 = vmul.f32 %v1289_v0, %v1090_v10  ;;  %v433_v19 = vmul.f32 %v1289_v0, %v1091_v11  ;;  %v434_v20 = vmul.f32 %v1289_v0, %v1094_v12  ;;  %v435_v21 = vmul.f32 %v1289_v0, %v1095_v13  ;;  %v1041_v10 = vld [vmem:[%s1326_s26 + $0x24] sm:$0xf]  ;;  %s1456_s7 = sadd.s32 %s1277_s28, %s1015_s25  ;;  %s374_s8 = sadd.s32 %s1447_s6, %s1277_s28 }
  0x1a   : > { %v447_v22 = vadd.f32 %v1299_v5, %v428_v14  ;;  %v448_v23 = vadd.f32 %v1299_v5, %v429_v15  ;;  %v449_v24 = vadd.f32 %v1299_v5, %v430_v16  ;;  %v450_v25 = vadd.f32 %v1299_v5, %v431_v17  ;;  %v1044_v14 = vld [vmem:[%s1326_s26 + $0x2c] sm:$0x1]  ;;  %s1017_s9 = sshll.u32 %s1456_s7, 2  ;;  %s1470_s28 = sshll.u32 %s374_s8, 2 }
  0x1b   : > { %v451_v26 = vadd.f32 %v1299_v5, %v432_v18  ;;  %v452_v27 = vadd.f32 %v1299_v5, %v433_v19  ;;  %v453_v28 = vadd.f32 %v1299_v5, %v434_v20  ;;  %v454_v29 = vadd.f32 %v1299_v5, %v435_v21  ;;  %v1124_v17 = vld [vmem:[%s1284_s10 + $0x28] sm:$0xff]   ;;  %s348_s12 = scalar_lea.vmem %s1745_s0, %s1017_s9  ;;  %s376_s15 = scalar_lea.vmem %s1747_s2, %s1470_s28 }
  0x1c   : > { %v463_v30 = vmax.f32 %v447_v22, 0.0  ;;  %v464_v31 = vmax.f32 %v448_v23, 0.0  ;;  %v465_v32 = vmax.f32 %v449_v24, 0.0  ;;  %v466_v33 = vmax.f32 %v450_v25, 0.0  ;;  %v1046_v22 = vld [vmem:[%s1326_s26 + $0x30] sm:$0xf] }
  0x1d   : > { %v467_v34 = vmax.f32 %v451_v26, 0.0  ;;  %v468_v35 = vmax.f32 %v452_v27, 0.0  ;;  %v469_v36 = vmax.f32 %v453_v28, 0.0  ;;  %v470_v37 = vmax.f32 %v454_v29, 0.0  ;;  %v1125_v23 = vld [vmem:[%s1284_s10 + $0x30] sm:$0xff]  }
  0x1e   : > { %v479_v38 = vpack.c.bf16 %v463_v30, %v463_v30  ;;  %v1328_v39 = vpack.c.bf16 %v464_v31, %v464_v31  ;;  %v481_v40 = vpack.c.bf16 %v465_v32, %v465_v32  ;;  %v1330_v41 = vpack.c.bf16 %v466_v33, %v466_v33  ;;  %v1049_v29 = vld [vmem:[%s1326_s26 + $0x38] sm:$0x1]  ;;  %s741_s16 = scalar_select %p740_p11, 1, 0 }
  0x1f   : > { %v483_v42 = vpack.c.bf16 %v467_v34, %v467_v34  ;;  %v1332_v43 = vpack.c.bf16 %v468_v35, %v468_v35  ;;  %v485_v44 = vpack.c.bf16 %v469_v36, %v469_v36  ;;  %v1334_v45 = vpack.c.bf16 %v470_v37, %v470_v37  ;;  %v1126_v33 = vld [vmem:[%s1284_s10 + $0x38] sm:$0xff]   ;;  %s776_s17 = scalar_select %p775_p12, 1, 0 }
  0x20   : > { %v499_v46 = vshrl.u32 %v479_v38, 16  ;;  %v502_v47 = vshll.u32 %v479_v38, 16  ;;  %v507_v48 = vshrl.u32 %v1328_v39, 16  ;;  %v516_v49 = vshrl.u32 %v481_v40, 16 }
  0x21   : > { %v519_v52 = vshll.u32 %v481_v40, 16  ;;  %v524_v53 = vshrl.u32 %v1330_v41, 16  ;;  %v533_v54 = vshrl.u32 %v483_v42, 16  ;;  %v536_v55 = vshll.u32 %v483_v42, 16 }
  0x22   : > { %v1347_v56 = vrot.slane %v499_v46, 7  ;;  %v1355_v58 = vrot.slane %v507_v48, 7  ;;  %v1357_v59 = vrot.slane %v516_v49, 7  ;;  %v541_v61 = vshrl.u32 %v1332_v43, 16 }
  0x23   : > { %v1367_v63 = vrot.slane %v524_v53, 7  ;;  %v1369_v1 = vrot.slane %v533_v54, 7  ;;  %v550_v2 = vshrl.u32 %v485_v44, 16  ;;  %v553_v3 = vshll.u32 %v485_v44, 16 }
  0x24   : > { %v504_v6 = vor.u32 %v502_v47, %v1347_v56  ;;  %v514_v7 = vrot.slane %v1355_v58, 4  ;;  %v521_v8 = vor.u32 %v519_v52, %v1357_v59  ;;  %v1383_v11 = vrot.slane %v541_v61, 7 }
  0x25   : > { %v531_v12 = vrot.slane %v1367_v63, 4  ;;  %v538_v13 = vor.u32 %v536_v55, %v1369_v1  ;;  %v1388_v15 = vrot.slane %v550_v2, 7  ;;  %v558_v16 = vshrl.u32 %v1334_v45, 16 }
  0x26   : > { %v663_v18 = vsel %vm1351_vm4, %v504_v6, %v1031_v50  ;;  %v669_v19 = vsel %vm1363_vm5, %v514_v7, %v1034_v51  ;;  %v672_v20 = vsel %vm1351_vm4, %v521_v8, %v1036_v60  ;;  %v548_v21 = vrot.slane %v1383_v11, 4 }
  0x27   : > { %1032 = vst [vmem:[%s1326_s26 + $0xc] sm:$0xf] %v663_v18  ;;  %v676_v24 = vsel %vm1363_vm5, %v531_v12, %v1039_v9  ;;  %v679_v25 = vsel %vm1351_vm4, %v538_v13, %v1041_v10  ;;  %v555_v26 = vor.u32 %v553_v3, %v1388_v15  ;;  %v1412_v27 = vrot.slane %v558_v16, 7 }
  0x28   : > { %1035 = vst [vmem:[%s1326_s26 + $0x14] sm:$0x1] %v669_v19  ;;  %v683_v28 = vsel %vm1363_vm5, %v548_v21, %v1044_v14  ;;  %v1098_v30 = vunpack.c.l.bf16 %v1123_v4  ;;  %v1099_v31 = vunpack.c.h.bf16 %v1123_v4  ;;  %v1102_v32 = vunpack.c.l.bf16 %v1124_v17 }
  0x29   : > { %1037 = vst [vmem:[%s1326_s26 + $0x18] sm:$0xf] %v672_v20  ;;  %v686_v34 = vsel %vm1351_vm4, %v555_v26, %v1046_v22  ;;  %v565_v35 = vrot.slane %v1412_v27, 4  ;;  %v1103_v36 = vunpack.c.h.bf16 %v1124_v17  ;;  %v1106_v37 = vunpack.c.l.bf16 %v1125_v23  ;;  %v1054_v26 = vld [vmem:[%s1326_s26 + $0x44] sm:$0x1] }
  0x2a   : > { %1040 = vst [vmem:[%s1326_s26 + $0x20] sm:$0x1] %v676_v24  ;;  %v436_v38 = vmul.f32 %v1289_v0, %v1098_v30  ;;  %v437_v40 = vmul.f32 %v1289_v0, %v1099_v31  ;;  %v438_v42 = vmul.f32 %v1289_v0, %v1102_v32  ;;  %v1107_v44 = vunpack.c.h.bf16 %v1125_v23 }
  0x2b   : > { %1042 = vst [vmem:[%s1326_s26 + $0x24] sm:$0xf] %v679_v25  ;;  %v690_v46 = vsel %vm1363_vm5, %v565_v35, %v1049_v29  ;;  %v439_v47 = vmul.f32 %v1289_v0, %v1103_v36  ;;  %v440_v48 = vmul.f32 %v1289_v0, %v1106_v37  ;;  %v1110_v49 = vunpack.c.l.bf16 %v1126_v33  ;;  %v1051_v25 = vld [vmem:[%s1326_s26 + $0x3c] sm:$0xf]  ;;  %v1056_v35 = vld [vmem:[%s1326_s26 + $0x48] sm:$0xf] }
  0x2c   : > { %1045 = vst [vmem:[%s1326_s26 + $0x2c] sm:$0x1] %v683_v28  ;;  %v455_v50 = vadd.f32 %v1299_v5, %v436_v38  ;;  %v456_v51 = vadd.f32 %v1299_v5, %v437_v40  ;;  %v457_v52 = vadd.f32 %v1299_v5, %v438_v42  ;;  %v441_v53 = vmul.f32 %v1289_v0, %v1107_v44  ;;  %v1059_v38 = vld [vmem:[%s1326_s26 + $0x50] sm:$0x1] }
  0x2d   : > { %1047 = vst [vmem:[%s1326_s26 + $0x30] sm:$0xf] %v686_v34  ;;  %v458_v54 = vadd.f32 %v1299_v5, %v439_v47  ;;  %v459_v55 = vadd.f32 %v1299_v5, %v440_v48  ;;  %v442_v60 = vmul.f32 %v1289_v0, %v1110_v49  ;;  %v1111_v61 = vunpack.c.h.bf16 %v1126_v33  ;;  %v1061_v49 = vld [vmem:[%s1326_s26 + $0x54] sm:$0xf] }
  0x2e   : > { %1050 = vst [vmem:[%s1326_s26 + $0x38] sm:$0x1] %v690_v46  ;;  %v471_v2 = vmax.f32 %v455_v50, 0.0  ;;  %v472_v3 = vmax.f32 %v456_v51, 0.0  ;;  %v473_v4 = vmax.f32 %v457_v52, 0.0  ;;  %v460_v6 = vadd.f32 %v1299_v5, %v441_v53 }
  0x2f   : > { %v474_v7 = vmax.f32 %v458_v54, 0.0  ;;  %v475_v8 = vmax.f32 %v459_v55, 0.0  ;;  %v461_v9 = vadd.f32 %v1299_v5, %v442_v60  ;;  %v443_v10 = vmul.f32 %v1289_v0, %v1111_v61  ;;  %v1113_v55 = vld [vmem:[%s348_s12] sm:$0xff]  }
  0x30   : > { %v487_v12 = vpack.c.bf16 %v471_v2, %v471_v2  ;;  %v1462_v13 = vpack.c.bf16 %v472_v3, %v472_v3  ;;  %v489_v14 = vpack.c.bf16 %v473_v4, %v473_v4  ;;  %v476_v16 = vmax.f32 %v460_v6, 0.0  ;;  %v1117_v4 = vld [vmem:[%s376_s15] sm:$0xff]  }
  0x31   : > { %v1464_v17 = vpack.c.bf16 %v474_v7, %v474_v7  ;;  %v491_v18 = vpack.c.bf16 %v475_v8, %v475_v8  ;;  %v477_v19 = vmax.f32 %v461_v9, 0.0  ;;  %v462_v20 = vadd.f32 %v1299_v5, %v443_v10  ;;  %v1064_v8 = vld [vmem:[%s1326_s26 + $0x5c] sm:$0x1] }
  0x32   : > { %v567_v21 = vshrl.u32 %v487_v12, 16  ;;  %v570_v22 = vshll.u32 %v487_v12, 16  ;;  %v575_v23 = vshrl.u32 %v1462_v13, 16  ;;  %v584_v24 = vshrl.u32 %v489_v14, 16 }
  0x33   : > { %v587_v28 = vshll.u32 %v489_v14, 16  ;;  %v592_v29 = vshrl.u32 %v1464_v17, 16  ;;  %v601_v30 = vshrl.u32 %v491_v18, 16  ;;  %v604_v31 = vshll.u32 %v491_v18, 16  ;;  %v1066_v14 = vld [vmem:[%s1326_s26 + $0x60] sm:$0xf] }
  0x34   : > { %v1475_v32 = vrot.slane %v567_v21, 7  ;;  %v1477_v33 = vrot.slane %v575_v23, 7  ;;  %v1479_v34 = vrot.slane %v584_v24, 7  ;;  %v1482_v36 = vpack.c.bf16 %v476_v16, %v476_v16 }
  0x35   : > { %v1488_v37 = vrot.slane %v592_v29, 7  ;;  %v1491_v40 = vrot.slane %v601_v30, 7  ;;  %v493_v42 = vpack.c.bf16 %v477_v19, %v477_v19  ;;  %v478_v44 = vmax.f32 %v462_v20, 0.0 }
  0x36   : > { %v572_v46 = vor.u32 %v570_v22, %v1475_v32  ;;  %v582_v47 = vrot.slane %v1477_v33, 4  ;;  %v589_v48 = vor.u32 %v587_v28, %v1479_v34  ;;  %v609_v50 = vshrl.u32 %v1482_v36, 16 }
  0x37   : > { %v599_v51 = vrot.slane %v1488_v37, 4  ;;  %v606_v52 = vor.u32 %v604_v31, %v1491_v40  ;;  %v618_v53 = vshrl.u32 %v493_v42, 16  ;;  %v621_v54 = vshll.u32 %v493_v42, 16 }
  0x38   : > { %v693_v60 = vsel %vm1351_vm4, %v572_v46, %v1051_v25  ;;  %v697_v61 = vsel %vm1363_vm5, %v582_v47, %v1054_v26  ;;  %v700_v2 = vsel %vm1351_vm4, %v589_v48, %v1056_v35  ;;  %v1512_v3 = vrot.slane %v609_v50, 7 }
  0x39   : > { %1052 = vst [vmem:[%s1326_s26 + $0x3c] sm:$0xf] %v693_v60  ;;  %v704_v6 = vsel %vm1363_vm5, %v599_v51, %v1059_v38  ;;  %v707_v7 = vsel %vm1351_vm4, %v606_v52, %v1061_v49  ;;  %v1522_v9 = vrot.slane %v618_v53, 7  ;;  %v1524_v10 = vpack.c.bf16 %v478_v44, %v478_v44  ;;  %v1069_v38 = vld [vmem:[%s1326_s26 + $0x68] sm:$0x1] }
  0x3a   : > { %1055 = vst [vmem:[%s1326_s26 + $0x44] sm:$0x1] %v697_v61  ;;  %v616_v12 = vrot.slane %v1512_v3, 4  ;;  %v1114_v16 = vunpack.c.l.bf16 %v1113_v55  ;;  %v742_v18 = vstv %s741_s16  ;;  %v1115_v19 = vunpack.c.h.bf16 %v1113_v55 }
  0x3b   : > { %1057 = vst [vmem:[%s1326_s26 + $0x48] sm:$0xf] %v700_v2  ;;  %v623_v20 = vor.u32 %v621_v54, %v1522_v9  ;;  %v626_v21 = vshrl.u32 %v1524_v10, 16  ;;  %vm1532_vm6 = vcmp.eq.s32.totalorder %v742_v18, 1  ;;  %v1118_v23 = vunpack.c.l.bf16 %v1117_v4 }
  0x3c   : > { %1060 = vst [vmem:[%s1326_s26 + $0x50] sm:$0x1] %v704_v6  ;;  %v711_v24 = vsel %vm1363_vm5, %v616_v12, %v1064_v8  ;;  %v724_v25 = vmul.f32 %v1289_v0, %v1114_v16  ;;  %v725_v26 = vmul.f32 %v1289_v0, %v1115_v19  ;;  %v777_v28 = vstv %s776_s17 }
  0x3d   : > { %1062 = vst [vmem:[%s1326_s26 + $0x54] sm:$0xf] %v707_v7  ;;  %v714_v29 = vsel %vm1351_vm4, %v623_v20, %v1066_v14  ;;  %v1544_v30 = vrot.slane %v626_v21, 7  ;;  %v734_v31 = vmul.f32 %v1289_v0, %v1118_v23  ;;  %vm1547_vm7 = vcmp.eq.s32.totalorder %v777_v28, 1  ;;  %v772_v28 = vld [vmem:[%s1326_s26 + $0x8] sm:$0x1] }
  0x3e   : > { %1065 = vst [vmem:[%s1326_s26 + $0x5c] sm:$0x1] %v711_v24  ;;  %v726_v42 = vadd.f32 %v1299_v5, %v724_v25  ;;  %v727_v44 = vadd.f32 %v1299_v5, %v725_v26  ;;  %v1119_v46 = vunpack.c.h.bf16 %v1117_v4  ;;  %v505_v49 = vrot.slane %v1347_v56, 4 }
  0x3f   : > { %1067 = vst [vmem:[%s1326_s26 + $0x60] sm:$0xf] %v714_v29  ;;  %v633_v47 = vrot.slane %v1544_v30, 4  ;;  %v736_v48 = vadd.f32 %v1299_v5, %v734_v31  ;;  %v510_v50 = vshll.u32 %v1328_v39, 16  ;;  %v522_v55 = vrot.slane %v1357_v59, 4 }
  0x40   : > { %v728_v51 = vmax.f32 %v726_v42, 0.0  ;;  %v729_v52 = vmax.f32 %v727_v44, 0.0  ;;  %v735_v53 = vmul.f32 %v1289_v0, %v1119_v46  ;;  %v527_v39 = vshll.u32 %v1330_v41, 16  ;;  %v1071_v44 = vld [vmem:[%s1326_s26 + $0x6c] sm:$0xf] }
  0x41   : > { %v718_v60 = vsel %vm1363_vm5, %v633_v47, %v1069_v38  ;;  %v738_v61 = vmax.f32 %v736_v48, 0.0  ;;  %v512_v56 = vor.u32 %v510_v50, %v1355_v58  ;;  %v539_v59 = vrot.slane %v1369_v1, 4 }
  0x42   : > { %1070 = vst [vmem:[%s1326_s26 + $0x68] sm:$0x1] %v718_v60  ;;  %v744_v0 = vsel %vm1532_vm6, %v728_v51, 0.0  ;;  %v745_v2 = vsel %vm1532_vm6, %v729_v52, 0.0  ;;  %v737_v4 = vadd.f32 %v1299_v5, %v735_v53  ;;  %v529_v14 = vor.u32 %v527_v39, %v1367_v63  ;;  %v768_v63 = vld [vmem:[%s1326_s26] sm:$0xf] }
  0x43   : > { %v746_v6 = vpack.c.bf16 %v744_v0, %v744_v0  ;;  %v1578_v7 = vpack.c.bf16 %v745_v2, %v745_v2  ;;  %v779_v8 = vsel %vm1547_vm7, %v738_v61, 0.0  ;;  %v513_v41 = vsel %vm1562_vm9, %v505_v49, %v512_v56 }
  0x44   : > { %v781_v58 = vpack.c.bf16 %v779_v8, %v779_v8  ;;  %v739_v12 = vmax.f32 %v737_v4, 0.0  ;;  %1033 = vst [vmem:[%s1326_s26 + $0x10] sm:$0xf] %v513_v41  ;;  %v544_v5 = vshll.u32 %v1332_v43, 16  ;;  %v556_v19 = vrot.slane %v1388_v15, 4 }
  0x45   : > { %v749_v1 = vshrl.u32 %v746_v6, 16  ;;  %v752_v16 = vshll.u32 %v746_v6, 16  ;;  %v757_v18 = vshrl.u32 %v1578_v7, 16  ;;  %v530_v23 = vsel %vm1562_vm9, %v522_v55, %v529_v14  ;;  %v814_v8 = vld [vmem:[%s1326_s26 + $0xc] sm:$0x1] }
  0x46   : > { %v784_v20 = vshrl.u32 %v781_v58, 16  ;;  %v787_v21 = vshll.u32 %v781_v58, 16  ;;  %v780_v22 = vsel %vm1547_vm7, %v739_v12, 0.0  ;;  %1038 = vst [vmem:[%s1326_s26 + $0x1c] sm:$0xf] %v530_v23  ;;  %v546_v26 = vor.u32 %v544_v5, %v1383_v11 }
  0x47   : > { %v751_v24 = vrot.slane %v749_v1, 7  ;;  %v759_v25 = vrot.slane %v757_v18, 7  ;;  %v782_v43 = vpack.c.bf16 %v780_v22, %v780_v22  ;;  %v561_v15 = vshll.u32 %v1334_v45, 16  ;;  %v817_v58 = vld [vmem:[%s1326_s26 + $0x18] sm:$0x1] }
  0x48   : > { %v786_v29 = vrot.slane %v784_v20, 7  ;;  %v573_v31 = vrot.slane %v1475_v32, 4  ;;  %v578_v35 = vshll.u32 %v1462_v13, 16  ;;  %v547_v47 = vsel %vm1562_vm9, %v539_v59, %v546_v26  ;;  %v820_v14 = vld [vmem:[%s1326_s26 + $0x24] sm:$0x1] }
  0x49   : > { %v754_v38 = vor.u32 %v752_v16, %v751_v24  ;;  %v764_v42 = vrot.slane %v759_v25, 4  ;;  %v792_v46 = vshrl.u32 %v782_v43, 16  ;;  %1043 = vst [vmem:[%s1326_s26 + $0x28] sm:$0xf] %v547_v47  ;;  %v563_v11 = vor.u32 %v561_v15, %v1412_v27  ;;  %v1074_v27 = vld [vmem:[%s1326_s26 + $0x74] sm:$0x1] }
  0x4a   : > { %v789_v48 = vor.u32 %v787_v21, %v786_v29  ;;  %v580_v45 = vor.u32 %v578_v35, %v1477_v33  ;;  %v590_v32 = vrot.slane %v1479_v34, 4  ;;  %v595_v51 = vshll.u32 %v1464_v17, 16  ;;  %v823_v1 = vld [vmem:[%s1326_s26 + $0x30] sm:$0x1]  ;;  %v826_v16 = vld [vmem:[%s1326_s26 + $0x3c] sm:$0x1] }
  0x4b   : > { %v769_v13 = vsel %vm1351_vm4, %v754_v38, %v768_v63  ;;  %v773_v49 = vsel %vm1363_vm5, %v764_v42, %v772_v28  ;;  %v794_v50 = vrot.slane %v792_v46, 7  ;;  %v564_v33 = vsel %vm1562_vm9, %v556_v19, %v563_v11  ;;  %v829_v19 = vld [vmem:[%s1326_s26 + $0x48] sm:$0x1]  ;;  %v832_v21 = vld [vmem:[%s1326_s26 + $0x54] sm:$0x1] }
  0x4c   : > { %770 = vst [vmem:[%s1326_s26] sm:$0xf] %v769_v13  ;;  %v805_v52 = vsel %vm1351_vm4, %v789_v48, %v1071_v44  ;;  %v581_v34 = vsel %vm1562_vm9, %v573_v31, %v580_v45  ;;  %v607_v53 = vrot.slane %v1491_v40, 4  ;;  %v597_v60 = vor.u32 %v595_v51, %v1488_v37  ;;  %v835_v23 = vld [vmem:[%s1326_s26 + $0x60] sm:$0x1]  ;;  %v844_v28 = vld [vmem:[%s1326_s26 + $0x14] sm:$0xf] }
  0x4d   : > { %774 = vst [vmem:[%s1326_s26 + $0x8] sm:$0x1] %v773_v49  ;;  %v799_v55 = vrot.slane %v794_v50, 4  ;;  %v612_v17 = vshll.u32 %v1482_v36, 16  ;;  %v624_v61 = vrot.slane %v1522_v9, 4  ;;  %v629_v56 = vshll.u32 %v1524_v10, 16 }
  0x4e   : > { %1072 = vst [vmem:[%s1326_s26 + $0x6c] sm:$0xf] %v805_v52  ;;  %v755_v39 = vrot.slane %v751_v24, 4  ;;  %v760_v0 = vshll.u32 %v1578_v7, 16  ;;  %v790_v2 = vrot.slane %v786_v29, 4  ;;  %v598_v36 = vsel %vm1562_vm9, %v590_v32, %v597_v60 }
  0x4f   : > { %v809_v40 = vsel %vm1363_vm5, %v799_v55, %v1074_v27  ;;  %1048 = vst [vmem:[%s1326_s26 + $0x34] sm:$0xf] %v564_v33  ;;  %v614_v37 = vor.u32 %v612_v17, %v1512_v3  ;;  %v795_v9 = vshll.u32 %v782_v43, 16  ;;  %v631_v10 = vor.u32 %v629_v56, %v1544_v30  ;;  %v847_v15 = vld [vmem:[%s1326_s26 + $0x20] sm:$0xf] }
  0x50   : > { %1075 = vst [vmem:[%s1326_s26 + $0x74] sm:$0x1] %v809_v40  ;;  %v762_v4 = vor.u32 %v760_v0, %v759_v25  ;;  %v815_v5 = vsel %vm1363_vm5, 0, %v814_v8  ;;  %v818_v54 = vsel %vm1363_vm5, 0, %v817_v58  ;;  %v821_v18 = vsel %vm1363_vm5, 0, %v820_v14 }
  0x51   : > { %1053 = vst [vmem:[%s1326_s26 + $0x40] sm:$0xf] %v581_v34  ;;  %v615_v59 = vsel %vm1562_vm9, %v607_v53, %v614_v37  ;;  %v797_v6 = vor.u32 %v795_v9, %v794_v50  ;;  %v632_v3 = vsel %vm1562_vm9, %v624_v61, %v631_v10  ;;  %v824_v20 = vsel %vm1363_vm5, 0, %v823_v1  ;;  %v850_v35 = vld [vmem:[%s1326_s26 + $0x2c] sm:$0xf] }
  0x52   : > { %1058 = vst [vmem:[%s1326_s26 + $0x4c] sm:$0xf] %v598_v36  ;;  %v763_v7 = vsel %vm1562_vm9, %v755_v39, %v762_v4  ;;  %v827_v22 = vsel %vm1363_vm5, 0, %v826_v16  ;;  %v830_v24 = vsel %vm1363_vm5, 0, %v829_v19  ;;  %v833_v25 = vsel %vm1363_vm5, 0, %v832_v21 }
  0x53   : > { %1063 = vst [vmem:[%s1326_s26 + $0x58] sm:$0xf] %v615_v59  ;;  %v798_v30 = vsel %vm1562_vm9, %v790_v2, %v797_v6  ;;  %v811_v41 = vld [vmem:[%s1326_s26] sm:$0x1]  ;;  %v836_v26 = vsel %vm1363_vm5, 0, %v835_v23  ;;  %v845_v38 = vsel %vm1351_vm4, 0, %v844_v28 }
  0x54   : > { %1068 = vst [vmem:[%s1326_s26 + $0x64] sm:$0xf] %v632_v3  ;;  %v812_v12 = vsel %vm1363_vm5, 0, %v811_v41  ;;  %v841_v43 = vld [vmem:[%s1326_s26 + $0x8] sm:$0xf]  ;;  %v848_v62 = vsel %vm1351_vm4, 0, %v847_v15 }
  0x55   : > { %771 = vst [vmem:[%s1326_s26 + $0x4] sm:$0xf] %v763_v7  ;;  %v838_v63 = vld [vmem:[%s1326_s26 + $0x6c] sm:$0x1]  ;;  %v842_v31 = vsel %vm1351_vm4, 0, %v841_v43  ;;  %v851_v46 = vsel %vm1351_vm4, 0, %v850_v35 }
  0x56   : > { %1073 = vst [vmem:[%s1326_s26 + $0x70] sm:$0xf] %v798_v30  ;;  %v839_v29 = vsel %vm1363_vm5, 0, %v838_v63  ;;  %v853_v42 = vld [vmem:[%s1326_s26 + $0x38] sm:$0xf] }
  0x57   : > { %813 = vst [vmem:[%s1326_s26] sm:$0x1] %v812_v12  ;;  %v856_v44 = vld [vmem:[%s1326_s26 + $0x44] sm:$0xf]  ;;  %v859_v47 = vld [vmem:[%s1326_s26 + $0x50] sm:$0xf]  ;;  %v854_v48 = vsel %vm1351_vm4, 0, %v853_v42 }
  0x58   : > { %816 = vst [vmem:[%s1326_s26 + $0xc] sm:$0x1] %v815_v5  ;;  %v862_v11 = vld [vmem:[%s1326_s26 + $0x5c] sm:$0xf]  ;;  %v857_v45 = vsel %vm1351_vm4, 0, %v856_v44  ;;  %v860_v13 = vsel %vm1351_vm4, 0, %v859_v47 }
  0x59   : > { %819 = vst [vmem:[%s1326_s26 + $0x18] sm:$0x1] %v818_v54  ;;  %v865_v32 = vld [vmem:[%s1326_s26 + $0x68] sm:$0xf]  ;;  %v868_v49 = vld [vmem:[%s1326_s26 + $0x74] sm:$0xf] }
  0x5a   : > { %822 = vst [vmem:[%s1326_s26 + $0x24] sm:$0x1] %v821_v18  ;;  %v863_v50 = vsel %vm1351_vm4, 0, %v862_v11  ;;  %v866_v51 = vsel %vm1351_vm4, 0, %v865_v32  ;;  %v869_v52 = vsel %vm1351_vm4, 0, %v868_v49 }
  0x5b   : > { %825 = vst [vmem:[%s1326_s26 + $0x30] sm:$0x1] %v824_v20 }
  0x5c   : > { %828 = vst [vmem:[%s1326_s26 + $0x3c] sm:$0x1] %v827_v22 }
  0x5d   : > { %831 = vst [vmem:[%s1326_s26 + $0x48] sm:$0x1] %v830_v24 }
  0x5e   : > { %834 = vst [vmem:[%s1326_s26 + $0x54] sm:$0x1] %v833_v25 }
  0x5f   : > { %837 = vst [vmem:[%s1326_s26 + $0x60] sm:$0x1] %v836_v26 }
  0x60   : > { %840 = vst [vmem:[%s1326_s26 + $0x6c] sm:$0x1] %v839_v29 }
  0x61   : > { %843 = vst [vmem:[%s1326_s26 + $0x8] sm:$0xf] %v842_v31 }
  0x62   : > { %846 = vst [vmem:[%s1326_s26 + $0x14] sm:$0xf] %v845_v38 }
  0x63   : > { %849 = vst [vmem:[%s1326_s26 + $0x20] sm:$0xf] %v848_v62 }
  0x64   : > { %852 = vst [vmem:[%s1326_s26 + $0x2c] sm:$0xf] %v851_v46 }
  0x65   : > { %855 = vst [vmem:[%s1326_s26 + $0x38] sm:$0xf] %v854_v48 }
  0x66   : > { %858 = vst [vmem:[%s1326_s26 + $0x44] sm:$0xf] %v857_v45 }
  0x67   : > { %861 = vst [vmem:[%s1326_s26 + $0x50] sm:$0xf] %v860_v13 }
  0x68   : > { %864 = vst [vmem:[%s1326_s26 + $0x5c] sm:$0xf] %v863_v50 }
  0x69   : > { %867 = vst [vmem:[%s1326_s26 + $0x68] sm:$0xf] %v866_v51 }
  0x6a   : > { %870 = vst [vmem:[%s1326_s26 + $0x74] sm:$0xf] %v869_v52 }
  0x6b PF: > { %s15_s22 = sadd.s32 1, %s1208_s22   ;;  %s1762_s18 = smov %s1200_s20 }
  0x6c   : > { %p12_p13 = scmp.ge.s32.totalorder %s15_s22, 6   ;;  %s1763_s19 = smov %s1204_s21 }
  0x6d   : > { %s1764_s20 = smov %s1767_s23  ;;  %s1765_s21 = smov %s1771_s24 }
  0x6e   :  { %14 = sbr.rel (!%p12_p13) target bundleno = 3 (0x3), region = 78 }

// kernel: unet_down_forward.4
= control target key start
LH: loop header
LB: loop body
LE: loop exit
PB: predicated region body
PF: predicated region fallthrough
CT: control target
= control target key end

     0   :  { %s3092_s18 = smov 0   ;;  %s3094_s19 = smov 0   ;;  %s3929_s0 = inlined_call_operand.vmem [shape: bf16[4,10,24,8], index: 0, kind: input, shape index: {}]   ;;  %s3930_s1 = inlined_call_operand.vmem [shape: bf16[9,8,128], index: 1, kind: input, shape index: {}]   ;;  %s3931_s2 = inlined_call_operand.vmem [shape: f32[1,128], index: 2, kind: input, shape index: {}]   ;;  %s3932_s3 = inlined_call_operand.vmem [shape: bf16[2,16,16,128], index: 3, kind: output, shape index: {0}]   ;;  %s3933_s4 = inlined_call_operand.vmem [shape: f32[4,1,128], index: 4, kind: output, shape index: {1}]   ;;  %s3934_s5 = inlined_call_operand.vmem [shape: f32[4,1,128], index: 5, kind: output, shape index: {2}]  }
   0x1   :  { %s3096_s20 = smov 0   ;;  %s3098_s21 = smov 0  }
   0x2   :  { %s3100_s22 = smov 0  }
   0x3 LB: > { %s25_s23 = sadd.s32 1, %s3052_s20  ;;  %s28_s24 = sadd.s32 1, %s3056_s21  ;;  %s3060_s22 = sphi %s3100_s22, %s16_s22   ;;  %s3056_s21 = sphi %s3098_s21, %s3942_s21   ;;  %s3052_s20 = sphi %s3096_s20, %s3941_s20   ;;  %s3048_s19 = sphi %s3094_s19, %s3940_s19   ;;  %s3044_s18 = sphi %s3092_s18, %s3939_s18  }
   0x4   : > { %p26_p0 = scmp.ge.s32.totalorder %s25_s23, 2  ;;  %p2599_p1 = scmp.ge.s32.totalorder %s3060_s22, 1 }
   0x5   : > { %p222_p2 = scmp.lt.s32.totalorder %s3060_s22, 5 }
   0x6   : > { %s3944_s23 = smov (%p26_p0, %s25_s23), 0  ;;  %s3946_s24 = smov (!%p26_p0, %s28_s24), %s3056_s21 }
   0x7   : > { %p223_p3 = pnand %p2599_p1, %p222_p2  ;;  %p30_p4 = scmp.ge.s32.totalorder %s3946_s24, 2 }
   0x8   : > { %s2600_s27 = sshll.u32 (!%p223_p3), %s3048_s19, 1  ;;  %s2602_s7 = sshll.u32 (!%p223_p3), %s3044_s18, 3 }
   0x9   : > { %s3948_s24 = smov (%p30_p4, %s3946_s24), 0  ;;  %226 = sbr.rel (%p223_p3) target bundleno = 480 (0x1e0), region = 32 }
   0xa   : > { %s268_s28 = sadd.s32 (!%p223_p3), %s3044_s18, %s2600_s27  ;;  %p277_p6 = scmp.lt.s32.totalorder (!%p223_p3), %s3048_s19, 1 }
   0xb   : > { %p269_p5 = scmp.lt.s32.totalorder (!%p223_p3), %s268_s28, 3  ;;  %p279_p7 = scmp.lt.s32.totalorder (!%p223_p3), %s2602_s7, 15 }
   0xe   : > { %v2608_v0 = vld [vmem:[%s3930_s1 + $0x4] sm:$0xf]  ;;  %vm573_vm0 = vcmask 1043456   ;;  %v2665_v2 = vld [vmem:[%s3930_s1 + $0x8] sm:$0xf]  ;;  %s3950_s28 = smov (!%p269_p5, %s268_s28), 3 }
   0xf   : > { %v575_v1 = vsel %vm573_vm0, %v2608_v0, 0  ;;  %v876_v3 = vsel %vm573_vm0, %v2665_v2, 0  ;;  %v2690_v4 = vld [vmem:[%s3930_s1 + $0xc] sm:$0xf]  ;;  %v318_v5 = vld [vmem:[%s3930_s1] sm:$0xf]  ;;  %s291_s17 = scalar_lea.vmem %s3933_s4, %s3950_s28  ;;  %s298_s27 = scalar_lea.vmem %s3934_s5, %s3950_s28 }
  0x10   : > { %2977 = vmatpush.bf16.msra.mxu1 %v575_v1  ;;  %2978 = vmatpush.bf16.msra.mxu2 %v575_v1  ;;  %v2755_v6 = vld [vmem:[%s3930_s1 + $0x10] sm:$0xf]  ;;  %s2980_s12 = smul.u32 120, %s3950_s28  ;;  %v1027_v7 = vsel %vm573_vm0, %v2690_v4, 0  ;;  %v691_v8 = vsel %vm573_vm0, %v318_v5, 0  ;;  %vm548_vm3 = vcmask 64512  }
  0x11   : > { %2979 = vmatpush.bf16.msra.mxu3 %v575_v1  ;;  %584 = vmatpush.bf16.msra.mxu0 %v575_v1  ;;  %v1361_v9 = vsel %vm573_vm0, %v2755_v6, 0  ;;  %vm327_vm1 = vsmask.f32 3328  ;;  %vm328_vm2 = vsmask.f32 7440  ;;  %vm766_vm5 = vcmask 1042432  }
  0x12   : > { %s3154_s15 = scalar_lea.vmem %s3929_s0, %s2980_s12  ;;  %vm3182_vm4 = vmor %vm327_vm1, %vm328_vm2  ;;  %vm767_vm6 = vcmask 1046532   ;;  %s3952_s19 = smov (!%p277_p6, %s3048_s19), 1 }
  0x13   : > { %v306_v10 = vld [vmem:[%s3154_s15 + $0x18] sm:$0xf]  ;;  %v3158_v11 = vld [vmem:[%s3154_s15 + $0x1c] sm:$0xf]  ;;  %v3161_v12 = vld [vmem:[%s3154_s15 + $0x20] sm:$0x1] }
  0x14   : > { %885 = vmatpush.bf16.msrb.mxu2 %v876_v3  ;;  %700 = vmatpush.bf16.msrb.mxu1 %v691_v8  ;;  %v379_v13 = vshrl.u32 %v306_v10, 16  ;;  %v382_v14 = vshll.u32 %v306_v10, 16  ;;  %v388_v15 = vshll.u32 %v3158_v11, 16  ;;  %v392_v16 = vshrl.u32 %v3158_v11, 16  ;;  %v310_v17 = vld [vmem:[%s3154_s15 + $0x30] sm:$0xf]  ;;  %vm3290_vm7 = vmor %vm766_vm5, %vm767_vm6 }
  0x15   : > { %1036 = vmatpush.bf16.msrb.mxu3 %v1027_v7  ;;  %1370 = vmatpush.bf16.msrb.mxu0 %v1361_v9  ;;  %v398_v18 = vshll.u32 %v3161_v12, 16  ;;  %v3168_v19 = vld [vmem:[%s3154_s15 + $0x34] sm:$0xf]  ;;  %v3171_v20 = vld [vmem:[%s3154_s15 + $0x38] sm:$0x1]  ;;  %v427_v21 = vshrl.u32 %v310_v17, 16 }
  0x16   : > { %v381_v22 = vrot.slane %v379_v13, 4  ;;  %v384_v23 = vrot.slane %v382_v14, 5  ;;  %v390_v24 = vrot.slane %v388_v15, 5  ;;  %v394_v25 = vrot.slane %v392_v16, 4  ;;  %v314_v26 = vld [vmem:[%s3154_s15 + $0x48] sm:$0xf] }
  0x17   : > { %v400_v27 = vrot.slane %v398_v18, 5  ;;  %v429_v28 = vrot.slane %v427_v21, 4  ;;  %v430_v29 = vshll.u32 %v310_v17, 16  ;;  %v436_v30 = vshll.u32 %v3168_v19, 16  ;;  %v3178_v35 = vld [vmem:[%s3154_s15 + $0x4c] sm:$0xf] }
  0x18   : > { %v385_v31 = vor.u32 %v384_v23, %v381_v22  ;;  %v395_v32 = vor.u32 %v394_v25, %v390_v24  ;;  %v440_v33 = vshrl.u32 %v3168_v19, 16  ;;  %v446_v34 = vshll.u32 %v3171_v20, 16  ;;  %v3187_v46 = vld [vmem:[%s3154_s15 + $0x50] sm:$0x1]  ;;  %v302_v54 = vld [vmem:[%s3154_s15] sm:$0xf] }
  0x19   : > { %v432_v37 = vrot.slane %v430_v29, 5  ;;  %v438_v38 = vrot.slane %v436_v30, 5  ;;  %v475_v39 = vshrl.u32 %v314_v26, 16  ;;  %v478_v40 = vshll.u32 %v314_v26, 16  ;;  %v3200_v2 = vld [vmem:[%s3154_s15 + $0x4] sm:$0xf] }
  0x1a   : > { %v386_v41 = vrot.slane %v385_v31, 4  ;;  %v396_v42 = vrot.slane %v395_v32, 4  ;;  %v442_v43 = vrot.slane %v440_v33, 4  ;;  %v448_v44 = vrot.slane %v446_v34, 5  ;;  %v3205_v8 = vld [vmem:[%s3154_s15 + $0x8] sm:$0x1] }
  0x1b   : > { %v433_v45 = vor.u32 %v432_v37, %v429_v28  ;;  %v477_v47 = vrot.slane %v475_v39, 4  ;;  %v480_v48 = vrot.slane %v478_v40, 5  ;;  %v484_v49 = vshll.u32 %v3178_v35, 16  ;;  %v308_v15 = vld [vmem:[%s3154_s15 + $0x24] sm:$0xf]  ;;  %s3954_s7 = smov (!%p279_p7, %s2602_s7), 15 }
  0x1c   : > { %v391_v50 = vsel %vm3182_vm4, %v386_v41, %v390_v24  ;;  %v401_v51 = vsel %vm3182_vm4, %v396_v42, %v400_v27  ;;  %v443_v52 = vor.u32 %v442_v43, %v438_v38  ;;  %v488_v53 = vshrl.u32 %v3178_v35, 16  ;;  %v3216_v26 = vld [vmem:[%s3154_s15 + $0x28] sm:$0xf]  ;;  %v3221_v30 = vld [vmem:[%s3154_s15 + $0x2c] sm:$0x1]  ;;  %s2603_s8 = sshll.u32 %s3954_s7, 1 }
  0x1d   : > { %v528_v55 = vunpack.c.l.b16 %v391_v50  ;;  %v529_v56 = vunpack.c.l.b16 %v401_v51  ;;  %v434_v57 = vrot.slane %v433_v45, 4  ;;  %v481_v58 = vor.u32 %v480_v48, %v477_v47  ;;  %v3229_v51 = vld [vmem:[%s3154_s15 + $0x40] sm:$0xf]  ;;  %s2604_s18 = sshll.u32 %s3952_s19, 5 }
  0x1e   : > { %v444_v59 = vrot.slane %v443_v52, 4  ;;  %v486_v60 = vrot.slane %v484_v49, 5  ;;  %v490_v61 = vrot.slane %v488_v53, 4  ;;  %v494_v62 = vshll.u32 %v3187_v46, 16  ;;  %s283_s11 = sadd.s32 %s2604_s18, %s2603_s8 }
  0x1f   : > { %v542_v63 = vpack.c.b16 %v529_v56, %v528_v55  ;;  %v439_v0 = vsel %vm3182_vm4, %v434_v57, %v438_v38  ;;  %v482_v1 = vrot.slane %v481_v58, 4  ;;  %v331_v3 = vshrl.u32 %v302_v54, 16  ;;  %v312_v38 = vld [vmem:[%s3154_s15 + $0x3c] sm:$0xf]  ;;  %v3235_v56 = vld [vmem:[%s3154_s15 + $0x44] sm:$0x1] }
  0x20   : > { %v449_v4 = vsel %vm3182_vm4, %v444_v59, %v448_v44  ;;  %v532_v5 = vunpack.c.l.b16 %v439_v0  ;;  %v491_v6 = vor.u32 %v490_v61, %v486_v60  ;;  %v496_v7 = vrot.slane %v494_v62, 5  ;;  %v316_v58 = vld [vmem:[%s3154_s15 + $0x54] sm:$0xf]  ;;  %s2605_s12 = sshll.u32 %s283_s11, 2 }
  0x21   : > { %2611 = vmatmul.msk.bf16.vlgmr.msra.gmra.mxu1 %vm548_vm3, %v542_v63  ;;  %v533_v9 = vunpack.c.l.b16 %v449_v4  ;;  %v487_v10 = vsel %vm3182_vm4, %v482_v1, %v486_v60  ;;  %v333_v13 = vrot.slane %v331_v3, 4  ;;  %v334_v14 = vshll.u32 %v302_v54, 16  ;;  %s3869_s14 = scalar_lea.vmem %s3932_s3, %s2605_s12 }
  0x22   : > { %v492_v16 = vrot.slane %v491_v6, 4  ;;  %v536_v17 = vunpack.c.l.b16 %v487_v10  ;;  %v340_v18 = vshll.u32 %v3200_v2, 16  ;;  %v344_v21 = vshrl.u32 %v3200_v2, 16 }
  0x23   : > { %v544_v22 = vpack.c.b16 %v533_v9, %v532_v5  ;;  %v336_v23 = vrot.slane %v334_v14, 5  ;;  %v350_v24 = vshll.u32 %v3205_v8, 16  ;;  %v774_v25 = vrot.slane %v3205_v8, 5 }
  0x24   : > { %v497_v27 = vsel %vm3182_vm4, %v492_v16, %v496_v7  ;;  %v342_v28 = vrot.slane %v340_v18, 5  ;;  %v346_v29 = vrot.slane %v344_v21, 4  ;;  %v403_v31 = vshrl.u32 %v308_v15, 16  ;;  %v3249_v16 = vld [vmem:[%s3154_s15 + $0x5c] sm:$0x1] }
  0x25   : > { %2613 = vmatmul.msk.bf16.vlgmr.msra.gmra.mxu2 %vm548_vm3, %v544_v22  ;;  %v537_v32 = vunpack.c.l.b16 %v497_v27  ;;  %v337_v33 = vor.u32 %v336_v23, %v333_v13  ;;  %v352_v34 = vrot.slane %v350_v24, 5  ;;  %v406_v37 = vshll.u32 %v308_v15, 16  ;;  %v3246_v15 = vld [vmem:[%s3154_s15 + $0x58] sm:$0xf]  ;;  %v304_v23 = vld [vmem:[%s3154_s15 + $0xc] sm:$0xf] }
  0x26   : > { %v347_v39 = vor.u32 %v346_v29, %v342_v28  ;;  %v405_v40 = vrot.slane %v403_v31, 4  ;;  %v412_v41 = vshll.u32 %v3216_v26, 16  ;;  %v416_v42 = vshrl.u32 %v3216_v26, 16 }
  0x27   : > { %v546_v43 = vpack.c.b16 %v537_v32, %v536_v17  ;;  %v338_v44 = vrot.slane %v337_v33, 4  ;;  %v408_v45 = vrot.slane %v406_v37, 5  ;;  %v422_v47 = vshll.u32 %v3221_v30, 16 }
  0x28   : > { %v348_v48 = vrot.slane %v347_v39, 4  ;;  %v414_v49 = vrot.slane %v412_v41, 5  ;;  %v418_v50 = vrot.slane %v416_v42, 4  ;;  %v451_v52 = vshrl.u32 %v312_v38, 16 }
  0x29   : > { %2615 = vmatmul.msk.bf16.vlgmr.msra.gmra.mxu3 %vm548_vm3, %v546_v43  ;;  %v343_v53 = vsel %vm3182_vm4, %v338_v44, %v342_v28  ;;  %v409_v54 = vor.u32 %v408_v45, %v405_v40  ;;  %v424_v55 = vrot.slane %v422_v47, 5  ;;  %v454_v57 = vshll.u32 %v312_v38, 16  ;;  %v3261_v40 = vld [vmem:[%s3154_s15 + $0x10] sm:$0xf]  ;;  %v3264_v47 = vld [vmem:[%s3154_s15 + $0x14] sm:$0x1] }
  0x2a   : > { %v353_v59 = vsel %vm3182_vm4, %v348_v48, %v352_v34  ;;  %v524_v60 = vunpack.c.l.b16 %v343_v53  ;;  %v419_v61 = vor.u32 %v418_v50, %v414_v49  ;;  %v453_v62 = vrot.slane %v451_v52, 4 }
  0x2b   : > { %v525_v63 = vunpack.c.l.b16 %v353_v59  ;;  %v410_v0 = vrot.slane %v409_v54, 4  ;;  %v456_v1 = vrot.slane %v454_v57, 5  ;;  %v460_v3 = vshll.u32 %v3229_v51, 16 }
  0x2c   : > { %v420_v4 = vrot.slane %v419_v61, 4  ;;  %v464_v5 = vshrl.u32 %v3229_v51, 16  ;;  %v470_v6 = vshll.u32 %v3235_v56, 16  ;;  %v499_v7 = vshrl.u32 %v316_v58, 16 }
  0x2d   : > { %v540_v9 = vpack.c.b16 %v525_v63, %v524_v60  ;;  %v415_v10 = vsel %vm3182_vm4, %v410_v0, %v414_v49  ;;  %v457_v13 = vor.u32 %v456_v1, %v453_v62  ;;  %v462_v14 = vrot.slane %v460_v3, 5  ;;  %v742_v1 = vld [vmem:[%s3154_s15] sm:$0xe] }
  0x2e   : > { %v425_v17 = vsel %vm3182_vm4, %v420_v4, %v424_v55  ;;  %v530_v18 = vunpack.c.l.b16 %v415_v10  ;;  %v466_v21 = vrot.slane %v464_v5, 4  ;;  %v472_v22 = vrot.slane %v470_v6, 5 }
  0x2f   : > { %2609 = vmatmul.msk.bf16.vlgmr.msra.gmra.mxu0 %vm548_vm3, %v540_v9  ;;  %v531_v24 = vunpack.c.l.b16 %v425_v17  ;;  %v458_v27 = vrot.slane %v457_v13, 4  ;;  %v501_v28 = vrot.slane %v499_v7, 4  ;;  %v502_v29 = vshll.u32 %v316_v58, 16  ;;  %v2805_v7 = vld [vmem:[%s3930_s1 + $0x18] sm:$0xf] }
  0x30   : > { %v467_v31 = vor.u32 %v466_v21, %v462_v14  ;;  %v508_v32 = vshll.u32 %v3246_v15, 16  ;;  %v512_v33 = vshrl.u32 %v3246_v15, 16  ;;  %v518_v34 = vshll.u32 %v3249_v16, 16  ;;  %v2731_v9 = vld [vmem:[%s3154_s15 + $0xc] sm:$0xf] }
  0x31   : > { %v543_v37 = vpack.c.b16 %v531_v24, %v530_v18  ;;  %v463_v38 = vsel %vm3182_vm4, %v458_v27, %v462_v14  ;;  %v504_v39 = vrot.slane %v502_v29, 5  ;;  %v355_v41 = vshrl.u32 %v304_v23, 16  ;;  %v3285_v27 = vld [vmem:[%s3154_s15 + $0x10] sm:$0xf] }
  0x32   : > { %v468_v42 = vrot.slane %v467_v31, 4  ;;  %v534_v43 = vunpack.c.l.b16 %v463_v38  ;;  %v510_v44 = vrot.slane %v508_v32, 5  ;;  %v514_v45 = vrot.slane %v512_v33, 4 }
  0x33   : > { %2612 = vmatmul.msk.bf16.gmra.mxu1 %vm548_vm3, %v543_v37  ;;  %v505_v48 = vor.u32 %v504_v39, %v501_v28  ;;  %v520_v49 = vrot.slane %v518_v34, 5  ;;  %v357_v50 = vrot.slane %v355_v41, 4  ;;  %v358_v52 = vshll.u32 %v304_v23, 16  ;;  %v3295_v37 = vld [vmem:[%s3154_s15 + $0x14] sm:$0x1] }
  0x34   : > { %v473_v53 = vsel %vm3182_vm4, %v468_v42, %v472_v22  ;;  %v515_v54 = vor.u32 %v514_v45, %v510_v44  ;;  %v364_v55 = vshll.u32 %v3261_v40, 16  ;;  %v368_v57 = vshrl.u32 %v3261_v40, 16  ;;  %v2870_v41 = vld [vmem:[%s3930_s1 + $0x1c] sm:$0xf]  ;;  %v2780_v45 = vld [vmem:[%s3930_s1 + $0x14] sm:$0xf] }
  0x35   : > { %v535_v58 = vunpack.c.l.b16 %v473_v53  ;;  %v506_v59 = vrot.slane %v505_v48, 4  ;;  %v360_v60 = vrot.slane %v358_v52, 5  ;;  %v374_v61 = vshll.u32 %v3264_v47, 16  ;;  %v2895_v53 = vld [vmem:[%s3930_s1 + $0x20] sm:$0xf] }
  0x36   : > { %v516_v62 = vrot.slane %v515_v54, 4  ;;  %v366_v63 = vrot.slane %v364_v55, 5  ;;  %v370_v0 = vrot.slane %v368_v57, 4  ;;  %v2657_v21 = vrot.slane %v742_v1, 9  ;;  %v2906_v55 = vld [vmem:[%s3154_s15] sm:$0xff] }
  0x37   : > { %v545_v3 = vpack.c.b16 %v535_v58, %v534_v43  ;;  %v511_v4 = vsel %vm3182_vm4, %v506_v59, %v510_v44  ;;  %v361_v5 = vor.u32 %v360_v60, %v357_v50  ;;  %v376_v6 = vrot.slane %v374_v61, 5 }
  0x38   : > { %v521_v10 = vsel %vm3182_vm4, %v516_v62, %v520_v49  ;;  %v538_v13 = vunpack.c.l.b16 %v511_v4  ;;  %v371_v14 = vor.u32 %v370_v0, %v366_v63  ;;  %v771_v22 = vrot.slane %v3200_v2, 5  ;;  %v3326_v4 = vld [vmem:[%s3154_s15 + $0x1c] sm:$0xf] }
  0x39   : > { %2614 = vmatmul.msk.bf16.gmra.mxu2 %vm548_vm3, %v545_v3  ;;  %v539_v17 = vunpack.c.l.b16 %v521_v10  ;;  %v362_v18 = vrot.slane %v361_v5, 4  ;;  %v1718_v24 = vsel %vm573_vm0, %v2805_v7, 0  ;;  %v1119_v28 = vshrl.u32 %v2731_v9, 16  ;;  %v2734_v3 = vld [vmem:[%s3154_s15 + $0x18] sm:$0xf] }
  0x3a   : > { %v372_v23 = vrot.slane %v371_v14, 4  ;;  %v1122_v29 = vshll.u32 %v2731_v9, 16  ;;  %v773_v34 = vrot.slane %v771_v22, 4  ;;  %1727 = vmatpush.bf16.msra.mxu2 %v1718_v24  ;;  %v1128_v44 = vshll.u32 %v3285_v27, 16  ;;  %v744_v5 = vld [vmem:[%s3154_s15 + $0x18] sm:$0xe] }
  0x3b   : > { %v547_v31 = vpack.c.b16 %v539_v17, %v538_v13  ;;  %v367_v32 = vsel %vm3182_vm4, %v362_v18, %v366_v63  ;;  %v1121_v39 = vrot.slane %v1119_v28, 4  ;;  %v772_v48 = vsel %vm3290_vm7, %v2657_v21, %v771_v22  ;;  %v743_v7 = vld [vmem:[%s3154_s15 + $0xc] sm:$0xe] }
  0x3c   : > { %v377_v2 = vsel %vm3182_vm4, %v372_v23, %v376_v6  ;;  %v526_v38 = vunpack.c.l.b16 %v367_v32  ;;  %v1124_v43 = vrot.slane %v1122_v29, 5  ;;  %v775_v49 = vsel %vm3290_vm7, %v773_v34, %v774_v25  ;;  %v2914_v34 = vld [vmem:[%s3154_s15 + $0xc] sm:$0xff] }
  0x3d   : > { %2616 = vmatmul.msk.bf16.gmra.mxu3 %vm548_vm3, %v547_v31  ;;  %v527_v42 = vunpack.c.l.b16 %v377_v2  ;;  %v1132_v50 = vshrl.u32 %v3285_v27, 16  ;;  %v1138_v52 = vshll.u32 %v3295_v37, 16  ;;  %v1130_v58 = vrot.slane %v1128_v44, 5 }
  0x3e   : > { %v1125_v57 = vor.u32 %v1124_v43, %v1121_v39  ;;  %v2052_v59 = vsel %vm573_vm0, %v2870_v41, 0  ;;  %v1567_v25 = vsel %vm573_vm0, %v2780_v45, 0  ;;  %v827_v60 = vunpack.c.l.b16 %v772_v48 }
  0x3f   : > { %v541_v54 = vpack.c.b16 %v527_v42, %v526_v38  ;;  %v1134_v8 = vrot.slane %v1132_v50, 4  ;;  %2061 = vmatpush.bf16.msra.mxu3 %v2052_v59  ;;  %v828_v61 = vunpack.c.l.b16 %v775_v49  ;;  %1576 = vmatpush.bf16.msra.mxu1 %v1567_v25  ;;  %v2258_v63 = vsel %vm573_vm0, %v2895_v53, 0 }
  0x40   : > { %v1126_v62 = vrot.slane %v1125_v57, 4  ;;  %v1140_v1 = vrot.slane %v1138_v52, 5  ;;  %2267 = vmatpush.bf16.msra.mxu0 %v2258_v63  ;;  %v778_v9 = vrot.slane %v3261_v40, 5  ;;  %v1143_v14 = vshrl.u32 %v2734_v3, 16  ;;  %v745_v63 = vld [vmem:[%s3154_s15 + $0x24] sm:$0xe] }
  0x41   : > { %2610 = vmatmul.msk.bf16.gmra.mxu0 %vm548_vm3, %v541_v54  ;;  %v1135_v0 = vor.u32 %v1134_v8, %v1130_v58  ;;  %v843_v10 = vpack.c.b16 %v828_v61, %v827_v60  ;;  %v1146_v17 = vshll.u32 %v2734_v3, 16  ;;  %v1152_v21 = vshll.u32 %v3326_v4, 16  ;;  %v2737_v61 = vld [vmem:[%s3154_s15 + $0x24] sm:$0xf] }
  0x42   : > { %v1131_v13 = vsel %vm3182_vm4, %v1126_v62, %v1130_v58  ;;  %v1156_v22 = vshrl.u32 %v3326_v4, 16  ;;  %v2659_v23 = vrot.slane %v744_v5, 9  ;;  %v2658_v24 = vrot.slane %v743_v7, 9  ;;  %v3360_v62 = vld [vmem:[%s3154_s15 + $0x28] sm:$0xf] }
  0x43   : > { %2649 = vmatmul.msk.bf16.vlgmr.msrb.gmra.mxu1 %vm548_vm3, %v2906_v55  ;;  %v1136_v6 = vrot.slane %v1135_v0, 4  ;;  %v785_v28 = vrot.slane %v3158_v11, 5  ;;  %v1312_v40 = vunpack.c.l.b16 %v1131_v13  ;;  %v780_v29 = vrot.slane %v778_v9, 4  ;;  %v3345_v11 = vld [vmem:[%s3154_s15 + $0x20] sm:$0x1]  ;;  %v2907_v55 = vld [vmem:[%s3154_s15 + $0xc] sm:$0xff] }
  0x44   : > { %v781_v31 = vrot.slane %v3264_v47, 5  ;;  %v788_v32 = vrot.slane %v3161_v12, 5  ;;  %v1145_v38 = vrot.slane %v1143_v14, 4  ;;  %v1148_v39 = vrot.slane %v1146_v17, 5 }
  0x45   : > { %v1141_v18 = vsel %vm3182_vm4, %v1136_v6, %v1140_v1  ;;  %v786_v41 = vsel %vm3290_vm7, %v2659_v23, %v785_v28  ;;  %v1154_v42 = vrot.slane %v1152_v21, 5  ;;  %v1158_v43 = vrot.slane %v1156_v22, 4  ;;  %v2915_v22 = vld [vmem:[%s3154_s15 + $0x18] sm:$0xff] }
  0x46   : > { %v1313_v2 = vunpack.c.l.b16 %v1141_v18  ;;  %v787_v44 = vrot.slane %v785_v28, 4  ;;  %v831_v45 = vunpack.c.l.b16 %v786_v41  ;;  %v779_v47 = vsel %vm3290_vm7, %v2658_v24, %v778_v9 }
  0x47   : > { %v782_v49 = vsel %vm3290_vm7, %v780_v29, %v781_v31  ;;  %v1149_v50 = vor.u32 %v1148_v39, %v1145_v38  ;;  %v1159_v53 = vor.u32 %v1158_v43, %v1154_v42  ;;  %v1162_v54 = vshll.u32 %v3345_v11, 16  ;;  %v2740_v43 = vld [vmem:[%s3154_s15 + $0x30] sm:$0xf] }
  0x48   : > { %v789_v12 = vsel %vm3290_vm7, %v787_v44, %v788_v32  ;;  %v1328_v48 = vpack.c.b16 %v1313_v2, %v1312_v40  ;;  %v829_v58 = vunpack.c.l.b16 %v779_v47  ;;  %v830_v59 = vunpack.c.l.b16 %v782_v49  ;;  %v3386_v44 = vld [vmem:[%s3154_s15 + $0x34] sm:$0xf] }
  0x49   : > { %2666 = vmatmul.msk.bf16.vlgmr.msrb.gmra.mxu2 %vm548_vm3, %v843_v10  ;;  %v832_v52 = vunpack.c.l.b16 %v789_v12  ;;  %v1150_v8 = vrot.slane %v1149_v50, 4  ;;  %v1160_v25 = vrot.slane %v1159_v53, 4  ;;  %v1164_v60 = vrot.slane %v1162_v54, 5 }
  0x4a   : > { %v792_v0 = vrot.slane %v3216_v26, 5  ;;  %v795_v1 = vrot.slane %v3221_v30, 5  ;;  %v844_v3 = vpack.c.b16 %v830_v59, %v829_v58  ;;  %v2660_v5 = vrot.slane %v745_v63, 9  ;;  %v3398_v63 = vld [vmem:[%s3154_s15 + $0x38] sm:$0x1] }
  0x4b   : > { %v845_v57 = vpack.c.b16 %v832_v52, %v831_v45  ;;  %v1155_v6 = vsel %vm3182_vm4, %v1150_v8, %v1154_v42  ;;  %v1167_v7 = vshrl.u32 %v2737_v61, 16  ;;  %v1170_v9 = vshll.u32 %v2737_v61, 16  ;;  %v2908_v42 = vld [vmem:[%s3154_s15 + $0x18] sm:$0xff] }
  0x4c   : > { %v794_v10 = vrot.slane %v792_v0, 4  ;;  %v1165_v13 = vsel %vm3182_vm4, %v1160_v25, %v1164_v60  ;;  %v1176_v14 = vshll.u32 %v3360_v62, 16  ;;  %v1180_v17 = vshrl.u32 %v3360_v62, 16  ;;  %v2916_v25 = vld [vmem:[%s3154_s15 + $0x24] sm:$0xff] }
  0x4d   : > { %2723 = vmatmul.msk.bf16.vlgmr.msrb.gmra.mxu3 %vm548_vm3, %v2914_v34  ;;  %v793_v26 = vsel %vm3290_vm7, %v2660_v5, %v792_v0  ;;  %v1314_v23 = vunpack.c.l.b16 %v1155_v6  ;;  %v1315_v24 = vunpack.c.l.b16 %v1165_v13  ;;  %v1169_v28 = vrot.slane %v1167_v7, 4  ;;  %v3378_v34 = vld [vmem:[%s3154_s15 + $0x2c] sm:$0x1]  ;;  %v2909_v6 = vld [vmem:[%s3154_s15 + $0x24] sm:$0xff]  ;;  %v3406_v13 = vld [vmem:[%s3154_s15 + $0x40] sm:$0xf] }
  0x4e   : > { %v796_v30 = vsel %vm3290_vm7, %v794_v10, %v795_v1  ;;  %v833_v18 = vunpack.c.l.b16 %v793_v26  ;;  %v1172_v40 = vrot.slane %v1170_v9, 5  ;;  %v1178_v29 = vrot.slane %v1176_v14, 5  ;;  %v746_v26 = vld [vmem:[%s3154_s15 + $0x30] sm:$0xe] }
  0x4f   : > { %v834_v21 = vunpack.c.l.b16 %v796_v30  ;;  %v1182_v31 = vrot.slane %v1180_v17, 4  ;;  %v1329_v2 = vpack.c.b16 %v1315_v24, %v1314_v23  ;;  %v1186_v41 = vshll.u32 %v3378_v34, 16 }
  0x50   : > { %v1173_v38 = vor.u32 %v1172_v40, %v1169_v28  ;;  %v1194_v49 = vshll.u32 %v2740_v43, 16  ;;  %v1200_v50 = vshll.u32 %v3386_v44, 16  ;;  %v1204_v52 = vshrl.u32 %v3386_v44, 16 }
  0x51   : > { %2756 = vmatmul.msk.bf16.vlgmr.msrb.gmra.mxu0 %vm548_vm3, %v1328_v48  ;;  %v846_v32 = vpack.c.b16 %v834_v21, %v833_v18  ;;  %v1183_v39 = vor.u32 %v1182_v31, %v1178_v29  ;;  %v1188_v12 = vrot.slane %v1186_v41, 5  ;;  %v1191_v48 = vshrl.u32 %v2740_v43, 16  ;;  %v3421_v43 = vld [vmem:[%s3154_s15 + $0x44] sm:$0x1] }
  0x52   : > { %v1174_v45 = vrot.slane %v1173_v38, 4  ;;  %v1196_v58 = vrot.slane %v1194_v49, 5  ;;  %v1202_v59 = vrot.slane %v1200_v50, 5  ;;  %v1206_v8 = vrot.slane %v1204_v52, 4  ;;  %v2910_v49 = vld [vmem:[%s3154_s15 + $0x30] sm:$0xff] }
  0x53   : > { %2650 = vmatmul.msk.bf16.gmra.mxu1 %vm548_vm3, %v2907_v55  ;;  %v1184_v47 = vrot.slane %v1183_v39, 4  ;;  %v1193_v55 = vrot.slane %v1191_v48, 4  ;;  %v1224_v21 = vshll.u32 %v3406_v13, 16  ;;  %v799_v23 = vrot.slane %v3168_v19, 5 }
  0x54   : > { %v1179_v53 = vsel %vm3182_vm4, %v1174_v45, %v1178_v29  ;;  %v1207_v1 = vor.u32 %v1206_v8, %v1202_v59  ;;  %v2661_v40 = vrot.slane %v746_v26, 9  ;;  %v2917_v29 = vld [vmem:[%s3154_s15 + $0x30] sm:$0xff] }
  0x55   : > { %v1189_v54 = vsel %vm3182_vm4, %v1184_v47, %v1188_v12  ;;  %v1316_v60 = vunpack.c.l.b16 %v1179_v53  ;;  %v1197_v0 = vor.u32 %v1196_v58, %v1193_v55  ;;  %v1226_v38 = vrot.slane %v1224_v21, 5  ;;  %v2746_v55 = vld [vmem:[%s3154_s15 + $0x48] sm:$0xf]  ;;  %v3434_v58 = vld [vmem:[%s3154_s15 + $0x4c] sm:$0xf] }
  0x56   : > { %v1317_v61 = vunpack.c.l.b16 %v1189_v54  ;;  %v1208_v9 = vrot.slane %v1207_v1, 4  ;;  %v801_v41 = vrot.slane %v799_v23, 4  ;;  %v800_v19 = vsel %vm3290_vm7, %v2661_v40, %v799_v23  ;;  %v2911_v40 = vld [vmem:[%s3154_s15 + $0x3c] sm:$0xff] }
  0x57   : > { %v1198_v7 = vrot.slane %v1197_v0, 4  ;;  %v1234_v12 = vshll.u32 %v3421_v43, 16  ;;  %v1239_v0 = vshrl.u32 %v2746_v55, 16  ;;  %v1242_v1 = vshll.u32 %v2746_v55, 16 }
  0x58   : > { %v1330_v5 = vpack.c.b16 %v1317_v61, %v1316_v60  ;;  %v806_v60 = vrot.slane %v3229_v51, 5  ;;  %v747_v61 = vld [vmem:[%s3154_s15 + $0x3c] sm:$0xe] }
  0x59   : > { %2667 = vmatmul.msk.bf16.gmra.mxu2 %vm548_vm3, %v844_v3  ;;  %v1210_v3 = vshll.u32 %v3398_v63, 16  ;;  %v1203_v14 = vsel %vm3182_vm4, %v1198_v7, %v1202_v59  ;;  %v1236_v54 = vrot.slane %v1234_v12, 5  ;;  %v2918_v7 = vld [vmem:[%s3154_s15 + $0x3c] sm:$0xff]  ;;  %v1244_v51 = vrot.slane %v1242_v1, 5 }
  0x5a   : > { %v1318_v24 = vunpack.c.l.b16 %v1203_v14  ;;  %v809_v14 = vrot.slane %v3235_v56, 5  ;;  %v3475_v1 = vld [vmem:[%s3154_s15 + $0x5c] sm:$0x1] }
  0x5b   : > { %v1212_v10 = vrot.slane %v1210_v3, 5  ;;  %v1248_v3 = vshll.u32 %v3434_v58, 16 }
  0x5d   : > { %2724 = vmatmul.msk.bf16.gmra.mxu3 %vm548_vm3, %v2915_v22  ;;  %v1213_v17 = vsel %vm3182_vm4, %v1208_v9, %v1212_v10  ;;  %v1228_v22 = vshrl.u32 %v3406_v13, 16  ;;  %v2662_v10 = vrot.slane %v747_v61, 9  ;;  %v1250_v26 = vrot.slane %v1248_v3, 5 }
  0x5e   : > { %v1319_v28 = vunpack.c.l.b16 %v1213_v17  ;;  %v1241_v17 = vrot.slane %v1239_v0, 4  ;;  %v816_v61 = vrot.slane %v3187_v46, 5  ;;  %v1282_v46 = vshll.u32 %v3475_v1, 16 }
  0x5f   : > { %v1230_v39 = vrot.slane %v1228_v22, 4  ;;  %v807_v22 = vsel %vm3290_vm7, %v2662_v10, %v806_v60  ;;  %v2912_v10 = vld [vmem:[%s3154_s15 + $0x48] sm:$0xff] }
  0x60   : > { %v1331_v45 = vpack.c.b16 %v1319_v28, %v1318_v24  ;;  %v1245_v24 = vor.u32 %v1244_v51, %v1241_v17 }
  0x61   : > { %2757 = vmatmul.msk.bf16.gmra.mxu0 %vm548_vm3, %v1329_v2  ;;  %v1231_v47 = vor.u32 %v1230_v39, %v1226_v38 }
  0x63   : > { %2651 = vmatmul.msk.bf16.gmra.mxu1 %vm548_vm3, %v2908_v42  ;;  %v802_v42 = vrot.slane %v3171_v20, 5  ;;  %v835_v20 = vunpack.c.l.b16 %v800_v19  ;;  %v1232_v53 = vrot.slane %v1231_v47, 4 }
  0x65   : > { %v803_v48 = vsel %vm3290_vm7, %v801_v41, %v802_v42  ;;  %v3460_v42 = vld [vmem:[%s3154_s15 + $0x58] sm:$0xf] }
  0x66   : > { %v836_v50 = vunpack.c.l.b16 %v803_v48  ;;  %v1272_v47 = vshll.u32 %v3460_v42, 16 }
  0x68   : > { %v847_v59 = vpack.c.b16 %v836_v50, %v835_v20  ;;  %v1276_v20 = vshrl.u32 %v3460_v42, 16  ;;  %v748_v50 = vld [vmem:[%s3154_s15 + $0x48] sm:$0xe] }
  0x69   : > { %2668 = vmatmul.msk.bf16.gmra.mxu2 %vm548_vm3, %v845_v57  ;;  %v2743_v57 = vld [vmem:[%s3154_s15 + $0x3c] sm:$0xf] }
  0x6a   : > { %v1215_v30 = vshrl.u32 %v2743_v57, 16  ;;  %v1218_v18 = vshll.u32 %v2743_v57, 16  ;;  %v808_v57 = vrot.slane %v806_v60, 4  ;;  %v1278_v0 = vrot.slane %v1276_v20, 4 }
  0x6c   : > { %v1217_v31 = vrot.slane %v1215_v30, 4  ;;  %v1220_v2 = vrot.slane %v1218_v18, 5  ;;  %v3448_v18 = vld [vmem:[%s3154_s15 + $0x50] sm:$0x1]  ;;  %v810_v23 = vsel %vm3290_vm7, %v808_v57, %v809_v14 }
  0x6d   : > { %2725 = vmatmul.msk.bf16.gmra.mxu3 %vm548_vm3, %v2916_v25  ;;  %v1237_v25 = vsel %vm3182_vm4, %v1232_v53, %v1236_v54  ;;  %v1258_v56 = vshll.u32 %v3448_v18, 16  ;;  %v2919_v54 = vld [vmem:[%s3154_s15 + $0x48] sm:$0xff] }
  0x6e   : > { %v1321_v9 = vunpack.c.l.b16 %v1237_v25  ;;  %v2663_v25 = vrot.slane %v748_v50, 9  ;;  %v3508_v50 = vld [vmem:[%s3154_s15 + $0x68] sm:$0x1] }
  0x6f   : > { %v1260_v41 = vrot.slane %v1258_v56, 5 }
  0x71   : > { %2758 = vmatmul.msk.bf16.gmra.mxu0 %vm548_vm3, %v1330_v5  ;;  %v1252_v5 = vshrl.u32 %v3434_v58, 16 }
  0x73   : > { %2652 = vmatmul.msk.bf16.gmra.mxu1 %vm548_vm3, %v2909_v6  ;;  %v1254_v30 = vrot.slane %v1252_v5, 4 }
  0x75   : > { %v1255_v28 = vor.u32 %v1254_v30, %v1250_v26  ;;  %v2752_v30 = vld [vmem:[%s3154_s15 + $0x60] sm:$0xf] }
  0x77   : > { %v1256_v39 = vrot.slane %v1255_v28, 4  ;;  %v1290_v28 = vshll.u32 %v2752_v30, 16 }
  0x79   : > { %2669 = vmatmul.msk.bf16.gmra.mxu2 %vm548_vm3, %v846_v32  ;;  %v1221_v32 = vor.u32 %v1220_v2, %v1217_v31  ;;  %v838_v31 = vunpack.c.l.b16 %v810_v23  ;;  %v2749_v2 = vld [vmem:[%s3154_s15 + $0x54] sm:$0xf]  ;;  %v1261_v48 = vsel %vm3182_vm4, %v1256_v39, %v1260_v41 }
  0x7a   : > { %v1266_v19 = vshll.u32 %v2749_v2, 16 }
  0x7b   : > { %v1222_v52 = vrot.slane %v1221_v32, 4 }
  0x7c   : > { %v1268_v53 = vrot.slane %v1266_v19, 5 }
  0x7d   : > { %2726 = vmatmul.msk.bf16.gmra.mxu3 %vm548_vm3, %v2917_v29  ;;  %v1227_v8 = vsel %vm3182_vm4, %v1222_v52, %v1226_v38  ;;  %v837_v29 = vunpack.c.l.b16 %v807_v22  ;;  %v1246_v38 = vrot.slane %v1245_v24, 4  ;;  %v1287_v24 = vshrl.u32 %v2752_v30, 16 }
  0x7e   : > { %v1320_v6 = vunpack.c.l.b16 %v1227_v8  ;;  %v1274_v8 = vrot.slane %v1272_v47, 5  ;;  %v1292_v47 = vrot.slane %v1290_v28, 5 }
  0x7f   : > { %v848_v32 = vpack.c.b16 %v838_v31, %v837_v29  ;;  %v1251_v12 = vsel %vm3182_vm4, %v1246_v38, %v1250_v26  ;;  %v1284_v26 = vrot.slane %v1282_v46, 5  ;;  %v820_v31 = vrot.slane %v3246_v15, 5  ;;  %v749_v38 = vld [vmem:[%s3154_s15 + $0x54] sm:$0xe] }
  0x80   : > { %v1332_v21 = vpack.c.b16 %v1321_v9, %v1320_v6  ;;  %v1322_v55 = vunpack.c.l.b16 %v1251_v12  ;;  %v1279_v9 = vor.u32 %v1278_v0, %v1274_v8  ;;  %v823_v15 = vrot.slane %v3249_v16, 5  ;;  %v2913_v0 = vld [vmem:[%s3154_s15 + $0x54] sm:$0xff] }
  0x81   : > { %2759 = vmatmul.msk.bf16.gmra.mxu0 %vm548_vm3, %v1331_v45  ;;  %v1263_v45 = vshrl.u32 %v2749_v2, 16 }
  0x82   : > { %v1280_v51 = vrot.slane %v1279_v9, 4 }
  0x83   : > { %2653 = vmatmul.msk.bf16.gmra.mxu1 %vm548_vm3, %v2910_v49  ;;  %v813_v49 = vrot.slane %v3178_v35, 5  ;;  %v1265_v52 = vrot.slane %v1263_v45, 4  ;;  %v2920_v45 = vld [vmem:[%s3154_s15 + $0x54] sm:$0xff] }
  0x85   : > { %v815_v60 = vrot.slane %v813_v49, 4  ;;  %v1269_v35 = vor.u32 %v1268_v53, %v1265_v52  ;;  %v814_v6 = vsel %vm3290_vm7, %v2663_v25, %v813_v49  ;;  %v822_v49 = vrot.slane %v820_v31, 4 }
  0x86   : > { %v839_v14 = vunpack.c.l.b16 %v814_v6 }
  0x87   : > { %v1270_v57 = vrot.slane %v1269_v35, 4  ;;  %v824_v25 = vsel %vm3290_vm7, %v822_v49, %v823_v15  ;;  %v2921_v49 = vld [vmem:[%s3154_s15 + $0x60] sm:$0xff] }
  0x88   : > { %v842_v46 = vunpack.c.l.b16 %v824_v25 }
  0x89   : > { %2670 = vmatmul.msk.bf16.gmra.mxu2 %vm548_vm3, %v847_v59  ;;  %v1323_v59 = vunpack.c.l.b16 %v1261_v48  ;;  %v1275_v22 = vsel %vm3182_vm4, %v1270_v57, %v1274_v8  ;;  %v2664_v48 = vrot.slane %v749_v38, 9 }
  0x8a   : > { %v1324_v39 = vunpack.c.l.b16 %v1275_v22  ;;  %v1465_v22 = vrot.slane %v3295_v37, 5 }
  0x8b   : > { %v1333_v3 = vpack.c.b16 %v1323_v59, %v1322_v55  ;;  %v2846_v59 = vld [vmem:[%s3154_s15 + $0x18] sm:$0xf]  ;;  %v821_v8 = vsel %vm3290_vm7, %v2664_v48, %v820_v31 }
  0x8c   : > { %v1810_v6 = vshrl.u32 %v2846_v59, 16  ;;  %v841_v9 = vunpack.c.l.b16 %v821_v8 }
  0x8d   : > { %2727 = vmatmul.msk.bf16.gmra.mxu3 %vm548_vm3, %v2918_v7  ;;  %v817_v7 = vsel %vm3290_vm7, %v815_v60, %v816_v61  ;;  %v1306_v60 = vshll.u32 %v3508_v50, 16  ;;  %v3522_v61 = vld [vmem:[%s3154_s15 + $0x1c] sm:$0xf] }
  0x8e   : > { %v840_v17 = vunpack.c.l.b16 %v817_v7  ;;  %v1813_v7 = vshll.u32 %v2846_v59, 16  ;;  %v1819_v57 = vshll.u32 %v3522_v61, 16  ;;  %v1812_v28 = vrot.slane %v1810_v6, 4 }
  0x8f   : > { %v1308_v30 = vrot.slane %v1306_v60, 5  ;;  %v2153_v6 = vrot.slane %v3522_v61, 5 }
  0x90   : > { %v849_v23 = vpack.c.b16 %v840_v17, %v839_v14  ;;  %v1823_v14 = vshrl.u32 %v3522_v61, 16  ;;  %v1821_v31 = vrot.slane %v1819_v57, 5 }
  0x91   : > { %2760 = vmatmul.msk.bf16.gmra.mxu0 %vm548_vm3, %v1332_v21  ;;  %v3489_v21 = vld [vmem:[%s3154_s15 + $0x64] sm:$0xf] }
  0x92   : > { %v1296_v56 = vshll.u32 %v3489_v21, 16  ;;  %v1300_v2 = vshrl.u32 %v3489_v21, 16 }
  0x93   : > { %2654 = vmatmul.msk.bf16.gmra.mxu1 %vm548_vm3, %v2911_v40  ;;  %v1285_v40 = vsel %vm3182_vm4, %v1280_v51, %v1284_v26 }
  0x94   : > { %v1325_v19 = vunpack.c.l.b16 %v1285_v40  ;;  %v1298_v12 = vrot.slane %v1296_v56, 5  ;;  %v1302_v20 = vrot.slane %v1300_v2, 4  ;;  %v1815_v56 = vrot.slane %v1813_v7, 5 }
  0x95   : > { %v850_v40 = vpack.c.b16 %v842_v46, %v841_v9  ;;  %v1825_v2 = vrot.slane %v1823_v14, 4  ;;  %v2849_v46 = vld [vmem:[%s3154_s15 + $0x24] sm:$0xf] }
  0x96   : > { %v1303_v16 = vor.u32 %v1302_v20, %v1298_v12  ;;  %v1816_v48 = vor.u32 %v1815_v56, %v1812_v28  ;;  %v2765_v28 = vld [vmem:[%s3154_s15 + $0x18] sm:$0xe]  ;;  %v1834_v56 = vshrl.u32 %v2849_v46, 16 }
  0x97   : > { %v1826_v20 = vor.u32 %v1825_v2, %v1821_v31 }
  0x98   : > { %v1304_v26 = vrot.slane %v1303_v16, 4  ;;  %v1817_v25 = vrot.slane %v1816_v48, 4 }
  0x99   : > { %2671 = vmatmul.msk.bf16.gmra.mxu2 %vm548_vm3, %v848_v32  ;;  %v1289_v32 = vrot.slane %v1287_v24, 4  ;;  %v1827_v60 = vrot.slane %v1826_v20, 4 }
  0x9a   : > { %v1309_v37 = vsel %vm3182_vm4, %v1304_v26, %v1308_v30  ;;  %v1469_v30 = vrot.slane %v3326_v4, 5 }
  0x9b   : > { %v1293_v55 = vor.u32 %v1292_v47, %v1289_v32 }
  0x9d   : > { %2728 = vmatmul.msk.bf16.gmra.mxu3 %vm548_vm3, %v2919_v54  ;;  %v1334_v54 = vpack.c.b16 %v1325_v19, %v1324_v39  ;;  %v1294_v51 = vrot.slane %v1293_v55, 4 }
  0x9e   : > { %v3478_v5 = vpop.f32.mrf.mxu1 }
  0x9f   : > { %v1299_v39 = vsel %vm3182_vm4, %v1294_v51, %v1298_v12  ;;  %v1327_v12 = vunpack.c.l.b16 %v1309_v37  ;;  %v1822_v51 = vsel %vm3182_vm4, %v1817_v25, %v1821_v31  ;;  %v1471_v37 = vrot.slane %v1469_v30, 4 }
  0xa0   : > { %v1326_v15 = vunpack.c.l.b16 %v1299_v39  ;;  %v2773_v39 = vrot.slane %v2765_v28, 9 }
  0xa1   : > { %2761 = vmatmul.msk.bf16.gmra.mxu0 %vm548_vm3, %v1333_v3  ;;  %v1462_v3 = vrot.slane %v3285_v27, 5 }
  0xa2   : > { %v1335_v16 = vpack.c.b16 %v1327_v12, %v1326_v15  ;;  %v1836_v12 = vrot.slane %v1834_v56, 4 }
  0xa3   : > { %2655 = vmatmul.msk.bf16.gmra.mxu1 %vm548_vm3, %v2912_v10  ;;  %v2764_v10 = vld [vmem:[%s3154_s15 + $0xc] sm:$0xe]  ;;  %v1464_v24 = vrot.slane %v1462_v3, 4 }
  0xa5   : > { %v1466_v47 = vsel %vm3290_vm7, %v1464_v24, %v1465_v22 }
  0xa6   : > { %v3497_v29 = vpop.f32.mrf.mxu1  ;;  %v1519_v59 = vunpack.c.l.b16 %v1466_v47  ;;  %v2003_v47 = vunpack.c.l.b16 %v1822_v51 }
  0xa8   : > { %v3502_v41 = vpop.f32.mrf.mxu2 }
  0xa9   : > { %2672 = vmatmul.msk.bf16.gmra.mxu2 %vm548_vm3, %v849_v23  ;;  %v2772_v23 = vrot.slane %v2764_v10, 9  ;;  %v3562_v10 = vld [vmem:[%s3154_s15 + $0x28] sm:$0xf] }
  0xaa   : > { %v1843_v2 = vshll.u32 %v3562_v10, 16  ;;  %v1847_v31 = vshrl.u32 %v3562_v10, 16 }
  0xab   : > { %v1463_v32 = vsel %vm3290_vm7, %v2772_v23, %v1462_v3  ;;  %v2879_v3 = vld [vmem:[%s3154_s15 + $0x18] sm:$0xe]  ;;  %v2155_v23 = vrot.slane %v2153_v6, 4 }
  0xac   : > { %v3510_v52 = vpop.f32.mrf.mxu0  ;;  %v3512_v53 = vpop.f32.mrf.mxu3  ;;  %v1518_v55 = vunpack.c.l.b16 %v1463_v32  ;;  %v2887_v26 = vrot.slane %v2879_v3, 9  ;;  %v2922_v32 = vld [vmem:[%s3154_s15 + $0x18] sm:$0xff] }
  0xad   : > { %2729 = vmatmul.msk.bf16.gmra.mxu3 %vm548_vm3, %v2920_v45  ;;  %v2848_v45 = vld [vmem:[%s3154_s15 + $0x20] sm:$0x1] }
  0xae   : > { %v1534_v9 = vpack.c.b16 %v1519_v59, %v1518_v55  ;;  %v2156_v24 = vrot.slane %v2848_v45, 5  ;;  %v1849_v55 = vrot.slane %v1847_v31, 4  ;;  %v3588_v59 = vld [vmem:[%s3154_s15 + $0x2c] sm:$0x1] }
  0xaf   : > { %v1853_v51 = vshll.u32 %v3588_v59, 16 }
  0xb0   : > { %v3525_v35 = vpop.f32.mrf.mxu1  ;;  %v3532_v17 = vpop.f32.mrf.mxu2 }
  0xb1   : > { %2762 = vmatmul.msk.bf16.gmra.mxu0 %vm548_vm3, %v1334_v54  ;;  %v1829_v54 = vshll.u32 %v2848_v45, 16  ;;  %v2154_v45 = vsel %vm3290_vm7, %v2887_v26, %v2153_v6 }
  0xb2   : > { %v2209_v3 = vunpack.c.l.b16 %v2154_v45 }
  0xb3   : > { %2656 = vmatmul.msk.bf16.gmra.mxu1 %vm548_vm3, %v2913_v0  ;;  %v1831_v0 = vrot.slane %v1829_v54, 5  ;;  %v1845_v54 = vrot.slane %v1843_v2, 5 }
  0xb4   : > { %v3536_v27 = vpop.f32.mrf.mxu0  ;;  %v3538_v38 = vpop.f32.mrf.mxu3 }
  0xb5   : > { %v1832_v22 = vsel %vm3182_vm4, %v1827_v60, %v1831_v0 }
  0xb6   : > { %v2004_v48 = vunpack.c.l.b16 %v1832_v22 }
  0xb8   : > { %v3545_v19 = vpop.f32.mrf.mxu1  ;;  %v2019_v0 = vpack.c.b16 %v2004_v48, %v2003_v47 }
  0xb9   : > { %2673 = vmatmul.msk.bf16.gmra.mxu2 %vm548_vm3, %v850_v40  ;;  %v1837_v40 = vshll.u32 %v2849_v46, 16 }
  0xbb   : > { %v1839_v20 = vrot.slane %v1837_v40, 5  ;;  %v3603_v40 = vld [vmem:[%s3154_s15 + $0x34] sm:$0xf] }
  0xbc   : > { %v3553_v8 = vpop.f32.mrf.mxu2 }
  0xbd   : > { %2730 = vmatmul.msk.bf16.gmra.mxu3 %vm548_vm3, %v2921_v49  ;;  %v2157_v49 = vsel %vm3290_vm7, %v2155_v23, %v2156_v24  ;;  %v1840_v46 = vor.u32 %v1839_v20, %v1836_v12  ;;  %v2880_v24 = vld [vmem:[%s3154_s15 + $0x24] sm:$0xe]  ;;  %v1476_v12 = vrot.slane %v3360_v62, 5  ;;  %v1867_v20 = vshll.u32 %v3603_v40, 16 }
  0xbe   : > { %v3558_v7 = vpop.f32.mrf.mxu0  ;;  %v2210_v6 = vunpack.c.l.b16 %v2157_v49 }
  0xbf   : > { %v1841_v31 = vrot.slane %v1840_v46, 4 }
  0xc0   : > { %v3564_v57 = vpop.f32.mrf.mxu3  ;;  %v702_v14 = vpop.f32.mrf.mxu1  ;;  %v2225_v28 = vpack.c.b16 %v2210_v6, %v2209_v3  ;;  %v2163_v3 = vrot.slane %v3588_v59, 5 }
  0xc1   : > { %2763 = vmatmul.msk.bf16.gmra.mxu0 %vm548_vm3, %v1335_v16  ;;  %v703_v61 = vadd.f32 %v702_v14, %v3510_v52  ;;  %v1472_v52 = vrot.slane %v3345_v11, 5  ;;  %v1470_v16 = vsel %vm3290_vm7, %v2773_v39, %v1469_v30  ;;  %v1850_v14 = vor.u32 %v1849_v55, %v1845_v54  ;;  %v2852_v30 = vld [vmem:[%s3154_s15 + $0x30] sm:$0xf] }
  0xc2   : > { %v1520_v26 = vunpack.c.l.b16 %v1470_v16  ;;  %v1858_v47 = vshrl.u32 %v2852_v30, 16  ;;  %v1861_v48 = vshll.u32 %v2852_v30, 16  ;;  %v1479_v55 = vrot.slane %v3378_v34, 5 }
  0xc3   : > { %2781 = vmatmul.msk.bf16.vlgmr.msra.gmra.mxu1 %vm548_vm3, %v1534_v9  ;;  %v1473_v60 = vsel %vm3290_vm7, %v1471_v37, %v1472_v52  ;;  %v1851_v39 = vrot.slane %v1850_v14, 4  ;;  %v2160_v37 = vrot.slane %v3562_v10, 5  ;;  %v2766_v10 = vld [vmem:[%s3154_s15 + $0x24] sm:$0xe] }
  0xc4   : > { %v3577_v4 = vpop.f32.mrf.mxu2  ;;  %v1521_v22 = vunpack.c.l.b16 %v1473_v60  ;;  %v1846_v60 = vsel %vm3182_vm4, %v1841_v31, %v1845_v54  ;;  %v1860_v6 = vrot.slane %v1858_v47, 4  ;;  %v1863_v46 = vrot.slane %v1861_v48, 5 }
  0xc5   : > { %v2162_v62 = vrot.slane %v2160_v37, 4  ;;  %v1869_v54 = vrot.slane %v1867_v20, 5  ;;  %v2005_v30 = vunpack.c.l.b16 %v1846_v60 }
  0xc6   : > { %v3585_v15 = vpop.f32.mrf.mxu0  ;;  %v1535_v52 = vpack.c.b16 %v1521_v22, %v1520_v26  ;;  %v1478_v26 = vrot.slane %v1476_v12, 4 }
  0xc7   : > { %v2164_v31 = vsel %vm3290_vm7, %v2162_v62, %v2163_v3  ;;  %v2881_v3 = vld [vmem:[%s3154_s15 + $0x30] sm:$0xe] }
  0xc8   : > { %v3590_v25 = vpop.f32.mrf.mxu3  ;;  %v704_v11 = vpop.f32.mrf.mxu1 }
  0xc9   : > { %2838 = vmatmul.msk.bf16.vlgmr.msra.gmra.mxu2 %vm548_vm3, %v2922_v32  ;;  %v705_v9 = vadd.f32 %v704_v11, %v3536_v27  ;;  %v1855_v27 = vrot.slane %v1853_v51, 5  ;;  %v2888_v32 = vrot.slane %v2880_v24, 9  ;;  %v2774_v51 = vrot.slane %v2766_v10, 9  ;;  %v2923_v24 = vld [vmem:[%s3154_s15 + $0x24] sm:$0xff] }
  0xcb   : > { %v2161_v34 = vsel %vm3290_vm7, %v2888_v32, %v2160_v37  ;;  %v1480_v32 = vsel %vm3290_vm7, %v1478_v26, %v1479_v55 }
  0xcc   : > { %v887_v23 = vpop.f32.mrf.mxu2 }
  0xcd   : > { %2871 = vmatmul.msk.bf16.vlgmr.msra.gmra.mxu3 %vm548_vm3, %v2019_v0  ;;  %v927_v56 = vadd.f32 %v887_v23, %v703_v61  ;;  %v1871_v61 = vshrl.u32 %v3603_v40, 16  ;;  %v1856_v0 = vsel %vm3182_vm4, %v1851_v39, %v1855_v27  ;;  %v2211_v39 = vunpack.c.l.b16 %v2161_v34 }
  0xce   : > { %v1372_v2 = vpop.f32.mrf.mxu0  ;;  %v1864_v27 = vor.u32 %v1863_v46, %v1860_v6  ;;  %v2167_v46 = vrot.slane %v3603_v40, 5 }
  0xcf   : > { %v1873_v22 = vrot.slane %v1871_v61, 4 }
  0xd0   : > { %v1038_v45 = vpop.f32.mrf.mxu3  ;;  %v707_v49 = vpop.f32.mrf.mxu1 }
  0xd1   : > { %2896 = vmatmul.msk.bf16.vlgmr.msra.gmra.mxu0 %vm548_vm3, %v2225_v28  ;;  %v1078_v11 = vadd.f32 %v1038_v45, %v927_v56  ;;  %v708_v16 = vadd.f32 %v707_v49, %v3558_v7  ;;  %v2006_v28 = vunpack.c.l.b16 %v1856_v0  ;;  %v3625_v56 = vld [vmem:[%s3154_s15 + $0x38] sm:$0x1]  ;;  %v2212_v49 = vunpack.c.l.b16 %v2164_v31 }
  0xd2   : > { %v1877_v47 = vshll.u32 %v3625_v56, 16 }
  0xd3   : > { %2782 = vmatmul.msk.bf16.gmra.mxu1 %vm548_vm3, %v1535_v52  ;;  %v3621_v7 = vadd.f32 %v1372_v2, %v1078_v11  ;;  %v1477_v52 = vsel %vm3290_vm7, %v2774_v51, %v1476_v12  ;;  %v2020_v45 = vpack.c.b16 %v2006_v28, %v2005_v30  ;;  %v1523_v11 = vunpack.c.l.b16 %v1480_v32  ;;  %v3643_v51 = vld [vmem:[%s3154_s15 + $0x40] sm:$0xf] }
  0xd4   : > { %v889_v14 = vpop.f32.mrf.mxu2  ;;  %v1522_v61 = vunpack.c.l.b16 %v1477_v52  ;;  %v1865_v12 = vrot.slane %v1864_v27, 4  ;;  %v1879_v0 = vrot.slane %v1877_v47, 5  ;;  %v2226_v55 = vpack.c.b16 %v2212_v49, %v2211_v39  ;;  %v2924_v49 = vld [vmem:[%s3154_s15 + $0x30] sm:$0xff] }
  0xd5   : > { %v928_v23 = vadd.f32 %v889_v14, %v705_v9  ;;  %v1874_v9 = vor.u32 %v1873_v22, %v1869_v54  ;;  %v2855_v14 = vld [vmem:[%s3154_s15 + $0x3c] sm:$0xf]  ;;  %v1483_v30 = vrot.slane %v3386_v44, 5  ;;  %v2169_v27 = vrot.slane %v2167_v46, 4 }
  0xd6   : > { %v1374_v59 = vpop.f32.mrf.mxu0  ;;  %v1882_v31 = vshrl.u32 %v2855_v14, 16  ;;  %v1885_v39 = vshll.u32 %v2855_v14, 16  ;;  %v1486_v52 = vrot.slane %v3398_v63, 5 }
  0xd7   : > { %v1875_v60 = vrot.slane %v1874_v9, 4 }
  0xd8   : > { %v1040_v37 = vpop.f32.mrf.mxu3  ;;  %v709_v2 = vpop.f32.mrf.mxu1 }
  0xd9   : > { %v1079_v48 = vadd.f32 %v1040_v37, %v928_v23  ;;  %2839 = vmatmul.msk.bf16.gmra.mxu2 %vm548_vm3, %v2923_v24  ;;  %v710_v20 = vadd.f32 %v709_v2, %v3585_v15  ;;  %v1536_v15 = vpack.c.b16 %v1523_v11, %v1522_v61  ;;  %v1870_v23 = vsel %vm3182_vm4, %v1865_v12, %v1869_v54 }
  0xda   : > { %v1880_v24 = vsel %vm3182_vm4, %v1875_v60, %v1879_v0  ;;  %v2170_v37 = vrot.slane %v3625_v56, 5  ;;  %v1891_v54 = vshll.u32 %v3643_v51, 16  ;;  %v1895_v2 = vshrl.u32 %v3643_v51, 16  ;;  %v2857_v0 = vld [vmem:[%s3154_s15 + $0x44] sm:$0x1] }
  0xdb   : > { %v3638_v34 = vadd.f32 %v1374_v59, %v1079_v48  ;;  %v2767_v59 = vld [vmem:[%s3154_s15 + $0x30] sm:$0xe]  ;;  %v2008_v9 = vunpack.c.l.b16 %v1880_v24  ;;  %v1485_v48 = vrot.slane %v1483_v30, 4  ;;  %v1884_v61 = vrot.slane %v1882_v31, 4  ;;  %v2882_v31 = vld [vmem:[%s3154_s15 + $0x3c] sm:$0xe] }
  0xdc   : > { %v892_v10 = vpop.f32.mrf.mxu2  ;;  %v2775_v47 = vrot.slane %v2767_v59, 9  ;;  %v1887_v11 = vrot.slane %v1885_v39, 5  ;;  %v2171_v63 = vsel %vm3290_vm7, %v2169_v27, %v2170_v37  ;;  %v1893_v12 = vrot.slane %v1891_v54, 5 }
  0xdd   : > { %2872 = vmatmul.msk.bf16.gmra.mxu3 %vm548_vm3, %v2020_v45  ;;  %v929_v62 = vadd.f32 %v892_v10, %v708_v16  ;;  %v2889_v16 = vrot.slane %v2881_v3, 9  ;;  %v1897_v60 = vrot.slane %v1895_v2, 4  ;;  %v1901_v24 = vshll.u32 %v2857_v0, 16  ;;  %v3677_v2 = vld [vmem:[%s3154_s15 + $0x4c] sm:$0xf] }
  0xde   : > { %v1377_v6 = vpop.f32.mrf.mxu0 }
  0xdf   : > { %v2168_v56 = vsel %vm3290_vm7, %v2889_v16, %v2167_v46  ;;  %v1487_v46 = vsel %vm3290_vm7, %v1485_v48, %v1486_v52  ;;  %v2174_v16 = vrot.slane %v3643_v51, 5  ;;  %v2177_v48 = vrot.slane %v2857_v0, 5 }
  0xe0   : > { %v1043_v26 = vpop.f32.mrf.mxu3  ;;  %v712_v22 = vpop.f32.mrf.mxu1  ;;  %v2213_v3 = vunpack.c.l.b16 %v2168_v56  ;;  %v1525_v59 = vunpack.c.l.b16 %v1487_v46 }
  0xe1   : > { %2897 = vmatmul.msk.bf16.gmra.mxu0 %vm548_vm3, %v2226_v55  ;;  %v1080_v28 = vadd.f32 %v1043_v26, %v929_v62  ;;  %v713_v40 = vadd.f32 %v712_v22, %v3478_v5  ;;  %v2007_v5 = vunpack.c.l.b16 %v1870_v23  ;;  %v1888_v22 = vor.u32 %v1887_v11, %v1884_v61 }
  0xe2   : > { %v1898_v23 = vor.u32 %v1897_v60, %v1893_v12  ;;  %v2176_v51 = vrot.slane %v2174_v16, 4  ;;  %v1490_v11 = vrot.slane %v3406_v13, 5 }
  0xe3   : > { %2783 = vmatmul.msk.bf16.gmra.mxu1 %vm548_vm3, %v1536_v15  ;;  %v3658_v44 = vadd.f32 %v1377_v6, %v1080_v28  ;;  %v2021_v62 = vpack.c.b16 %v2008_v9, %v2007_v5  ;;  %v2214_v15 = vunpack.c.l.b16 %v2171_v63  ;;  %v1889_v54 = vrot.slane %v1888_v22, 4 }
  0xe4   : > { %v894_v32 = vpop.f32.mrf.mxu2  ;;  %v1903_v5 = vrot.slane %v1901_v24, 5  ;;  %v2890_v9 = vrot.slane %v2882_v31, 9  ;;  %v1919_v63 = vshrl.u32 %v3677_v2, 16  ;;  %v2925_v24 = vld [vmem:[%s3154_s15 + $0x3c] sm:$0xff]  ;;  %v3703_v31 = vld [vmem:[%s3154_s15 + $0x50] sm:$0x1] }
  0xe5   : > { %v930_v45 = vadd.f32 %v894_v32, %v710_v20  ;;  %v1484_v20 = vsel %vm3290_vm7, %v2775_v47, %v1483_v30  ;;  %v2858_v30 = vld [vmem:[%s3154_s15 + $0x48] sm:$0xf]  ;;  %v2227_v27 = vpack.c.b16 %v2214_v15, %v2213_v3  ;;  %v1899_v32 = vrot.slane %v1898_v23, 4 }
  0xe6   : > { %v1379_v10 = vpop.f32.mrf.mxu0  ;;  %v1524_v28 = vunpack.c.l.b16 %v1484_v20  ;;  %v1894_v0 = vsel %vm3182_vm4, %v1889_v54, %v1893_v12  ;;  %v2175_v13 = vsel %vm3290_vm7, %v2890_v9, %v2174_v16  ;;  %v1492_v15 = vrot.slane %v1490_v11, 4 }
  0xe7   : > { %v1904_v3 = vsel %vm3182_vm4, %v1899_v32, %v1903_v5  ;;  %v1921_v22 = vrot.slane %v1919_v63, 4 }
  0xe8   : > { %v1045_v55 = vpop.f32.mrf.mxu3  ;;  %v714_v6 = vpop.f32.mrf.mxu1  ;;  %v1537_v47 = vpack.c.b16 %v1525_v59, %v1524_v28  ;;  %v2009_v28 = vunpack.c.l.b16 %v1894_v0  ;;  %v2010_v16 = vunpack.c.l.b16 %v1904_v3  ;;  %v2181_v0 = vrot.slane %v3677_v2, 5 }
  0xe9   : > { %v1081_v14 = vadd.f32 %v1045_v55, %v930_v45  ;;  %2840 = vmatmul.msk.bf16.gmra.mxu2 %vm548_vm3, %v2924_v49  ;;  %v715_v26 = vadd.f32 %v714_v6, %v3497_v29  ;;  %v1906_v45 = vshrl.u32 %v2858_v30, 16  ;;  %v1909_v49 = vshll.u32 %v2858_v30, 16  ;;  %v2768_v55 = vld [vmem:[%s3154_s15 + $0x3c] sm:$0xe] }
  0xea   : > { %v2178_v6 = vsel %vm3290_vm7, %v2176_v51, %v2177_v48  ;;  %v2022_v9 = vpack.c.b16 %v2010_v16, %v2009_v28  ;;  %v2183_v28 = vrot.slane %v2181_v0, 4  ;;  %v2184_v16 = vrot.slane %v3703_v31, 5 }
  0xeb   : > { %v3679_v52 = vadd.f32 %v1379_v10, %v1081_v14  ;;  %v1911_v20 = vrot.slane %v1909_v49, 5  ;;  %v2776_v14 = vrot.slane %v2768_v55, 9  ;;  %v2216_v30 = vunpack.c.l.b16 %v2178_v6  ;;  %v2861_v49 = vld [vmem:[%s3154_s15 + $0x54] sm:$0xf] }
  0xec   : > { %v897_v39 = vpop.f32.mrf.mxu2  ;;  %v1933_v6 = vshll.u32 %v2861_v49, 16 }
  0xed   : > { %2873 = vmatmul.msk.bf16.gmra.mxu3 %vm548_vm3, %v2021_v62  ;;  %v931_v37 = vadd.f32 %v897_v39, %v713_v40  ;;  %v1915_v40 = vshll.u32 %v3677_v2, 16  ;;  %v1493_v62 = vrot.slane %v3421_v43, 5  ;;  %v2215_v39 = vunpack.c.l.b16 %v2175_v13 }
  0xee   : > { %v1382_v29 = vpop.f32.mrf.mxu0  ;;  %v1491_v54 = vsel %vm3290_vm7, %v2776_v14, %v1490_v11  ;;  %v1930_v13 = vshrl.u32 %v2861_v49, 16  ;;  %v1497_v2 = vrot.slane %v3434_v58, 5  ;;  %v1500_v58 = vrot.slane %v3448_v18, 5 }
  0xef   : > { %v3699_v12 = vrot.slane %v1915_v40, 5  ;;  %v1526_v48 = vunpack.c.l.b16 %v1491_v54  ;;  %v2185_v49 = vsel %vm3290_vm7, %v2183_v28, %v2184_v16  ;;  %v2864_v28 = vld [vmem:[%s3154_s15 + $0x60] sm:$0xf] }
  0xf0   : > { %v1048_v56 = vpop.f32.mrf.mxu3  ;;  %v717_v61 = vpop.f32.mrf.mxu1 }
  0xf1   : > { %2898 = vmatmul.msk.bf16.gmra.mxu0 %vm548_vm3, %v2227_v27  ;;  %v1082_v10 = vadd.f32 %v1048_v56, %v931_v37  ;;  %v718_v60 = vadd.f32 %v717_v61, %v3525_v35  ;;  %v1908_v35 = vrot.slane %v1906_v45, 4  ;;  %v3715_v56 = vld [vmem:[%s3154_s15 + $0x58] sm:$0xf]  ;;  %v2228_v61 = vpack.c.b16 %v2216_v30, %v2215_v39 }
  0xf2   : > { %v1932_v39 = vrot.slane %v1930_v13, 4  ;;  %v1935_v30 = vrot.slane %v1933_v6, 5 }
  0xf3   : > { %2784 = vmatmul.msk.bf16.gmra.mxu1 %vm548_vm3, %v1537_v47  ;;  %v3697_v46 = vadd.f32 %v1382_v29, %v1082_v10  ;;  %v1494_v29 = vsel %vm3290_vm7, %v1492_v15, %v1493_v62  ;;  %v1912_v32 = vor.u32 %v1911_v20, %v1908_v35  ;;  %v1925_v47 = vshll.u32 %v3703_v31, 16  ;;  %v2883_v62 = vld [vmem:[%s3154_s15 + $0x48] sm:$0xe] }
  0xf4   : > { %v899_v43 = vpop.f32.mrf.mxu2  ;;  %v1527_v45 = vunpack.c.l.b16 %v1494_v29  ;;  %v1939_v35 = vshll.u32 %v3715_v56, 16  ;;  %v1943_v20 = vshrl.u32 %v3715_v56, 16 }
  0xf5   : > { %v932_v23 = vadd.f32 %v899_v43, %v715_v26  ;;  %v1922_v26 = vor.u32 %v1921_v22, %v3699_v12  ;;  %v1913_v40 = vrot.slane %v1912_v32, 4  ;;  %v1927_v55 = vrot.slane %v1925_v47, 5 }
  0xf6   : > { %v1384_v59 = vpop.f32.mrf.mxu0  ;;  %v1538_v43 = vpack.c.b16 %v1527_v45, %v1526_v48  ;;  %v2891_v22 = vrot.slane %v2883_v62, 9  ;;  %v1499_v32 = vrot.slane %v1497_v2, 4 }
  0xf7   : > { %v1923_v63 = vrot.slane %v1922_v26, 4  ;;  %v3738_v26 = vld [vmem:[%s3154_s15 + $0x5c] sm:$0x1] }
  0xf8   : > { %v1050_v27 = vpop.f32.mrf.mxu3  ;;  %v719_v37 = vpop.f32.mrf.mxu1  ;;  %v2182_v45 = vsel %vm3290_vm7, %v2891_v22, %v2181_v0  ;;  %v1949_v18 = vshll.u32 %v3738_v26, 16  ;;  %v2884_v22 = vld [vmem:[%s3154_s15 + $0x54] sm:$0xe] }
  0xf9   : > { %v1083_v5 = vadd.f32 %v1050_v27, %v932_v23  ;;  %2841 = vmatmul.msk.bf16.gmra.mxu2 %vm548_vm3, %v2925_v24  ;;  %v720_v51 = vadd.f32 %v719_v37, %v3545_v19  ;;  %v1928_v24 = vsel %vm3182_vm4, %v1923_v63, %v1927_v55  ;;  %v1941_v27 = vrot.slane %v1939_v35, 5 }
  0xfa   : > { %v1945_v37 = vrot.slane %v1943_v20, 4  ;;  %v2012_v31 = vunpack.c.l.b16 %v1928_v24  ;;  %v2217_v0 = vunpack.c.l.b16 %v2182_v45  ;;  %v1507_v45 = vrot.slane %v3475_v1, 5 }
  0xfb   : > { %v3720_v3 = vadd.f32 %v1384_v59, %v1083_v5  ;;  %v2769_v59 = vld [vmem:[%s3154_s15 + $0x48] sm:$0xe] }
  0xfc   : > { %v902_v11 = vpop.f32.mrf.mxu2  ;;  %v2777_v29 = vrot.slane %v2769_v59, 9 }
  0xfd   : > { %2874 = vmatmul.msk.bf16.gmra.mxu3 %vm548_vm3, %v2022_v9  ;;  %v933_v10 = vadd.f32 %v902_v11, %v718_v60  ;;  %v1918_v60 = vsel %vm3182_vm4, %v1913_v40, %v3699_v12  ;;  %v2926_v9 = vld [vmem:[%s3154_s15 + $0x48] sm:$0xff]  ;;  %v1946_v11 = vor.u32 %v1945_v37, %v1941_v27  ;;  %v2892_v37 = vrot.slane %v2884_v22, 9 }
  0xfe   : > { %v1387_v19 = vpop.f32.mrf.mxu0  ;;  %v2011_v47 = vunpack.c.l.b16 %v1918_v60 }
  0xff   : > { %v1947_v6 = vrot.slane %v1946_v11, 4 }
 0x100   : > { %v1053_v14 = vpop.f32.mrf.mxu3  ;;  %v722_v15 = vpop.f32.mrf.mxu1  ;;  %v2023_v62 = vpack.c.b16 %v2012_v31, %v2011_v47  ;;  %v2191_v47 = vrot.slane %v3738_v26, 5  ;;  %v2770_v31 = vld [vmem:[%s3154_s15 + $0x54] sm:$0xe] }
 0x101   : > { %2899 = vmatmul.msk.bf16.gmra.mxu0 %vm548_vm3, %v2228_v61  ;;  %v1084_v23 = vadd.f32 %v1053_v14, %v933_v10  ;;  %v1936_v61 = vor.u32 %v1935_v30, %v1932_v39  ;;  %v1501_v10 = vsel %vm3290_vm7, %v1499_v32, %v1500_v58  ;;  %v723_v35 = vadd.f32 %v722_v15, %v3502_v41  ;;  %v3759_v39 = vld [vmem:[%s3154_s15 + $0x64] sm:$0xf] }
 0x102   : > { %v1951_v14 = vrot.slane %v1949_v18, 5  ;;  %v1954_v32 = vshrl.u32 %v2864_v28, 16 }
 0x103   : > { %2785 = vmatmul.msk.bf16.gmra.mxu1 %vm548_vm3, %v1538_v43  ;;  %v3734_v12 = vadd.f32 %v1387_v19, %v1084_v23  ;;  %v2218_v19 = vunpack.c.l.b16 %v2185_v49  ;;  %v1937_v13 = vrot.slane %v1936_v61, 4  ;;  %v1529_v43 = vunpack.c.l.b16 %v1501_v10 }
 0x104   : > { %v904_v54 = vpop.f32.mrf.mxu2  ;;  %v1952_v15 = vsel %vm3182_vm4, %v1947_v6, %v1951_v14  ;;  %v1956_v10 = vrot.slane %v1954_v32, 4 }
 0x105   : > { %v934_v5 = vadd.f32 %v904_v54, %v720_v51  ;;  %v1498_v51 = vsel %vm3290_vm7, %v2777_v29, %v1497_v2  ;;  %v2188_v2 = vrot.slane %v3715_v56, 5  ;;  %v2229_v23 = vpack.c.b16 %v2218_v19, %v2217_v0  ;;  %v2927_v0 = vld [vmem:[%s3154_s15 + $0x54] sm:$0xff] }
 0x106   : > { %v1389_v48 = vpop.f32.mrf.mxu0  ;;  %v1528_v20 = vunpack.c.l.b16 %v1498_v51  ;;  %v1942_v41 = vsel %vm3182_vm4, %v1937_v13, %v1941_v27  ;;  %v1504_v29 = vrot.slane %v3460_v42, 5  ;;  %v1963_v27 = vshll.u32 %v3759_v39, 16  ;;  %v2866_v13 = vld [vmem:[%s3154_s15 + $0x68] sm:$0x1] }
 0x107   : > { %v2190_v54 = vrot.slane %v2188_v2, 4  ;;  %v2013_v49 = vunpack.c.l.b16 %v1942_v41  ;;  %v2014_v42 = vunpack.c.l.b16 %v1952_v15  ;;  %v2189_v11 = vsel %vm3290_vm7, %v2892_v37, %v2188_v2 }
 0x108   : > { %v1055_v40 = vpop.f32.mrf.mxu3  ;;  %v724_v63 = vpop.f32.mrf.mxu1  ;;  %v1539_v30 = vpack.c.b16 %v1529_v43, %v1528_v20  ;;  %v1506_v51 = vrot.slane %v1504_v29, 4  ;;  %v2219_v6 = vunpack.c.l.b16 %v2189_v11 }
 0x109   : > { %v1085_v55 = vadd.f32 %v1055_v40, %v934_v5  ;;  %2842 = vmatmul.msk.bf16.gmra.mxu2 %vm548_vm3, %v2926_v9  ;;  %v1957_v5 = vshll.u32 %v2864_v28, 16  ;;  %v725_v61 = vadd.f32 %v724_v63, %v3532_v17  ;;  %v2778_v40 = vrot.slane %v2770_v31, 9 }
 0x10a   : > { %v2192_v1 = vsel %vm3290_vm7, %v2190_v54, %v2191_v47  ;;  %v1965_v17 = vrot.slane %v1963_v27, 5  ;;  %v1973_v28 = vshll.u32 %v2866_v13, 16  ;;  %v2195_v31 = vrot.slane %v3759_v39, 5  ;;  %v2867_v27 = vld [vmem:[%s3154_s15 + $0x6c] sm:$0xf] }
 0x10b   : > { %v3756_v16 = vadd.f32 %v1389_v48, %v1085_v55  ;;  %v1967_v48 = vshrl.u32 %v3759_v39, 16  ;;  %v1959_v55 = vrot.slane %v1957_v5, 5  ;;  %v2220_v20 = vunpack.c.l.b16 %v2192_v1  ;;  %v2885_v5 = vld [vmem:[%s3154_s15 + $0x60] sm:$0xe] }
 0x10c   : > { %v907_v60 = vpop.f32.mrf.mxu2  ;;  %v1505_v14 = vsel %vm3290_vm7, %v2778_v40, %v1504_v29  ;;  %v1975_v32 = vrot.slane %v1973_v28, 5  ;;  %v2771_v40 = vld [vmem:[%s3154_s15 + $0x60] sm:$0xe]  ;;  %v1978_v39 = vshrl.u32 %v2867_v27, 16  ;;  %v1514_v1 = vrot.slane %v3508_v50, 5 }
 0x10d   : > { %2875 = vmatmul.msk.bf16.gmra.mxu3 %vm548_vm3, %v2023_v62  ;;  %v935_v24 = vadd.f32 %v907_v60, %v723_v35  ;;  %v1969_v63 = vrot.slane %v1967_v48, 4  ;;  %v1508_v60 = vsel %vm3290_vm7, %v1506_v51, %v1507_v45  ;;  %v1960_v22 = vor.u32 %v1959_v55, %v1956_v10 }
 0x10e   : > { %v1392_v59 = vpop.f32.mrf.mxu0  ;;  %v1531_v41 = vunpack.c.l.b16 %v1508_v60  ;;  %v2230_v15 = vpack.c.b16 %v2220_v20, %v2219_v6  ;;  %v1981_v51 = vshll.u32 %v2867_v27, 16  ;;  %v2197_v10 = vrot.slane %v2195_v31, 4 }
 0x10f   : > { %v2198_v55 = vrot.slane %v2866_v13, 5  ;;  %v2928_v13 = vld [vmem:[%s3154_s15 + $0x60] sm:$0xff] }
 0x110   : > { %v1058_v56 = vpop.f32.mrf.mxu3  ;;  %v727_v58 = vpop.f32.mrf.mxu1 }
 0x111   : > { %2900 = vmatmul.msk.bf16.gmra.mxu0 %vm548_vm3, %v2229_v23  ;;  %v1086_v9 = vadd.f32 %v1058_v56, %v935_v24  ;;  %v2024_v23 = vpack.c.b16 %v2014_v42, %v2013_v49  ;;  %v1970_v24 = vor.u32 %v1969_v63, %v1965_v17  ;;  %v1961_v56 = vrot.slane %v1960_v22, 4 }
 0x112   : > { %v1511_v42 = vrot.slane %v3489_v21, 5  ;;  %v1980_v22 = vrot.slane %v1978_v39, 4 }
 0x113   : > { %2786 = vmatmul.msk.bf16.gmra.mxu1 %vm548_vm3, %v1539_v30  ;;  %v3776_v18 = vadd.f32 %v1392_v59, %v1086_v9  ;;  %v728_v59 = vadd.f32 %v727_v58, %v3553_v8  ;;  %v1530_v30 = vunpack.c.l.b16 %v1505_v14  ;;  %v1971_v29 = vrot.slane %v1970_v24, 4  ;;  %v3795_v58 = vld [vmem:[%s3154_s15 + $0x70] sm:$0xf]  ;;  %v2869_v24 = vld [vmem:[%s3154_s15 + $0x74] sm:$0x1] }
 0x114   : > { %v909_v26 = vpop.f32.mrf.mxu2  ;;  %v1966_v49 = vsel %vm3182_vm4, %v1961_v56, %v1965_v17  ;;  %v1513_v20 = vrot.slane %v1511_v42, 4  ;;  %v2202_v39 = vrot.slane %v3795_v58, 5 }
 0x115   : > { %v936_v62 = vadd.f32 %v909_v26, %v725_v61  ;;  %v1540_v8 = vpack.c.b16 %v1531_v41, %v1530_v30  ;;  %v2893_v61 = vrot.slane %v2885_v5, 9  ;;  %v1976_v26 = vsel %vm3182_vm4, %v1971_v29, %v1975_v32 }
 0x116   : > { %v1394_v19 = vpop.f32.mrf.mxu0  ;;  %v2016_v6 = vunpack.c.l.b16 %v1976_v26  ;;  %v1997_v5 = vshll.u32 %v2869_v24, 16 }
 0x117   : > { %v2196_v60 = vsel %vm3290_vm7, %v2893_v61, %v2195_v31 }
 0x118   : > { %v1060_v35 = vpop.f32.mrf.mxu3  ;;  %v729_v43 = vpop.f32.mrf.mxu1 }
 0x119   : > { %v1087_v2 = vadd.f32 %v1060_v35, %v936_v62  ;;  %2843 = vmatmul.msk.bf16.gmra.mxu2 %vm548_vm3, %v2927_v0  ;;  %v1987_v62 = vshll.u32 %v3795_v58, 16  ;;  %v1991_v0 = vshrl.u32 %v3795_v58, 16  ;;  %v730_v21 = vadd.f32 %v729_v43, %v3577_v4 }
 0x11a   : > { %v2779_v35 = vrot.slane %v2771_v40, 9  ;;  %v2199_v4 = vsel %vm3290_vm7, %v2197_v10, %v2198_v55  ;;  %v1999_v40 = vrot.slane %v1997_v5, 5  ;;  %v2886_v10 = vld [vmem:[%s3154_s15 + $0x6c] sm:$0xe] }
 0x11b   : > { %v3790_v9 = vadd.f32 %v1394_v19, %v1087_v2  ;;  %v2015_v19 = vunpack.c.l.b16 %v1966_v49  ;;  %v1983_v2 = vrot.slane %v1981_v51, 5  ;;  %v1989_v43 = vrot.slane %v1987_v62, 5 }
 0x11c   : > { %v912_v37 = vpop.f32.mrf.mxu2  ;;  %v1512_v41 = vsel %vm3290_vm7, %v2779_v35, %v1511_v42 }
 0x11d   : > { %2876 = vmatmul.msk.bf16.gmra.mxu3 %vm548_vm3, %v2024_v23  ;;  %v937_v54 = vadd.f32 %v912_v37, %v728_v59  ;;  %v1993_v23 = vrot.slane %v1991_v0, 4  ;;  %v2221_v59 = vunpack.c.l.b16 %v2196_v60  ;;  %v2025_v56 = vpack.c.b16 %v2016_v6, %v2015_v19 }
 0x11e   : > { %v1397_v47 = vpop.f32.mrf.mxu0  ;;  %v1984_v29 = vor.u32 %v1983_v2, %v1980_v22  ;;  %v1532_v31 = vunpack.c.l.b16 %v1512_v41 }
 0x11f   : > { %v1994_v32 = vor.u32 %v1993_v23, %v1989_v43 }
 0x120   : > { %v1063_v48 = vpop.f32.mrf.mxu3  ;;  %v732_v45 = vpop.f32.mrf.mxu1  ;;  %v1985_v42 = vrot.slane %v1984_v29, 4 }
 0x121   : > { %2901 = vmatmul.msk.bf16.gmra.mxu0 %vm548_vm3, %v2230_v15  ;;  %v1088_v11 = vadd.f32 %v1063_v48, %v937_v54  ;;  %v1515_v15 = vsel %vm3290_vm7, %v1513_v20, %v1514_v1  ;;  %v2222_v54 = vunpack.c.l.b16 %v2199_v4  ;;  %v1995_v26 = vrot.slane %v1994_v32, 4  ;;  %v2929_v20 = vld [vmem:[%s3154_s15 + $0x6c] sm:$0xff] }
 0x122   : > { %v1533_v27 = vunpack.c.l.b16 %v1515_v15  ;;  %v1990_v62 = vsel %vm3182_vm4, %v1985_v42, %v1989_v43  ;;  %v2894_v1 = vrot.slane %v2886_v10, 9 }
 0x123   : > { %2787 = vmatmul.msk.bf16.gmra.mxu1 %vm548_vm3, %v1540_v8  ;;  %v3809_v17 = vadd.f32 %v1397_v47, %v1088_v11  ;;  %v733_v47 = vadd.f32 %v732_v45, %v3512_v53  ;;  %v2231_v49 = vpack.c.b16 %v2222_v54, %v2221_v59  ;;  %v2000_v0 = vsel %vm3182_vm4, %v1995_v26, %v1999_v40 }
 0x124   : > { %v914_v63 = vpop.f32.mrf.mxu2  ;;  %v1541_v51 = vpack.c.b16 %v1533_v27, %v1532_v31  ;;  %v2203_v22 = vsel %vm3290_vm7, %v2894_v1, %v2202_v39 }
 0x125   : > { %v938_v14 = vadd.f32 %v914_v63, %v730_v21  ;;  %v2204_v21 = vrot.slane %v2202_v39, 4  ;;  %v2205_v63 = vrot.slane %v2869_v24, 5  ;;  %v2223_v43 = vunpack.c.l.b16 %v2203_v22 }
 0x126   : > { %v1399_v50 = vpop.f32.mrf.mxu0 }
 0x127   : > { %v2206_v36 = vsel %vm3290_vm7, %v2204_v21, %v2205_v63 }
 0x128   : > { %v1065_v28 = vpop.f32.mrf.mxu3  ;;  %v734_v30 = vpop.f32.mrf.mxu1  ;;  %v2224_v23 = vunpack.c.l.b16 %v2206_v36 }
 0x129   : > { %v1089_v37 = vadd.f32 %v1065_v28, %v938_v14  ;;  %2844 = vmatmul.msk.bf16.gmra.mxu2 %vm548_vm3, %v2928_v13  ;;  %v735_v19 = vadd.f32 %v734_v30, %v3538_v38  ;;  %v2017_v14 = vunpack.c.l.b16 %v1990_v62  ;;  %v2018_v13 = vunpack.c.l.b16 %v2000_v0 }
 0x12a   : > { %v2232_v30 = vpack.c.b16 %v2224_v23, %v2223_v43 }
 0x12b   : > { %v3823_v8 = vadd.f32 %v1399_v50, %v1089_v37  ;;  %v2026_v38 = vpack.c.b16 %v2018_v13, %v2017_v14 }
 0x12c   : > { %v917_v48 = vpop.f32.mrf.mxu2 }
 0x12d   : > { %2877 = vmatmul.msk.bf16.gmra.mxu3 %vm548_vm3, %v2025_v56  ;;  %v939_v61 = vadd.f32 %v917_v48, %v733_v47 }
 0x12e   : > { %v1402_v11 = vpop.f32.mrf.mxu0 }
 0x130   : > { %v1068_v55 = vpop.f32.mrf.mxu3  ;;  %v737_v53 = vpop.f32.mrf.mxu1 }
 0x131   : > { %2902 = vmatmul.msk.bf16.gmra.mxu0 %vm548_vm3, %v2231_v49  ;;  %v1090_v45 = vadd.f32 %v1068_v55, %v939_v61  ;;  %v738_v24 = vadd.f32 %v737_v53, %v3564_v57 }
 0x133   : > { %2788 = vmatmul.msk.bf16.gmra.mxu1 %vm548_vm3, %v1541_v51  ;;  %v3835_v58 = vadd.f32 %v1402_v11, %v1090_v45 }
 0x134   : > { %v919_v6 = vpop.f32.mrf.mxu2 }
 0x135   : > { %v940_v35 = vadd.f32 %v919_v6, %v735_v19 }
 0x136   : > { %v1404_v60 = vpop.f32.mrf.mxu0 }
 0x138   : > { %v1070_v2 = vpop.f32.mrf.mxu3  ;;  %v739_v50 = vpop.f32.mrf.mxu1 }
 0x139   : > { %v1091_v4 = vadd.f32 %v1070_v2, %v940_v35  ;;  %2845 = vmatmul.msk.bf16.gmra.mxu2 %vm548_vm3, %v2929_v20  ;;  %v740_v54 = vadd.f32 %v739_v50, %v3590_v25 }
 0x13b   : > { %v3844_v28 = vadd.f32 %v1404_v60, %v1091_v4 }
 0x13c   : > { %v922_v59 = vpop.f32.mrf.mxu2 }
 0x13d   : > { %2878 = vmatmul.msk.bf16.gmra.mxu3 %vm548_vm3, %v2026_v38  ;;  %v941_v41 = vadd.f32 %v922_v59, %v738_v24 }
 0x13e   : > { %v1407_v33 = vpop.f32.mrf.mxu0 }
 0x140   : > { %v1073_v15 = vpop.f32.mrf.mxu3  ;;  %v1578_v37 = vpop.f32.mrf.mxu1 }
 0x141   : > { %2903 = vmatmul.msk.bf16.gmra.mxu0 %vm548_vm3, %v2232_v30  ;;  %v1092_v56 = vadd.f32 %v1073_v15, %v941_v41  ;;  %v1618_v61 = vadd.f32 %v1578_v37, %v3621_v7  ;;  %v3861_v7 = vld [vmem:[%s3931_s2] ss:$0 sm:$0xff] }
 0x143   : > { %v3849_v29 = vadd.f32 %v1407_v33, %v1092_v56 }
 0x144   : > { %v924_v57 = vpop.f32.mrf.mxu2 }
 0x145   : > { %v942_v32 = vadd.f32 %v924_v57, %v740_v54 }
 0x146   : > { %v1409_v5 = vpop.f32.mrf.mxu0 }
 0x148   : > { %v1075_v47 = vpop.f32.mrf.mxu3  ;;  %v1580_v31 = vpop.f32.mrf.mxu1 }
 0x149   : > { %v1093_v27 = vadd.f32 %v1075_v47, %v942_v32  ;;  %v1619_v39 = vadd.f32 %v1580_v31, %v3638_v34 }
 0x14b   : > { %v3852_v48 = vadd.f32 %v1409_v5, %v1093_v27 }
 0x14c   : > { %v1729_v49 = vpop.f32.mrf.mxu2 }
 0x14d   : > { %v1769_v11 = vadd.f32 %v1729_v49, %v1618_v61 }
 0x14e   : > { %v2269_v42 = vpop.f32.mrf.mxu0 }
 0x150   : > { %v2063_v25 = vpop.f32.mrf.mxu3  ;;  %v1583_v26 = vpop.f32.mrf.mxu1 }
 0x151   : > { %v2103_v40 = vadd.f32 %v2063_v25, %v1769_v11  ;;  %v1620_v34 = vadd.f32 %v1583_v26, %v3658_v44 }
 0x153   : > { %v2309_v53 = vadd.f32 %v2269_v42, %v2103_v40 }
 0x154   : > { %v1731_v51 = vpop.f32.mrf.mxu2 }
 0x155   : > { %v1770_v10 = vadd.f32 %v1731_v51, %v1619_v39  ;;  %v2329_v1 = vadd.f32 %v3861_v7, %v2309_v53 }
 0x156   : > { %v2271_v55 = vpop.f32.mrf.mxu0 }
 0x157   : > { %v2399_v20 = vmul.f32 %v2329_v1, %v2329_v1 }
 0x158   : > { %v2065_v45 = vpop.f32.mrf.mxu3  ;;  %v1585_v62 = vpop.f32.mrf.mxu1 }
 0x159   : > { %v2104_v0 = vadd.f32 %v2065_v45, %v1770_v10  ;;  %v1621_v4 = vadd.f32 %v1585_v62, %v3679_v52 }
 0x15b   : > { %v2310_v21 = vadd.f32 %v2271_v55, %v2104_v0 }
 0x15c   : > { %v1734_v63 = vpop.f32.mrf.mxu2 }
 0x15d   : > { %v2330_v19 = vadd.f32 %v3861_v7, %v2310_v21  ;;  %v1771_v6 = vadd.f32 %v1734_v63, %v1620_v34 }
 0x15e   : > { %v2274_v35 = vpop.f32.mrf.mxu0 }
 0x15f   : > { %v2933_v14 = vpack.c.bf16 %v2330_v19, %v2329_v1  ;;  %v2377_v13 = vadd.f32 %v2330_v19, %v2329_v1  ;;  %v2400_v60 = vmul.f32 %v2330_v19, %v2330_v19 }
 0x160   : > { %v2068_v22 = vpop.f32.mrf.mxu3  ;;  %v1588_v36 = vpop.f32.mrf.mxu1 }
 0x161   : > { %2934 = vst [vmem:[%s3869_s14] sm:$0xff] %v2933_v14   ;;  %v2415_v2 = vadd.f32 %v2400_v60, %v2399_v20  ;;  %v2105_v44 = vadd.f32 %v2068_v22, %v1771_v6  ;;  %v1622_v54 = vadd.f32 %v1588_v36, %v3697_v46 }
 0x163   : > { %v2311_v50 = vadd.f32 %v2274_v35, %v2105_v44 }
 0x164   : > { %v1736_v38 = vpop.f32.mrf.mxu2 }
 0x165   : > { %v2331_v43 = vadd.f32 %v3861_v7, %v2311_v50  ;;  %v1772_v23 = vadd.f32 %v1736_v38, %v1621_v4 }
 0x166   : > { %v2276_v24 = vpop.f32.mrf.mxu0 }
 0x167   : > { %v2378_v59 = vadd.f32 %v2377_v13, %v2331_v43  ;;  %v2401_v30 = vmul.f32 %v2331_v43, %v2331_v43 }
 0x168   : > { %v2070_v41 = vpop.f32.mrf.mxu3  ;;  %v1590_v33 = vpop.f32.mrf.mxu1 }
 0x169   : > { %v2416_v15 = vadd.f32 %v2415_v2, %v2401_v30  ;;  %v2106_v37 = vadd.f32 %v2070_v41, %v1772_v23  ;;  %v1623_v26 = vadd.f32 %v1590_v33, %v3720_v3 }
 0x16b   : > { %v2312_v56 = vadd.f32 %v2276_v24, %v2106_v37 }
 0x16c   : > { %v1739_v57 = vpop.f32.mrf.mxu2 }
 0x16d   : > { %v2332_v32 = vadd.f32 %v3861_v7, %v2312_v56  ;;  %v1773_v5 = vadd.f32 %v1739_v57, %v1622_v54 }
 0x16e   : > { %v2279_v52 = vpop.f32.mrf.mxu0 }
 0x16f   : > { %v2938_v47 = vpack.c.bf16 %v2332_v32, %v2331_v43  ;;  %v2379_v31 = vadd.f32 %v2378_v59, %v2332_v32  ;;  %v2402_v27 = vmul.f32 %v2332_v32, %v2332_v32 }
 0x170   : > { %v2073_v49 = vpop.f32.mrf.mxu3  ;;  %v1593_v61 = vpop.f32.mrf.mxu1 }
 0x171   : > { %2970 = vst [vmem:[%s3869_s14 + $0x8] sm:$0xff] %v2938_v47   ;;  %v2417_v42 = vadd.f32 %v2416_v15, %v2402_v27  ;;  %v2107_v11 = vadd.f32 %v2073_v49, %v1773_v5  ;;  %v1624_v21 = vadd.f32 %v1593_v61, %v3734_v12 }
 0x173   : > { %v2313_v25 = vadd.f32 %v2279_v52, %v2107_v11 }
 0x174   : > { %v1741_v40 = vpop.f32.mrf.mxu2 }
 0x175   : > { %v2333_v39 = vadd.f32 %v3861_v7, %v2313_v25  ;;  %v1774_v46 = vadd.f32 %v1741_v40, %v1623_v26 }
 0x176   : > { %v2281_v51 = vpop.f32.mrf.mxu0 }
 0x177   : > { %v2380_v10 = vadd.f32 %v2379_v31, %v2333_v39  ;;  %v2403_v55 = vmul.f32 %v2333_v39, %v2333_v39 }
 0x178   : > { %v2075_v53 = vpop.f32.mrf.mxu3  ;;  %v1595_v45 = vpop.f32.mrf.mxu1 }
 0x179   : > { %v2418_v62 = vadd.f32 %v2417_v42, %v2403_v55  ;;  %v2108_v0 = vadd.f32 %v2075_v53, %v1774_v46  ;;  %v1625_v2 = vadd.f32 %v1595_v45, %v3756_v16 }
 0x17b   : > { %v2314_v1 = vadd.f32 %v2281_v51, %v2108_v0 }
 0x17c   : > { %v1744_v34 = vpop.f32.mrf.mxu2 }
 0x17d   : > { %v2334_v63 = vadd.f32 %v3861_v7, %v2314_v1  ;;  %v1775_v19 = vadd.f32 %v1744_v34, %v1624_v21 }
 0x17e   : > { %v2284_v3 = vpop.f32.mrf.mxu0 }
 0x17f   : > { %v2943_v6 = vpack.c.bf16 %v2334_v63, %v2333_v39  ;;  %v2381_v35 = vadd.f32 %v2380_v10, %v2334_v63  ;;  %v2404_v20 = vmul.f32 %v2334_v63, %v2334_v63 }
 0x180   : > { %v2078_v14 = vpop.f32.mrf.mxu3  ;;  %v1598_v13 = vpop.f32.mrf.mxu1 }
 0x181   : > { %2971 = vst [vmem:[%s3869_s14 + $0x10] sm:$0xff] %v2943_v6   ;;  %v2419_v60 = vadd.f32 %v2418_v62, %v2404_v20  ;;  %v2109_v22 = vadd.f32 %v2078_v14, %v1775_v19  ;;  %v1626_v33 = vadd.f32 %v1598_v13, %v3776_v18 }
 0x183   : > { %v2315_v36 = vadd.f32 %v2284_v3, %v2109_v22 }
 0x184   : > { %v1746_v44 = vpop.f32.mrf.mxu2 }
 0x185   : > { %v2335_v50 = vadd.f32 %v3861_v7, %v2315_v36  ;;  %v1776_v12 = vadd.f32 %v1746_v44, %v1625_v2 }
 0x186   : > { %v2286_v4 = vpop.f32.mrf.mxu0 }
 0x187   : > { %v2382_v38 = vadd.f32 %v2381_v35, %v2335_v50  ;;  %v2405_v43 = vmul.f32 %v2335_v50, %v2335_v50 }
 0x188   : > { %v2080_v23 = vpop.f32.mrf.mxu3  ;;  %v1600_v24 = vpop.f32.mrf.mxu1 }
 0x189   : > { %v2420_v59 = vadd.f32 %v2419_v60, %v2405_v43  ;;  %v2110_v30 = vadd.f32 %v2080_v23, %v1776_v12  ;;  %v1627_v49 = vadd.f32 %v1600_v24, %v3790_v9 }
 0x18b   : > { %v2316_v41 = vadd.f32 %v2286_v4, %v2110_v30 }
 0x18c   : > { %v1749_v15 = vpop.f32.mrf.mxu2 }
 0x18d   : > { %v2336_v37 = vadd.f32 %v3861_v7, %v2316_v41  ;;  %v1777_v56 = vadd.f32 %v1749_v15, %v1626_v33 }
 0x18e   : > { %v2289_v16 = vpop.f32.mrf.mxu0 }
 0x18f   : > { %v2948_v54 = vpack.c.bf16 %v2336_v37, %v2335_v50  ;;  %v2383_v57 = vadd.f32 %v2382_v38, %v2336_v37  ;;  %v2406_v32 = vmul.f32 %v2336_v37, %v2336_v37 }
 0x190   : > { %v2083_v5 = vpop.f32.mrf.mxu3  ;;  %v1603_v52 = vpop.f32.mrf.mxu1 }
 0x191   : > { %2972 = vst [vmem:[%s3869_s14 + $0x18] sm:$0xff] %v2948_v54   ;;  %v2421_v47 = vadd.f32 %v2420_v59, %v2406_v32  ;;  %v2111_v31 = vadd.f32 %v2083_v5, %v1777_v56  ;;  %v1628_v55 = vadd.f32 %v1603_v52, %v3809_v17 }
 0x193   : > { %v2317_v27 = vadd.f32 %v2289_v16, %v2111_v31 }
 0x194   : > { %v1751_v61 = vpop.f32.mrf.mxu2 }
 0x195   : > { %v2337_v42 = vadd.f32 %v3861_v7, %v2317_v27  ;;  %v1778_v18 = vadd.f32 %v1751_v61, %v1627_v49 }
 0x196   : > { %v2291_v11 = vpop.f32.mrf.mxu0 }
 0x197   : > { %v2384_v25 = vadd.f32 %v2383_v57, %v2337_v42  ;;  %v2407_v26 = vmul.f32 %v2337_v42, %v2337_v42 }
 0x198   : > { %v2085_v40 = vpop.f32.mrf.mxu3  ;;  %v1605_v39 = vpop.f32.mrf.mxu1 }
 0x199   : > { %v2422_v46 = vadd.f32 %v2421_v47, %v2407_v26  ;;  %v2112_v51 = vadd.f32 %v2085_v40, %v1778_v18  ;;  %v1629_v35 = vadd.f32 %v1605_v39, %v3823_v8 }
 0x19b   : > { %v2318_v10 = vadd.f32 %v2291_v11, %v2112_v51 }
 0x19c   : > { %v1754_v53 = vpop.f32.mrf.mxu2 }
 0x19d   : > { %v2338_v45 = vadd.f32 %v3861_v7, %v2318_v10  ;;  %v1779_v62 = vadd.f32 %v1754_v53, %v1628_v55 }
 0x19e   : > { %v2294_v9 = vpop.f32.mrf.mxu0 }
 0x19f   : > { %v2953_v0 = vpack.c.bf16 %v2338_v45, %v2337_v42  ;;  %v2385_v1 = vadd.f32 %v2384_v25, %v2338_v45  ;;  %v2408_v21 = vmul.f32 %v2338_v45, %v2338_v45 }
 0x1a0   : > { %v2088_v34 = vpop.f32.mrf.mxu3  ;;  %v1608_v3 = vpop.f32.mrf.mxu1 }
 0x1a1   : > { %2973 = vst [vmem:[%s3869_s14 + $0x20] sm:$0xff] %v2953_v0   ;;  %v2423_v63 = vadd.f32 %v2422_v46, %v2408_v21  ;;  %v2113_v19 = vadd.f32 %v2088_v34, %v1779_v62  ;;  %v1630_v12 = vadd.f32 %v1608_v3, %v3835_v58 }
 0x1a3   : > { %v2319_v6 = vadd.f32 %v2294_v9, %v2113_v19 }
 0x1a4   : > { %v1756_v20 = vpop.f32.mrf.mxu2 }
 0x1a5   : > { %v2339_v14 = vadd.f32 %v3861_v7, %v2319_v6  ;;  %v1780_v17 = vadd.f32 %v1756_v20, %v1629_v35 }
 0x1a6   : > { %v2296_v13 = vpop.f32.mrf.mxu0 }
 0x1a7   : > { %v2386_v60 = vadd.f32 %v2385_v1, %v2339_v14  ;;  %v2409_v22 = vmul.f32 %v2339_v14, %v2339_v14 }
 0x1a8   : > { %v2090_v36 = vpop.f32.mrf.mxu3  ;;  %v1610_v4 = vpop.f32.mrf.mxu1 }
 0x1a9   : > { %v2424_v2 = vadd.f32 %v2423_v63, %v2409_v22  ;;  %v2114_v44 = vadd.f32 %v2090_v36, %v1780_v17  ;;  %v1631_v56 = vadd.f32 %v1610_v4, %v3844_v28 }
 0x1ab   : > { %v2320_v50 = vadd.f32 %v2296_v13, %v2114_v44 }
 0x1ac   : > { %v1759_v38 = vpop.f32.mrf.mxu2 }
 0x1ad   : > { %v2340_v43 = vadd.f32 %v3861_v7, %v2320_v50  ;;  %v1781_v23 = vadd.f32 %v1759_v38, %v1630_v12 }
 0x1ae   : > { %v2299_v8 = vpop.f32.mrf.mxu0 }
 0x1af   : > { %v2958_v24 = vpack.c.bf16 %v2340_v43, %v2339_v14  ;;  %v2387_v59 = vadd.f32 %v2386_v60, %v2340_v43  ;;  %v2410_v30 = vmul.f32 %v2340_v43, %v2340_v43 }
 0x1b0   : > { %v2093_v41 = vpop.f32.mrf.mxu3  ;;  %v1613_v57 = vpop.f32.mrf.mxu1 }
 0x1b1   : > { %2974 = vst [vmem:[%s3869_s14 + $0x28] sm:$0xff] %v2958_v24   ;;  %v2425_v33 = vadd.f32 %v2424_v2, %v2410_v30  ;;  %v2115_v15 = vadd.f32 %v2093_v41, %v1781_v23  ;;  %v1632_v61 = vadd.f32 %v1613_v57, %v3849_v29 }
 0x1b3   : > { %v2321_v37 = vadd.f32 %v2299_v8, %v2115_v15 }
 0x1b4   : > { %v1761_v16 = vpop.f32.mrf.mxu2 }
 0x1b5   : > { %v2341_v54 = vadd.f32 %v3861_v7, %v2321_v37  ;;  %v1782_v58 = vadd.f32 %v1761_v16, %v1631_v56 }
 0x1b6   : > { %v2301_v32 = vpop.f32.mrf.mxu0 }
 0x1b7   : > { %v2388_v5 = vadd.f32 %v2387_v59, %v2341_v54  ;;  %v2411_v52 = vmul.f32 %v2341_v54, %v2341_v54 }
 0x1b8   : > { %v2095_v47 = vpop.f32.mrf.mxu3  ;;  %v1615_v40 = vpop.f32.mrf.mxu1 }
 0x1b9   : > { %v2426_v31 = vadd.f32 %v2425_v33, %v2411_v52  ;;  %v2116_v27 = vadd.f32 %v2095_v47, %v1782_v58  ;;  %v1633_v53 = vadd.f32 %v1615_v40, %v3852_v48 }
 0x1bb   : > { %v2322_v49 = vadd.f32 %v2301_v32, %v2116_v27 }
 0x1bc   : > { %v1764_v42 = vpop.f32.mrf.mxu2 }
 0x1bd   : > { %v2342_v18 = vadd.f32 %v3861_v7, %v2322_v49  ;;  %v1783_v11 = vadd.f32 %v1764_v42, %v1632_v61 }
 0x1be   : > { %v2304_v39 = vpop.f32.mrf.mxu0 }
 0x1bf   : > { %v2963_v28 = vpack.c.bf16 %v2342_v18, %v2341_v54  ;;  %v2389_v25 = vadd.f32 %v2388_v5, %v2342_v18  ;;  %v2412_v26 = vmul.f32 %v2342_v18, %v2342_v18 }
 0x1c0   : > { %v2098_v46 = vpop.f32.mrf.mxu3 }
 0x1c1   : > { %2975 = vst [vmem:[%s3869_s14 + $0x30] sm:$0xff] %v2963_v28   ;;  %v2427_v51 = vadd.f32 %v2426_v31, %v2412_v26  ;;  %v2117_v10 = vadd.f32 %v2098_v46, %v1783_v11 }
 0x1c3   : > { %v2323_v55 = vadd.f32 %v2304_v39, %v2117_v10 }
 0x1c4   : > { %v1766_v45 = vpop.f32.mrf.mxu2 }
 0x1c5   : > { %v2343_v29 = vadd.f32 %v3861_v7, %v2323_v55  ;;  %v1784_v62 = vadd.f32 %v1766_v45, %v1633_v53 }
 0x1c6   : > { %v2306_v63 = vpop.f32.mrf.mxu0 }
 0x1c7   : > { %v2390_v9 = vadd.f32 %v2389_v25, %v2343_v29  ;;  %v2413_v0 = vmul.f32 %v2343_v29, %v2343_v29 }
 0x1c8   : > { %v2100_v1 = vpop.f32.mrf.mxu3 }
 0x1c9   : > { %v2428_v21 = vadd.f32 %v2427_v51, %v2413_v0  ;;  %v2118_v34 = vadd.f32 %v2100_v1, %v1784_v62 }
 0x1cb   : > { %v2324_v19 = vadd.f32 %v2306_v63, %v2118_v34 }
 0x1cd   : > { %v2344_v3 = vadd.f32 %v3861_v7, %v2324_v19 }
 0x1cf   : > { %v2968_v6 = vpack.c.bf16 %v2344_v3, %v2343_v29  ;;  %v2391_v35 = vadd.f32 %v2390_v9, %v2344_v3  ;;  %v2414_v20 = vmul.f32 %v2344_v3, %v2344_v3 }
 0x1d1   : > { %2976 = vst [vmem:[%s3869_s14 + $0x38] sm:$0xff] %v2968_v6   ;;  %v2392_v48 = vrot.slane %v2391_v35, 4  ;;  %v2429_v14 = vadd.f32 %v2428_v21, %v2414_v20 }
 0x1d3   : > { %v2393_v17 = vadd.f32 %v2392_v48, %v2391_v35  ;;  %v2430_v13 = vrot.slane %v2429_v14, 4 }
 0x1d5   : > { %v2394_v60 = vrot.slane %v2393_v17, 2  ;;  %v2431_v22 = vadd.f32 %v2430_v13, %v2429_v14 }
 0x1d7   : > { %v2395_v36 = vadd.f32 %v2394_v60, %v2393_v17  ;;  %v2432_v2 = vrot.slane %v2431_v22, 2 }
 0x1d9   : > { %v2396_v44 = vrot.slane %v2395_v36, 1  ;;  %v2433_v50 = vadd.f32 %v2432_v2, %v2431_v22 }
 0x1db   : > { %v2397_v7 = vadd.f32 %v2396_v44, %v2395_v36  ;;  %v2434_v12 = vrot.slane %v2433_v50, 1 }
 0x1dd   : > { %2398 = vst [vmem:[%s291_s17] sm:$0x1] %v2397_v7  ;;  %v2435_v4 = vadd.f32 %v2434_v12, %v2433_v50 }
 0x1df   : > { %2436 = vst [vmem:[%s298_s27] sm:$0x1] %v2435_v4 }
 0x1e0 PF: > { %s16_s22 = sadd.s32 1, %s3060_s22   ;;  %s3939_s18 = smov %s3052_s20 }
 0x1e1   : > { %p13_p8 = scmp.ge.s32.totalorder %s16_s22, 6   ;;  %s3940_s19 = smov %s3056_s21 }
 0x1e2   : > { %s3941_s20 = smov %s3944_s23  ;;  %s3942_s21 = smov %s3948_s24 }
 0x1e3   :  { %15 = sbr.rel (!%p13_p8) target bundleno = 3 (0x3), region = 96 }

// kernel: unet_down_forward.7
= control target key start
LH: loop header
LB: loop body
LE: loop exit
PB: predicated region body
PF: predicated region fallthrough
CT: control target
= control target key end

     0   :  { %s1353_s12 = smov 0   ;;  %s1355_s13 = smov 0   ;;  %s1916_s0 = inlined_call_operand.vmem [shape: bf16[2,16,16,128], index: 0, kind: input, shape index: {}]   ;;  %s1917_s1 = inlined_call_operand.vmem [shape: f32[1,128], index: 1, kind: input, shape index: {}]   ;;  %s1918_s2 = inlined_call_operand.vmem [shape: f32[1,128], index: 2, kind: input, shape index: {}]   ;;  %s1919_s3 = inlined_call_operand.vmem [shape: f32[2,8,8,128], index: 3, kind: output, shape index: {}]  }
   0x1   :  { %s1357_s14 = smov 0  }
   0x2 LB: > { %s25_s15 = sadd.s32 1, %s1327_s13  ;;  %p1195_p0 = scmp.ge.s32.totalorder %s1331_s14, 1  ;;  %s1331_s14 = sphi %s1357_s14, %s13_s14   ;;  %s1327_s13 = sphi %s1355_s13, %s2005_s13   ;;  %s1323_s12 = sphi %s1353_s12, %s2004_s12  }
   0x3   : > { %p27_p1 = scmp.ge.s32.totalorder %s25_s15, 2  ;;  %p159_p2 = scmp.lt.s32.totalorder %s1331_s14, 3 }
   0x5   : > { %s2007_s15 = smov (%p27_p1, %s25_s15), 0  ;;  %p160_p3 = pnand %p1195_p0, %p159_p2 }
   0x7   : > { %163 = sbr.rel (%p160_p3) target bundleno = 195 (0xc3), region = 32 }
   0xc   : > { %p193_p4 = scmp.lt.s32.totalorder %s1323_s12, 1  ;;  %v1307_v32 = vld [vmem:[%s1917_s1] ss:$0 sm:$0xff]  ;;  %vm509_vm0 = vcmask 1041408   ;;  %vm1022_vm1 = vcmask 1041409   ;;  %vm1024_vm2 = vcmask 1042434  }
   0xd   : > { %vm1026_vm3 = vcmask 1043459   ;;  %vm1028_vm4 = vcmask 1044484   ;;  %vm1030_vm5 = vcmask 1045509   ;;  %vm1032_vm6 = vcmask 1046534  }
   0xe   : > { %s2009_s12 = smov (!%p193_p4, %s1323_s12), 1  ;;  %vm1034_vm7 = vcmask 1047559  }
   0xf   : > { %s1202_s16 = sshll.u32 %s2009_s12, 7  ;;  %s1203_s24 = sshll.u32 %s2009_s12, 6 }
  0x10   : > { %s1377_s19 = scalar_lea.vmem %s1916_s0, %s1202_s16  ;;  %s1813_s27 = scalar_lea.vmem %s1919_s3, %s1203_s24 }
  0x11   : > { %v1205_v0 = vld [vmem:[%s1377_s19] sm:$0xff]   ;;  %v1268_v1 = vld [vmem:[%s1377_s19 + $0x8] sm:$0xff]   ;;  %v1269_v2 = vld [vmem:[%s1377_s19 + $0x10] sm:$0xff]  }
  0x12   : > { %v1206_v3 = vunpack.c.l.bf16 %v1205_v0  ;;  %v1270_v4 = vld [vmem:[%s1377_s19 + $0x18] sm:$0xff]   ;;  %v1271_v5 = vld [vmem:[%s1377_s19 + $0x20] sm:$0xff]   ;;  %v1272_v6 = vld [vmem:[%s1377_s19 + $0x28] sm:$0xff]   ;;  %v1207_v7 = vunpack.c.h.bf16 %v1205_v0  ;;  %v1210_v8 = vunpack.c.l.bf16 %v1268_v1  ;;  %v1211_v9 = vunpack.c.h.bf16 %v1268_v1 }
  0x13   : > { %v1214_v10 = vunpack.c.l.bf16 %v1269_v2  ;;  %v1273_v11 = vld [vmem:[%s1377_s19 + $0x30] sm:$0xff]   ;;  %v1274_v12 = vld [vmem:[%s1377_s19 + $0x38] sm:$0xff]   ;;  %v1275_v13 = vld [vmem:[%s1377_s19 + $0x40] sm:$0xff]   ;;  %v1215_v14 = vunpack.c.h.bf16 %v1269_v2  ;;  %v1218_v15 = vunpack.c.l.bf16 %v1270_v4  ;;  %v1219_v16 = vunpack.c.h.bf16 %v1270_v4 }
  0x14   : > { %v1222_v17 = vunpack.c.l.bf16 %v1271_v5  ;;  %v1276_v18 = vld [vmem:[%s1377_s19 + $0x48] sm:$0xff]   ;;  %v1277_v19 = vld [vmem:[%s1377_s19 + $0x50] sm:$0xff]   ;;  %v1223_v20 = vunpack.c.h.bf16 %v1271_v5  ;;  %v1226_v21 = vunpack.c.l.bf16 %v1272_v6  ;;  %v1227_v22 = vunpack.c.h.bf16 %v1272_v6  ;;  %v1278_v24 = vld [vmem:[%s1377_s19 + $0x58] sm:$0xff]  }
  0x15   : > { %v1230_v23 = vunpack.c.l.bf16 %v1273_v11  ;;  %v1279_v25 = vld [vmem:[%s1377_s19 + $0x60] sm:$0xff]   ;;  %v1231_v26 = vunpack.c.h.bf16 %v1273_v11  ;;  %v1234_v27 = vunpack.c.l.bf16 %v1274_v12  ;;  %v1235_v28 = vunpack.c.h.bf16 %v1274_v12  ;;  %v1280_v30 = vld [vmem:[%s1377_s19 + $0x68] sm:$0xff]   ;;  %v1281_v31 = vld [vmem:[%s1377_s19 + $0x70] sm:$0xff]  }
  0x16   : > { %v1238_v29 = vunpack.c.l.bf16 %v1275_v13  ;;  %v1239_v33 = vunpack.c.h.bf16 %v1275_v13  ;;  %v1242_v34 = vunpack.c.l.bf16 %v1276_v18  ;;  %v1243_v35 = vunpack.c.h.bf16 %v1276_v18  ;;  %v1282_v37 = vld [vmem:[%s1377_s19 + $0x78] sm:$0xff]   ;;  %v1308_v2 = vld [vmem:[%s1918_s2] ss:$0 sm:$0xff] }
  0x17   : > { %v1246_v36 = vunpack.c.l.bf16 %v1277_v19  ;;  %v1247_v38 = vunpack.c.h.bf16 %v1277_v19  ;;  %v1250_v39 = vunpack.c.l.bf16 %v1278_v24  ;;  %v1251_v40 = vunpack.c.h.bf16 %v1278_v24 }
  0x18   : > { %v1254_v41 = vunpack.c.l.bf16 %v1279_v25  ;;  %v1255_v42 = vunpack.c.h.bf16 %v1279_v25  ;;  %v1258_v43 = vunpack.c.l.bf16 %v1280_v30  ;;  %v1259_v44 = vunpack.c.h.bf16 %v1280_v30 }
  0x19   : > { %v1262_v45 = vunpack.c.l.bf16 %v1281_v31  ;;  %v1263_v46 = vunpack.c.h.bf16 %v1281_v31  ;;  %v1266_v47 = vunpack.c.l.bf16 %v1282_v37  ;;  %v1267_v48 = vunpack.c.h.bf16 %v1282_v37 }
  0x1a   : > { %v282_v49 = vmul.f32 %v1307_v32, %v1206_v3  ;;  %v283_v50 = vmul.f32 %v1307_v32, %v1207_v7  ;;  %v284_v51 = vmul.f32 %v1307_v32, %v1210_v8  ;;  %v285_v52 = vmul.f32 %v1307_v32, %v1211_v9 }
  0x1b   : > { %v286_v53 = vmul.f32 %v1307_v32, %v1214_v10  ;;  %v287_v54 = vmul.f32 %v1307_v32, %v1215_v14  ;;  %v288_v55 = vmul.f32 %v1307_v32, %v1218_v15  ;;  %v289_v56 = vmul.f32 %v1307_v32, %v1219_v16 }
  0x1c   : > { %v290_v57 = vmul.f32 %v1307_v32, %v1222_v17  ;;  %v291_v58 = vmul.f32 %v1307_v32, %v1223_v20  ;;  %v292_v59 = vmul.f32 %v1307_v32, %v1226_v21  ;;  %v293_v60 = vmul.f32 %v1307_v32, %v1227_v22 }
  0x1d   : > { %v294_v61 = vmul.f32 %v1307_v32, %v1230_v23  ;;  %v295_v62 = vmul.f32 %v1307_v32, %v1231_v26  ;;  %v296_v63 = vmul.f32 %v1307_v32, %v1234_v27  ;;  %v297_v0 = vmul.f32 %v1307_v32, %v1235_v28 }
  0x1e   : > { %v298_v1 = vmul.f32 %v1307_v32, %v1238_v29  ;;  %v299_v3 = vmul.f32 %v1307_v32, %v1239_v33  ;;  %v300_v4 = vmul.f32 %v1307_v32, %v1242_v34  ;;  %v301_v5 = vmul.f32 %v1307_v32, %v1243_v35 }
  0x1f   : > { %v302_v6 = vmul.f32 %v1307_v32, %v1246_v36  ;;  %v303_v7 = vmul.f32 %v1307_v32, %v1247_v38  ;;  %v304_v8 = vmul.f32 %v1307_v32, %v1250_v39  ;;  %v305_v9 = vmul.f32 %v1307_v32, %v1251_v40 }
  0x20   : > { %v306_v10 = vmul.f32 %v1307_v32, %v1254_v41  ;;  %v307_v11 = vmul.f32 %v1307_v32, %v1255_v42  ;;  %v308_v12 = vmul.f32 %v1307_v32, %v1258_v43  ;;  %v309_v13 = vmul.f32 %v1307_v32, %v1259_v44 }
  0x21   : > { %v310_v14 = vmul.f32 %v1307_v32, %v1262_v45  ;;  %v311_v15 = vmul.f32 %v1307_v32, %v1263_v46  ;;  %v312_v16 = vmul.f32 %v1307_v32, %v1266_v47  ;;  %v313_v17 = vmul.f32 %v1307_v32, %v1267_v48 }
  0x22   : > { %v1401_v18 = vadd.f32 %v1308_v2, %v282_v49  ;;  %v1403_v19 = vadd.f32 %v1308_v2, %v283_v50  ;;  %v1405_v20 = vadd.f32 %v1308_v2, %v284_v51  ;;  %v1407_v21 = vadd.f32 %v1308_v2, %v285_v52 }
  0x23   : > { %v1409_v22 = vadd.f32 %v1308_v2, %v286_v53  ;;  %v1411_v23 = vadd.f32 %v1308_v2, %v287_v54  ;;  %v323_v24 = vadd.f32 %v1308_v2, %v288_v55  ;;  %v324_v25 = vadd.f32 %v1308_v2, %v289_v56 }
  0x24   : > { %v325_v26 = vadd.f32 %v1308_v2, %v290_v57  ;;  %v326_v27 = vadd.f32 %v1308_v2, %v291_v58  ;;  %v327_v28 = vadd.f32 %v1308_v2, %v292_v59  ;;  %v328_v29 = vadd.f32 %v1308_v2, %v293_v60 }
  0x25   : > { %v329_v30 = vadd.f32 %v1308_v2, %v294_v61  ;;  %v330_v31 = vadd.f32 %v1308_v2, %v295_v62  ;;  %v331_v32 = vadd.f32 %v1308_v2, %v296_v63  ;;  %v332_v33 = vadd.f32 %v1308_v2, %v297_v0 }
  0x26   : > { %v333_v34 = vadd.f32 %v1308_v2, %v298_v1  ;;  %v334_v35 = vadd.f32 %v1308_v2, %v299_v3  ;;  %v335_v36 = vadd.f32 %v1308_v2, %v300_v4  ;;  %v336_v37 = vadd.f32 %v1308_v2, %v301_v5 }
  0x27   : > { %v337_v38 = vadd.f32 %v1308_v2, %v302_v6  ;;  %v338_v39 = vadd.f32 %v1308_v2, %v303_v7  ;;  %v339_v40 = vadd.f32 %v1308_v2, %v304_v8  ;;  %v340_v41 = vadd.f32 %v1308_v2, %v305_v9 }
  0x28   : > { %v341_v42 = vadd.f32 %v1308_v2, %v306_v10  ;;  %v342_v43 = vadd.f32 %v1308_v2, %v307_v11  ;;  %v343_v44 = vadd.f32 %v1308_v2, %v308_v12  ;;  %v344_v45 = vadd.f32 %v1308_v2, %v309_v13 }
  0x29   : > { %v345_v46 = vadd.f32 %v1308_v2, %v310_v14  ;;  %v346_v47 = vadd.f32 %v1308_v2, %v311_v15  ;;  %v347_v48 = vadd.f32 %v1308_v2, %v312_v16  ;;  %v348_v49 = vadd.f32 %v1308_v2, %v313_v17 }
  0x2a   : > { %v349_v50 = vmax.f32 %v1401_v18, 0.0  ;;  %v350_v51 = vmax.f32 %v1403_v19, 0.0  ;;  %v351_v52 = vmax.f32 %v1405_v20, 0.0  ;;  %v352_v53 = vmax.f32 %v1407_v21, 0.0 }
  0x2b   : > { %v353_v54 = vmax.f32 %v1409_v22, 0.0  ;;  %v354_v55 = vmax.f32 %v1411_v23, 0.0  ;;  %v355_v56 = vmax.f32 %v323_v24, 0.0  ;;  %v356_v57 = vmax.f32 %v324_v25, 0.0 }
  0x2c   : > { %v357_v58 = vmax.f32 %v325_v26, 0.0  ;;  %v358_v59 = vmax.f32 %v326_v27, 0.0  ;;  %v359_v60 = vmax.f32 %v327_v28, 0.0  ;;  %v360_v61 = vmax.f32 %v328_v29, 0.0 }
  0x2d   : > { %v361_v62 = vmax.f32 %v329_v30, 0.0  ;;  %v362_v63 = vmax.f32 %v330_v31, 0.0  ;;  %v363_v0 = vmax.f32 %v331_v32, 0.0  ;;  %v364_v1 = vmax.f32 %v332_v33, 0.0 }
  0x2e   : > { %v365_v2 = vmax.f32 %v333_v34, 0.0  ;;  %v366_v3 = vmax.f32 %v334_v35, 0.0  ;;  %v367_v4 = vmax.f32 %v335_v36, 0.0  ;;  %v368_v5 = vmax.f32 %v336_v37, 0.0 }
  0x2f   : > { %v369_v6 = vmax.f32 %v337_v38, 0.0  ;;  %v370_v7 = vmax.f32 %v338_v39, 0.0  ;;  %v371_v8 = vmax.f32 %v339_v40, 0.0  ;;  %v372_v9 = vmax.f32 %v340_v41, 0.0 }
  0x30   : > { %v373_v10 = vmax.f32 %v341_v42, 0.0  ;;  %v374_v11 = vmax.f32 %v342_v43, 0.0  ;;  %v375_v12 = vmax.f32 %v343_v44, 0.0  ;;  %v376_v13 = vmax.f32 %v344_v45, 0.0 }
  0x31   : > { %v377_v14 = vmax.f32 %v345_v46, 0.0  ;;  %v378_v15 = vmax.f32 %v346_v47, 0.0  ;;  %v379_v16 = vmax.f32 %v347_v48, 0.0  ;;  %v380_v17 = vmax.f32 %v348_v49, 0.0 }
  0x32   : > { %v1419_v18 = vmax.f32 %v349_v50, %v351_v52  ;;  %v1421_v19 = vmax.f32 %v350_v51, %v352_v53  ;;  %v1423_v20 = vmax.f32 %v353_v54, %v355_v56  ;;  %v1425_v21 = vmax.f32 %v354_v55, %v356_v57 }
  0x33   : > { %v1427_v22 = vmax.f32 %v357_v58, %v359_v60  ;;  %v1429_v23 = vmax.f32 %v358_v59, %v360_v61  ;;  %v1431_v24 = vmax.f32 %v361_v62, %v363_v0  ;;  %v1433_v25 = vmax.f32 %v362_v63, %v364_v1 }
  0x34   : > { %v1435_v26 = vmax.f32 %v365_v2, %v367_v4  ;;  %v1437_v27 = vmax.f32 %v366_v3, %v368_v5  ;;  %v1439_v28 = vmax.f32 %v369_v6, %v371_v8  ;;  %v1441_v29 = vmax.f32 %v370_v7, %v372_v9 }
  0x35   : > { %v1443_v30 = vmax.f32 %v373_v10, %v375_v12  ;;  %v1445_v31 = vmax.f32 %v374_v11, %v376_v13  ;;  %v1447_v32 = vmax.f32 %v377_v14, %v379_v16  ;;  %v1449_v33 = vmax.f32 %v378_v15, %v380_v17 }
  0x36   : > { %v413_v34 = vrot.slane %v1419_v18, 2  ;;  %v414_v35 = vrot.slane %v1419_v18, 4  ;;  %v415_v36 = vrot.slane %v1419_v18, 6  ;;  %v416_v37 = vrot.slane %v1421_v19, 2 }
  0x37   : > { %v417_v38 = vrot.slane %v1421_v19, 4  ;;  %v418_v39 = vrot.slane %v1421_v19, 6  ;;  %v419_v40 = vrot.slane %v1423_v20, 2  ;;  %v420_v41 = vrot.slane %v1423_v20, 4 }
  0x38   : > { %v421_v42 = vrot.slane %v1423_v20, 6  ;;  %v422_v43 = vrot.slane %v1425_v21, 2  ;;  %v423_v44 = vrot.slane %v1425_v21, 4  ;;  %v424_v45 = vrot.slane %v1425_v21, 6 }
  0x39   : > { %v425_v46 = vrot.slane %v1427_v22, 2  ;;  %v426_v47 = vrot.slane %v1427_v22, 4  ;;  %v427_v48 = vrot.slane %v1427_v22, 6  ;;  %v428_v49 = vrot.slane %v1429_v23, 2 }
  0x3a   : > { %v429_v50 = vrot.slane %v1429_v23, 4  ;;  %v430_v51 = vrot.slane %v1429_v23, 6  ;;  %v431_v52 = vrot.slane %v1431_v24, 2  ;;  %v432_v53 = vrot.slane %v1431_v24, 4 }
  0x3b   : > { %v510_v9 = vsel %vm509_vm0, %v1419_v18, -inf  ;;  %v517_v10 = vsel %vm509_vm0, %v413_v34, -inf  ;;  %v524_v11 = vsel %vm509_vm0, %v414_v35, -inf  ;;  %v531_v12 = vsel %vm509_vm0, %v415_v36, -inf }
  0x3c   : > { %v511_v8 = vrot.slane %v510_v9, 4  ;;  %v518_v13 = vrot.slane %v517_v10, 4  ;;  %v525_v7 = vrot.slane %v524_v11, 4  ;;  %v532_v14 = vrot.slane %v531_v12, 4 }
  0x3d   : > { %v538_v15 = vsel %vm509_vm0, %v1421_v19, -inf  ;;  %v545_v16 = vsel %vm509_vm0, %v416_v37, -inf  ;;  %v552_v17 = vsel %vm509_vm0, %v417_v38, -inf  ;;  %v559_v6 = vsel %vm509_vm0, %v418_v39, -inf }
  0x3e   : > { %v512_v18 = vmax.f32 %v510_v9, %v511_v8  ;;  %v519_v5 = vmax.f32 %v517_v10, %v518_v13  ;;  %v526_v34 = vmax.f32 %v524_v11, %v525_v7  ;;  %v533_v4 = vmax.f32 %v531_v12, %v532_v14 }
  0x3f   : > { %v539_v35 = vrot.slane %v538_v15, 4  ;;  %v546_v3 = vrot.slane %v545_v16, 4  ;;  %v553_v36 = vrot.slane %v552_v17, 4  ;;  %v560_v2 = vrot.slane %v559_v6, 4 }
  0x40   : > { %v513_v1 = vrot.slane %v512_v18, 2  ;;  %v520_v0 = vrot.slane %v519_v5, 2  ;;  %v527_v63 = vrot.slane %v526_v34, 2  ;;  %v534_v62 = vrot.slane %v533_v4, 2 }
  0x41   : > { %v540_v61 = vmax.f32 %v538_v15, %v539_v35  ;;  %v547_v19 = vmax.f32 %v545_v16, %v546_v3  ;;  %v554_v60 = vmax.f32 %v552_v17, %v553_v36  ;;  %v561_v37 = vmax.f32 %v559_v6, %v560_v2 }
  0x42   : > { %v514_v59 = vmax.f32 %v512_v18, %v513_v1  ;;  %v521_v38 = vmax.f32 %v519_v5, %v520_v0  ;;  %v528_v58 = vmax.f32 %v526_v34, %v527_v63  ;;  %v535_v39 = vmax.f32 %v533_v4, %v534_v62 }
  0x43   : > { %v541_v8 = vrot.slane %v540_v61, 2  ;;  %v548_v9 = vrot.slane %v547_v19, 2  ;;  %v555_v7 = vrot.slane %v554_v60, 2  ;;  %v562_v10 = vrot.slane %v561_v37, 2 }
  0x44   : > { %v515_v11 = vrot.slane %v514_v59, 1  ;;  %v522_v12 = vrot.slane %v521_v38, 1  ;;  %v529_v13 = vrot.slane %v528_v58, 1  ;;  %v536_v14 = vrot.slane %v535_v39, 1 }
  0x45   : > { %v542_v57 = vmax.f32 %v540_v61, %v541_v8  ;;  %v549_v56 = vmax.f32 %v547_v19, %v548_v9  ;;  %v556_v55 = vmax.f32 %v554_v60, %v555_v7  ;;  %v563_v54 = vmax.f32 %v561_v37, %v562_v10 }
  0x46   : > { %v1509_v15 = vmax.f32 %v514_v59, %v515_v11  ;;  %v1511_v3 = vmax.f32 %v521_v38, %v522_v12  ;;  %v1513_v1 = vmax.f32 %v528_v58, %v529_v13  ;;  %v1515_v63 = vmax.f32 %v535_v39, %v536_v14 }
  0x47   : > { %v543_v62 = vrot.slane %v542_v57, 1  ;;  %v550_v0 = vrot.slane %v549_v56, 1  ;;  %v557_v2 = vrot.slane %v556_v55, 1  ;;  %v564_v4 = vrot.slane %v563_v54, 1 }
  0x48   : > { %v566_v5 = vsel %vm509_vm0, %v1423_v20, -inf  ;;  %v573_v60 = vsel %vm509_vm0, %v419_v40, -inf  ;;  %v580_v59 = vsel %vm509_vm0, %v420_v41, -inf  ;;  %v587_v58 = vsel %vm509_vm0, %v421_v42, -inf }
  0x49   : > { %v1528_v61 = vmax.f32 %v542_v57, %v543_v62  ;;  %v1530_v6 = vmax.f32 %v549_v56, %v550_v0  ;;  %v1532_v16 = vmax.f32 %v556_v55, %v557_v2  ;;  %v1534_v17 = vmax.f32 %v563_v54, %v564_v4 }
  0x4a   : > { %v567_v18 = vrot.slane %v566_v5, 4  ;;  %v574_v34 = vrot.slane %v573_v60, 4  ;;  %v581_v35 = vrot.slane %v580_v59, 4  ;;  %v588_v40 = vrot.slane %v587_v58, 4 }
  0x4b   : > { %1920 = vst [vmem:[#allocation2_spill] sm:$0xff] %v1534_v17  ;;  %v594_v36 = vsel %vm509_vm0, %v1425_v21, -inf  ;;  %v601_v20 = vsel %vm509_vm0, %v422_v43, -inf  ;;  %v608_v41 = vsel %vm509_vm0, %v423_v44, -inf  ;;  %v615_v42 = vsel %vm509_vm0, %v424_v45, -inf }
  0x4c   : > { %v568_v54 = vmax.f32 %v566_v5, %v567_v18  ;;  %v575_v55 = vmax.f32 %v573_v60, %v574_v34  ;;  %v582_v56 = vmax.f32 %v580_v59, %v581_v35  ;;  %v589_v57 = vmax.f32 %v587_v58, %v588_v40 }
  0x4d   : > { %v595_v19 = vrot.slane %v594_v36, 4  ;;  %v602_v37 = vrot.slane %v601_v20, 4  ;;  %v609_v38 = vrot.slane %v608_v41, 4  ;;  %v616_v39 = vrot.slane %v615_v42, 4 }
  0x4e   : > { %v569_v8 = vrot.slane %v568_v54, 2  ;;  %v576_v9 = vrot.slane %v575_v55, 2  ;;  %v583_v7 = vrot.slane %v582_v56, 2  ;;  %v590_v43 = vrot.slane %v589_v57, 2 }
  0x4f   : > { %v596_v10 = vmax.f32 %v594_v36, %v595_v19  ;;  %v603_v11 = vmax.f32 %v601_v20, %v602_v37  ;;  %v610_v12 = vmax.f32 %v608_v41, %v609_v38  ;;  %v617_v44 = vmax.f32 %v615_v42, %v616_v39 }
  0x50   : > { %v570_v13 = vmax.f32 %v568_v54, %v569_v8  ;;  %v577_v21 = vmax.f32 %v575_v55, %v576_v9  ;;  %v584_v14 = vmax.f32 %v582_v56, %v583_v7  ;;  %v591_v45 = vmax.f32 %v589_v57, %v590_v43 }
  0x51   : > { %v597_v62 = vrot.slane %v596_v10, 2  ;;  %v604_v0 = vrot.slane %v603_v11, 2  ;;  %v611_v2 = vrot.slane %v610_v12, 2  ;;  %v618_v4 = vrot.slane %v617_v44, 2 }
  0x52   : > { %v571_v5 = vrot.slane %v570_v13, 1  ;;  %v578_v60 = vrot.slane %v577_v21, 1  ;;  %v585_v59 = vrot.slane %v584_v14, 1  ;;  %v592_v58 = vrot.slane %v591_v45, 1 }
  0x53   : > { %v598_v18 = vmax.f32 %v596_v10, %v597_v62  ;;  %v605_v34 = vmax.f32 %v603_v11, %v604_v0  ;;  %v612_v35 = vmax.f32 %v610_v12, %v611_v2  ;;  %v619_v40 = vmax.f32 %v617_v44, %v618_v4 }
  0x54   : > { %v1547_v36 = vmax.f32 %v570_v13, %v571_v5  ;;  %v1549_v20 = vmax.f32 %v577_v21, %v578_v60  ;;  %v1551_v41 = vmax.f32 %v584_v14, %v585_v59  ;;  %v1553_v42 = vmax.f32 %v591_v45, %v592_v58 }
  0x55   : > { %v599_v54 = vrot.slane %v598_v18, 1  ;;  %v606_v55 = vrot.slane %v605_v34, 1  ;;  %v613_v56 = vrot.slane %v612_v35, 1  ;;  %v620_v57 = vrot.slane %v619_v40, 1 }
  0x56   : > { %v622_v19 = vsel %vm509_vm0, %v1427_v22, -inf  ;;  %v629_v37 = vsel %vm509_vm0, %v425_v46, -inf  ;;  %v636_v38 = vsel %vm509_vm0, %v426_v47, -inf  ;;  %v643_v39 = vsel %vm509_vm0, %v427_v48, -inf }
  0x57   : > { %v1566_v8 = vmax.f32 %v598_v18, %v599_v54  ;;  %v1568_v9 = vmax.f32 %v605_v34, %v606_v55  ;;  %v1570_v7 = vmax.f32 %v612_v35, %v613_v56  ;;  %v1572_v43 = vmax.f32 %v619_v40, %v620_v57 }
  0x58   : > { %v623_v10 = vrot.slane %v622_v19, 4  ;;  %v630_v11 = vrot.slane %v629_v37, 4  ;;  %v637_v12 = vrot.slane %v636_v38, 4  ;;  %v644_v46 = vrot.slane %v643_v39, 4 }
  0x59   : > { %1921 = vst [vmem:[#allocation3_spill] sm:$0xff] %v1568_v9  ;;  %v650_v44 = vsel %vm509_vm0, %v1429_v23, -inf  ;;  %v657_v22 = vsel %vm509_vm0, %v428_v49, -inf  ;;  %v664_v47 = vsel %vm509_vm0, %v429_v50, -inf  ;;  %v671_v48 = vsel %vm509_vm0, %v430_v51, -inf }
  0x5a   : > { %1922 = vst [vmem:[#allocation4_spill] sm:$0xff] %v1570_v7  ;;  %v624_v13 = vmax.f32 %v622_v19, %v623_v10  ;;  %v631_v21 = vmax.f32 %v629_v37, %v630_v11  ;;  %v638_v14 = vmax.f32 %v636_v38, %v637_v12  ;;  %v645_v45 = vmax.f32 %v643_v39, %v644_v46 }
  0x5b   : > { %1923 = vst [vmem:[#allocation5_spill] sm:$0xff] %v1572_v43  ;;  %v651_v62 = vrot.slane %v650_v44, 4  ;;  %v658_v0 = vrot.slane %v657_v22, 4  ;;  %v665_v2 = vrot.slane %v664_v47, 4  ;;  %v672_v4 = vrot.slane %v671_v48, 4 }
  0x5c   : > { %v625_v5 = vrot.slane %v624_v13, 2  ;;  %v632_v60 = vrot.slane %v631_v21, 2  ;;  %v639_v59 = vrot.slane %v638_v14, 2  ;;  %v646_v49 = vrot.slane %v645_v45, 2 }
  0x5d   : > { %v652_v58 = vmax.f32 %v650_v44, %v651_v62  ;;  %v659_v18 = vmax.f32 %v657_v22, %v658_v0  ;;  %v666_v34 = vmax.f32 %v664_v47, %v665_v2  ;;  %v673_v50 = vmax.f32 %v671_v48, %v672_v4 }
  0x5e   : > { %v626_v35 = vmax.f32 %v624_v13, %v625_v5  ;;  %v633_v23 = vmax.f32 %v631_v21, %v632_v60  ;;  %v640_v40 = vmax.f32 %v638_v14, %v639_v59  ;;  %v647_v51 = vmax.f32 %v645_v45, %v646_v49 }
  0x5f   : > { %v653_v54 = vrot.slane %v652_v58, 2  ;;  %v660_v55 = vrot.slane %v659_v18, 2  ;;  %v667_v56 = vrot.slane %v666_v34, 2  ;;  %v674_v57 = vrot.slane %v673_v50, 2 }
  0x60   : > { %v627_v19 = vrot.slane %v626_v35, 1  ;;  %v634_v37 = vrot.slane %v633_v23, 1  ;;  %v641_v38 = vrot.slane %v640_v40, 1  ;;  %v648_v39 = vrot.slane %v647_v51, 1 }
  0x61   : > { %v654_v10 = vmax.f32 %v652_v58, %v653_v54  ;;  %v661_v11 = vmax.f32 %v659_v18, %v660_v55  ;;  %v668_v12 = vmax.f32 %v666_v34, %v667_v56  ;;  %v675_v46 = vmax.f32 %v673_v50, %v674_v57 }
  0x62   : > { %v1585_v44 = vmax.f32 %v626_v35, %v627_v19  ;;  %v1587_v22 = vmax.f32 %v633_v23, %v634_v37  ;;  %v1589_v47 = vmax.f32 %v640_v40, %v641_v38  ;;  %v1591_v48 = vmax.f32 %v647_v51, %v648_v39 }
  0x63   : > { %v655_v13 = vrot.slane %v654_v10, 1  ;;  %v662_v21 = vrot.slane %v661_v11, 1  ;;  %v669_v14 = vrot.slane %v668_v12, 1  ;;  %v676_v45 = vrot.slane %v675_v46, 1 }
  0x64   : > { %v678_v62 = vsel %vm509_vm0, %v1431_v24, -inf  ;;  %v685_v0 = vsel %vm509_vm0, %v431_v52, -inf  ;;  %v692_v2 = vsel %vm509_vm0, %v432_v53, -inf  ;;  %v1924_v4 = vrot.slane %v1431_v24, 6 }
  0x65   : > { %v1604_v60 = vmax.f32 %v654_v10, %v655_v13  ;;  %v1606_v59 = vmax.f32 %v661_v11, %v662_v21  ;;  %v1608_v49 = vmax.f32 %v668_v12, %v669_v14  ;;  %v1610_v58 = vmax.f32 %v675_v46, %v676_v45 }
  0x66   : > { %v699_v5 = vsel %vm509_vm0, %v1924_v4, -inf  ;;  %v679_v18 = vrot.slane %v678_v62, 4  ;;  %v686_v34 = vrot.slane %v685_v0, 4  ;;  %v693_v50 = vrot.slane %v692_v2, 4 }
  0x67   : > { %1925 = vst [vmem:[#allocation6_spill] sm:$0xff] %v1606_v59  ;;  %v700_v52 = vrot.slane %v699_v5, 4  ;;  %v706_v35 = vsel %vm509_vm0, %v1433_v25, -inf  ;;  %v1928_v53 = vrot.slane %v1433_v25, 2  ;;  %v1929_v23 = vrot.slane %v1433_v25, 4 }
  0x68   : > { %1926 = vst [vmem:[#allocation7_spill] sm:$0xff] %v1608_v49  ;;  %v1930_v51 = vrot.slane %v1433_v25, 6  ;;  %v680_v55 = vmax.f32 %v678_v62, %v679_v18  ;;  %v687_v56 = vmax.f32 %v685_v0, %v686_v34  ;;  %v694_v57 = vmax.f32 %v692_v2, %v693_v50 }
  0x69   : > { %1927 = vst [vmem:[#allocation8_spill] sm:$0xff] %v1610_v58  ;;  %v713_v24 = vsel %vm509_vm0, %v1928_v53, -inf  ;;  %v720_v40 = vsel %vm509_vm0, %v1929_v23, -inf  ;;  %v701_v19 = vmax.f32 %v699_v5, %v700_v52  ;;  %v707_v37 = vrot.slane %v706_v35, 4 }
  0x6a   : > { %v727_v54 = vsel %vm509_vm0, %v1930_v51, -inf  ;;  %v714_v38 = vrot.slane %v713_v24, 4  ;;  %v721_v39 = vrot.slane %v720_v40, 4  ;;  %v681_v11 = vrot.slane %v680_v55, 2 }
  0x6b   : > { %v728_v10 = vrot.slane %v727_v54, 4  ;;  %v688_v12 = vrot.slane %v687_v56, 2  ;;  %v695_v46 = vrot.slane %v694_v57, 2  ;;  %v702_v13 = vrot.slane %v701_v19, 2 }
  0x6c   : > { %v708_v21 = vmax.f32 %v706_v35, %v707_v37  ;;  %v715_v14 = vmax.f32 %v713_v24, %v714_v38  ;;  %v722_v45 = vmax.f32 %v720_v40, %v721_v39  ;;  %v682_v53 = vmax.f32 %v680_v55, %v681_v11 }
  0x6d   : > { %v729_v4 = vmax.f32 %v727_v54, %v728_v10  ;;  %v689_v25 = vmax.f32 %v687_v56, %v688_v12  ;;  %v696_v23 = vmax.f32 %v694_v57, %v695_v46  ;;  %v703_v51 = vmax.f32 %v701_v19, %v702_v13 }
  0x6e   : > { %v709_v62 = vrot.slane %v708_v21, 2  ;;  %v716_v0 = vrot.slane %v715_v14, 2  ;;  %v723_v2 = vrot.slane %v722_v45, 2  ;;  %v683_v18 = vrot.slane %v682_v53, 1 }
  0x6f   : > { %v730_v5 = vrot.slane %v729_v4, 2  ;;  %v690_v34 = vrot.slane %v689_v25, 1  ;;  %v697_v50 = vrot.slane %v696_v23, 1  ;;  %v704_v52 = vrot.slane %v703_v51, 1 }
  0x70   : > { %v710_v58 = vmax.f32 %v708_v21, %v709_v62  ;;  %v717_v43 = vmax.f32 %v715_v14, %v716_v0  ;;  %v724_v49 = vmax.f32 %v722_v45, %v723_v2  ;;  %v1623_v35 = vmax.f32 %v682_v53, %v683_v18 }
  0x71   : > { %v731_v7 = vmax.f32 %v729_v4, %v730_v5  ;;  %v1625_v24 = vmax.f32 %v689_v25, %v690_v34  ;;  %v1627_v40 = vmax.f32 %v696_v23, %v697_v50  ;;  %v1629_v54 = vmax.f32 %v703_v51, %v704_v52 }
  0x72   : > { %v711_v55 = vrot.slane %v710_v58, 1  ;;  %v718_v56 = vrot.slane %v717_v43, 1  ;;  %v725_v57 = vrot.slane %v724_v49, 1  ;;  %v734_v37 = vsel %vm509_vm0, %v1435_v26, -inf }
  0x73   : > { %v732_v19 = vrot.slane %v731_v7, 1  ;;  %v1931_v38 = vrot.slane %v1435_v26, 2  ;;  %v1932_v10 = vrot.slane %v1435_v26, 4  ;;  %v1933_v12 = vrot.slane %v1435_v26, 6 }
  0x74   : > { %v1642_v13 = vmax.f32 %v710_v58, %v711_v55  ;;  %v1644_v21 = vmax.f32 %v717_v43, %v718_v56  ;;  %v1646_v14 = vmax.f32 %v724_v49, %v725_v57  ;;  %v735_v4 = vrot.slane %v734_v37, 4 }
  0x75   : > { %v741_v39 = vsel %vm509_vm0, %v1931_v38, -inf  ;;  %v748_v11 = vsel %vm509_vm0, %v1932_v10, -inf  ;;  %v755_v46 = vsel %vm509_vm0, %v1933_v12, -inf  ;;  %v1648_v45 = vmax.f32 %v731_v7, %v732_v19 }
  0x76   : > { %1934 = vst [vmem:[#allocation9_spill] sm:$0xff] %v1644_v21  ;;  %v742_v53 = vrot.slane %v741_v39, 4  ;;  %v749_v25 = vrot.slane %v748_v11, 4  ;;  %v756_v23 = vrot.slane %v755_v46, 4  ;;  %v762_v51 = vsel %vm509_vm0, %v1437_v27, -inf }
  0x77   : > { %1935 = vst [vmem:[#allocation10_spill] sm:$0xff] %v1646_v14  ;;  %v1937_v62 = vrot.slane %v1437_v27, 2  ;;  %v1938_v58 = vrot.slane %v1437_v27, 4  ;;  %v1939_v49 = vrot.slane %v1437_v27, 6  ;;  %v736_v0 = vmax.f32 %v734_v37, %v735_v4 }
  0x78   : > { %1936 = vst [vmem:[#allocation11_spill] sm:$0xff] %v1648_v45  ;;  %v743_v2 = vmax.f32 %v741_v39, %v742_v53  ;;  %v750_v5 = vmax.f32 %v748_v11, %v749_v25  ;;  %v757_v18 = vmax.f32 %v755_v46, %v756_v23  ;;  %v763_v34 = vrot.slane %v762_v51, 4 }
  0x79   : > { %v769_v26 = vsel %vm509_vm0, %v1937_v62, -inf  ;;  %v776_v43 = vsel %vm509_vm0, %v1938_v58, -inf  ;;  %v783_v7 = vsel %vm509_vm0, %v1939_v49, -inf  ;;  %v737_v56 = vrot.slane %v736_v0, 2 }
  0x7a   : > { %v770_v50 = vrot.slane %v769_v26, 4  ;;  %v777_v52 = vrot.slane %v776_v43, 4  ;;  %v784_v55 = vrot.slane %v783_v7, 4  ;;  %v744_v57 = vrot.slane %v743_v2, 2 }
  0x7b   : > { %v751_v19 = vrot.slane %v750_v5, 2  ;;  %v758_v38 = vrot.slane %v757_v18, 2  ;;  %v764_v10 = vmax.f32 %v762_v51, %v763_v34  ;;  %v738_v45 = vmax.f32 %v736_v0, %v737_v56 }
  0x7c   : > { %v771_v12 = vmax.f32 %v769_v26, %v770_v50  ;;  %v778_v62 = vmax.f32 %v776_v43, %v777_v52  ;;  %v785_v58 = vmax.f32 %v783_v7, %v784_v55  ;;  %v745_v27 = vmax.f32 %v743_v2, %v744_v57 }
  0x7d   : > { %v752_v14 = vmax.f32 %v750_v5, %v751_v19  ;;  %v759_v49 = vmax.f32 %v757_v18, %v758_v38  ;;  %v765_v37 = vrot.slane %v764_v10, 2  ;;  %v739_v4 = vrot.slane %v738_v45, 1 }
  0x7e   : > { %v772_v39 = vrot.slane %v771_v12, 2  ;;  %v779_v11 = vrot.slane %v778_v62, 2  ;;  %v786_v46 = vrot.slane %v785_v58, 2  ;;  %v746_v53 = vrot.slane %v745_v27, 1 }
  0x7f   : > { %v753_v25 = vrot.slane %v752_v14, 1  ;;  %v760_v23 = vrot.slane %v759_v49, 1  ;;  %v766_v17 = vmax.f32 %v764_v10, %v765_v37  ;;  %v1661_v51 = vmax.f32 %v738_v45, %v739_v4 }
  0x80   : > { %v773_v21 = vmax.f32 %v771_v12, %v772_v39  ;;  %v780_v59 = vmax.f32 %v778_v62, %v779_v11  ;;  %v787_v9 = vmax.f32 %v785_v58, %v786_v46  ;;  %v1663_v26 = vmax.f32 %v745_v27, %v746_v53 }
  0x81   : > { %v1665_v43 = vmax.f32 %v752_v14, %v753_v25  ;;  %v1667_v7 = vmax.f32 %v759_v49, %v760_v23  ;;  %v767_v0 = vrot.slane %v766_v17, 1  ;;  %v790_v34 = vsel %vm509_vm0, %v1439_v28, -inf }
  0x82   : > { %v774_v2 = vrot.slane %v773_v21, 1  ;;  %v781_v5 = vrot.slane %v780_v59, 1  ;;  %v788_v18 = vrot.slane %v787_v9, 1  ;;  %v1942_v50 = vrot.slane %v1439_v28, 2 }
  0x83   : > { %1940 = vst [vmem:[#allocation12_spill] sm:$0xff] %v1665_v43  ;;  %v1943_v45 = vrot.slane %v1439_v28, 4  ;;  %v1944_v14 = vrot.slane %v1439_v28, 6  ;;  %v1680_v57 = vmax.f32 %v766_v17, %v767_v0  ;;  %v791_v12 = vrot.slane %v790_v34, 4 }
  0x84   : > { %1941 = vst [vmem:[#allocation13_spill] sm:$0xff] %v1667_v7  ;;  %v797_v52 = vsel %vm509_vm0, %v1942_v50, -inf  ;;  %v1682_v19 = vmax.f32 %v773_v21, %v774_v2  ;;  %v1684_v38 = vmax.f32 %v780_v59, %v781_v5  ;;  %v1686_v10 = vmax.f32 %v787_v9, %v788_v18 }
  0x85   : > { %v804_v55 = vsel %vm509_vm0, %v1943_v45, -inf  ;;  %v811_v56 = vsel %vm509_vm0, %v1944_v14, -inf  ;;  %1945 = vst [vmem:[#allocation14_spill] sm:$0xff] %v1680_v57  ;;  %v798_v62 = vrot.slane %v797_v52, 4  ;;  %v818_v49 = vsel %vm509_vm0, %v1441_v29, -inf }
  0x86   : > { %1946 = vst [vmem:[#allocation15_spill] sm:$0xff] %v1682_v19  ;;  %v805_v58 = vrot.slane %v804_v55, 4  ;;  %v812_v27 = vrot.slane %v811_v56, 4  ;;  %v1949_v37 = vrot.slane %v1441_v29, 2  ;;  %v1950_v17 = vrot.slane %v1441_v29, 4 }
  0x87   : > { %1947 = vst [vmem:[#allocation16_spill] sm:$0xff] %v1684_v38  ;;  %v1951_v59 = vrot.slane %v1441_v29, 6  ;;  %v792_v39 = vmax.f32 %v790_v34, %v791_v12  ;;  %v799_v11 = vmax.f32 %v797_v52, %v798_v62  ;;  %v819_v53 = vrot.slane %v818_v49, 4 }
  0x88   : > { %1948 = vst [vmem:[#allocation17_spill] sm:$0xff] %v1686_v10  ;;  %v825_v28 = vsel %vm509_vm0, %v1949_v37, -inf  ;;  %v832_v21 = vsel %vm509_vm0, %v1950_v17, -inf  ;;  %v806_v46 = vmax.f32 %v804_v55, %v805_v58  ;;  %v813_v4 = vmax.f32 %v811_v56, %v812_v27 }
  0x89   : > { %v839_v9 = vsel %vm509_vm0, %v1951_v59, -inf  ;;  %v826_v25 = vrot.slane %v825_v28, 4  ;;  %v833_v23 = vrot.slane %v832_v21, 4  ;;  %v793_v2 = vrot.slane %v792_v39, 2 }
  0x8a   : > { %v840_v0 = vrot.slane %v839_v9, 4  ;;  %v800_v5 = vrot.slane %v799_v11, 2  ;;  %v807_v18 = vrot.slane %v806_v46, 2  ;;  %v814_v50 = vrot.slane %v813_v4, 2 }
  0x8b   : > { %v820_v45 = vmax.f32 %v818_v49, %v819_v53  ;;  %v827_v14 = vmax.f32 %v825_v28, %v826_v25  ;;  %v834_v37 = vmax.f32 %v832_v21, %v833_v23  ;;  %v794_v10 = vmax.f32 %v792_v39, %v793_v2 }
  0x8c   : > { %v841_v17 = vmax.f32 %v839_v9, %v840_v0  ;;  %v801_v29 = vmax.f32 %v799_v11, %v800_v5  ;;  %v808_v38 = vmax.f32 %v806_v46, %v807_v18  ;;  %v815_v59 = vmax.f32 %v813_v4, %v814_v50 }
  0x8d   : > { %v821_v34 = vrot.slane %v820_v45, 2  ;;  %v828_v52 = vrot.slane %v827_v14, 2  ;;  %v835_v55 = vrot.slane %v834_v37, 2  ;;  %v795_v12 = vrot.slane %v794_v10, 1 }
  0x8e   : > { %v842_v56 = vrot.slane %v841_v17, 2  ;;  %v802_v62 = vrot.slane %v801_v29, 1  ;;  %v809_v58 = vrot.slane %v808_v38, 1  ;;  %v816_v27 = vrot.slane %v815_v59, 1 }
  0x8f   : > { %v822_v19 = vmax.f32 %v820_v45, %v821_v34  ;;  %v829_v57 = vmax.f32 %v827_v14, %v828_v52  ;;  %v836_v7 = vmax.f32 %v834_v37, %v835_v55  ;;  %v1699_v49 = vmax.f32 %v794_v10, %v795_v12 }
  0x90   : > { %v843_v43 = vmax.f32 %v841_v17, %v842_v56  ;;  %v1701_v28 = vmax.f32 %v801_v29, %v802_v62  ;;  %v1703_v21 = vmax.f32 %v808_v38, %v809_v58  ;;  %v1705_v9 = vmax.f32 %v815_v59, %v816_v27 }
  0x91   : > { %v823_v39 = vrot.slane %v822_v19, 1  ;;  %v830_v11 = vrot.slane %v829_v57, 1  ;;  %v837_v46 = vrot.slane %v836_v7, 1  ;;  %v846_v53 = vsel %vm509_vm0, %v1443_v30, -inf }
  0x92   : > { %1952 = vst [vmem:[#allocation18_spill] sm:$0xff] %v1703_v21  ;;  %v844_v4 = vrot.slane %v843_v43, 1  ;;  %v1954_v25 = vrot.slane %v1443_v30, 2  ;;  %v1955_v10 = vrot.slane %v1443_v30, 4  ;;  %v1956_v38 = vrot.slane %v1443_v30, 6 }
  0x93   : > { %1953 = vst [vmem:[#allocation19_spill] sm:$0xff] %v1705_v9  ;;  %v1718_v5 = vmax.f32 %v822_v19, %v823_v39  ;;  %v1720_v18 = vmax.f32 %v829_v57, %v830_v11  ;;  %v1722_v50 = vmax.f32 %v836_v7, %v837_v46  ;;  %v847_v14 = vrot.slane %v846_v53, 4 }
  0x94   : > { %v853_v23 = vsel %vm509_vm0, %v1954_v25, -inf  ;;  %v860_v0 = vsel %vm509_vm0, %v1955_v10, -inf  ;;  %v867_v2 = vsel %vm509_vm0, %v1956_v38, -inf  ;;  %v1724_v45 = vmax.f32 %v843_v43, %v844_v4 }
  0x95   : > { %1957 = vst [vmem:[#allocation20_spill] sm:$0xff] %v1718_v5  ;;  %v854_v37 = vrot.slane %v853_v23, 4  ;;  %v861_v17 = vrot.slane %v860_v0, 4  ;;  %v868_v29 = vrot.slane %v867_v2, 4  ;;  %v874_v59 = vsel %vm509_vm0, %v1445_v31, -inf }
  0x96   : > { %1958 = vst [vmem:[#allocation21_spill] sm:$0xff] %v1720_v18  ;;  %v1961_v34 = vrot.slane %v1445_v31, 2  ;;  %v1962_v19 = vrot.slane %v1445_v31, 4  ;;  %v1963_v7 = vrot.slane %v1445_v31, 6  ;;  %v848_v52 = vmax.f32 %v846_v53, %v847_v14 }
  0x97   : > { %1959 = vst [vmem:[#allocation22_spill] sm:$0xff] %v1722_v50  ;;  %v855_v55 = vmax.f32 %v853_v23, %v854_v37  ;;  %v862_v56 = vmax.f32 %v860_v0, %v861_v17  ;;  %v869_v12 = vmax.f32 %v867_v2, %v868_v29  ;;  %v875_v62 = vrot.slane %v874_v59, 4 }
  0x98   : > { %1960 = vst [vmem:[#allocation23_spill] sm:$0xff] %v1724_v45  ;;  %v881_v30 = vsel %vm509_vm0, %v1961_v34, -inf  ;;  %v888_v57 = vsel %vm509_vm0, %v1962_v19, -inf  ;;  %v895_v43 = vsel %vm509_vm0, %v1963_v7, -inf  ;;  %v849_v11 = vrot.slane %v848_v52, 2 }
  0x99   : > { %v882_v58 = vrot.slane %v881_v30, 4  ;;  %v889_v27 = vrot.slane %v888_v57, 4  ;;  %v896_v39 = vrot.slane %v895_v43, 4  ;;  %v856_v46 = vrot.slane %v855_v55, 2 }
  0x9a   : > { %v863_v4 = vrot.slane %v862_v56, 2  ;;  %v870_v25 = vrot.slane %v869_v12, 2  ;;  %v876_v10 = vmax.f32 %v874_v59, %v875_v62  ;;  %v850_v45 = vmax.f32 %v848_v52, %v849_v11 }
  0x9b   : > { %v883_v38 = vmax.f32 %v881_v30, %v882_v58  ;;  %v890_v34 = vmax.f32 %v888_v57, %v889_v27  ;;  %v897_v19 = vmax.f32 %v895_v43, %v896_v39  ;;  %v857_v31 = vmax.f32 %v855_v55, %v856_v46 }
  0x9c   : > { %v864_v50 = vmax.f32 %v862_v56, %v863_v4  ;;  %v871_v7 = vmax.f32 %v869_v12, %v870_v25  ;;  %v877_v53 = vrot.slane %v876_v10, 2  ;;  %v851_v14 = vrot.slane %v850_v45, 1 }
  0x9d   : > { %v884_v23 = vrot.slane %v883_v38, 2  ;;  %v891_v0 = vrot.slane %v890_v34, 2  ;;  %v898_v2 = vrot.slane %v897_v19, 2  ;;  %v858_v37 = vrot.slane %v857_v31, 1 }
  0x9e   : > { %v865_v17 = vrot.slane %v864_v50, 1  ;;  %v872_v29 = vrot.slane %v871_v7, 1  ;;  %v878_v18 = vmax.f32 %v876_v10, %v877_v53  ;;  %v1737_v59 = vmax.f32 %v850_v45, %v851_v14 }
  0x9f   : > { %v885_v5 = vmax.f32 %v883_v38, %v884_v23  ;;  %v892_v9 = vmax.f32 %v890_v34, %v891_v0  ;;  %v899_v21 = vmax.f32 %v897_v19, %v898_v2  ;;  %v1739_v30 = vmax.f32 %v857_v31, %v858_v37 }
  0xa0   : > { %v1741_v57 = vmax.f32 %v864_v50, %v865_v17  ;;  %v1743_v43 = vmax.f32 %v871_v7, %v872_v29  ;;  %v879_v52 = vrot.slane %v878_v18, 1  ;;  %v902_v62 = vsel %vm509_vm0, %v1447_v32, -inf }
  0xa1   : > { %v886_v55 = vrot.slane %v885_v5, 1  ;;  %v893_v56 = vrot.slane %v892_v9, 1  ;;  %v900_v12 = vrot.slane %v899_v21, 1  ;;  %v1966_v58 = vrot.slane %v1447_v32, 2 }
  0xa2   : > { %1964 = vst [vmem:[#allocation24_spill] sm:$0xff] %v1741_v57  ;;  %v1967_v45 = vrot.slane %v1447_v32, 4  ;;  %v1968_v50 = vrot.slane %v1447_v32, 6  ;;  %v1756_v46 = vmax.f32 %v878_v18, %v879_v52  ;;  %v903_v38 = vrot.slane %v902_v62, 4 }
  0xa3   : > { %1965 = vst [vmem:[#allocation25_spill] sm:$0xff] %v1743_v43  ;;  %v909_v27 = vsel %vm509_vm0, %v1966_v58, -inf  ;;  %v1758_v4 = vmax.f32 %v885_v5, %v886_v55  ;;  %v1760_v25 = vmax.f32 %v892_v9, %v893_v56  ;;  %v1762_v10 = vmax.f32 %v899_v21, %v900_v12 }
  0xa4   : > { %v916_v39 = vsel %vm509_vm0, %v1967_v45, -inf  ;;  %v923_v11 = vsel %vm509_vm0, %v1968_v50, -inf  ;;  %1969 = vst [vmem:[#allocation26_spill] sm:$0xff] %v1756_v46  ;;  %v910_v34 = vrot.slane %v909_v27, 4  ;;  %v930_v7 = vsel %vm509_vm0, %v1449_v33, -inf }
  0xa5   : > { %1970 = vst [vmem:[#allocation27_spill] sm:$0xff] %v1758_v4  ;;  %v917_v19 = vrot.slane %v916_v39, 4  ;;  %v924_v31 = vrot.slane %v923_v11, 4  ;;  %v1973_v53 = vrot.slane %v1449_v33, 2  ;;  %v1974_v18 = vrot.slane %v1449_v33, 4 }
  0xa6   : > { %1971 = vst [vmem:[#allocation28_spill] sm:$0xff] %v1760_v25  ;;  %v1975_v9 = vrot.slane %v1449_v33, 6  ;;  %v904_v23 = vmax.f32 %v902_v62, %v903_v38  ;;  %v911_v0 = vmax.f32 %v909_v27, %v910_v34  ;;  %v931_v37 = vrot.slane %v930_v7, 4 }
  0xa7   : > { %1972 = vst [vmem:[#allocation29_spill] sm:$0xff] %v1762_v10  ;;  %v937_v32 = vsel %vm509_vm0, %v1973_v53, -inf  ;;  %v944_v5 = vsel %vm509_vm0, %v1974_v18, -inf  ;;  %v918_v2 = vmax.f32 %v916_v39, %v917_v19  ;;  %v925_v14 = vmax.f32 %v923_v11, %v924_v31 }
  0xa8   : > { %v951_v21 = vsel %vm509_vm0, %v1975_v9, -inf  ;;  %v938_v17 = vrot.slane %v937_v32, 4  ;;  %v945_v29 = vrot.slane %v944_v5, 4  ;;  %v905_v55 = vrot.slane %v904_v23, 2 }
  0xa9   : > { %v952_v52 = vrot.slane %v951_v21, 4  ;;  %v912_v56 = vrot.slane %v911_v0, 2  ;;  %v919_v12 = vrot.slane %v918_v2, 2  ;;  %v926_v58 = vrot.slane %v925_v14, 2 }
  0xaa   : > { %v932_v45 = vmax.f32 %v930_v7, %v931_v37  ;;  %v939_v50 = vmax.f32 %v937_v32, %v938_v17  ;;  %v946_v53 = vmax.f32 %v944_v5, %v945_v29  ;;  %v906_v10 = vmax.f32 %v904_v23, %v905_v55 }
  0xab   : > { %v953_v18 = vmax.f32 %v951_v21, %v952_v52  ;;  %v913_v33 = vmax.f32 %v911_v0, %v912_v56  ;;  %v920_v25 = vmax.f32 %v918_v2, %v919_v12  ;;  %v927_v9 = vmax.f32 %v925_v14, %v926_v58 }
  0xac   : > { %v933_v62 = vrot.slane %v932_v45, 2  ;;  %v940_v27 = vrot.slane %v939_v50, 2  ;;  %v947_v39 = vrot.slane %v946_v53, 2  ;;  %v907_v38 = vrot.slane %v906_v10, 1 }
  0xad   : > { %v954_v11 = vrot.slane %v953_v18, 2  ;;  %v914_v34 = vrot.slane %v913_v33, 1  ;;  %v921_v19 = vrot.slane %v920_v25, 1  ;;  %v928_v31 = vrot.slane %v927_v9, 1 }
  0xae   : > { %v934_v4 = vmax.f32 %v932_v45, %v933_v62  ;;  %v941_v46 = vmax.f32 %v939_v50, %v940_v27  ;;  %v948_v43 = vmax.f32 %v946_v53, %v947_v39  ;;  %v908_v7 = vmax.f32 %v906_v10, %v907_v38  ;;  %v1983_v45 = vld [vmem:[#allocation5_spill] sm:$0xff]  ;;  %v1984_v53 = vld [vmem:[#allocation8_spill] sm:$0xff] }
  0xaf   : > { %v955_v57 = vmax.f32 %v953_v18, %v954_v11  ;;  %v915_v32 = vmax.f32 %v913_v33, %v914_v34  ;;  %v922_v5 = vmax.f32 %v920_v25, %v921_v19  ;;  %v929_v21 = vmax.f32 %v927_v9, %v928_v31  ;;  %v1985_v33 = vld [vmem:[#allocation11_spill] sm:$0xff]  ;;  %v1986_v27 = vld [vmem:[#allocation12_spill] sm:$0xff]  ;;  %v1987_v19 = vld [vmem:[#allocation13_spill] sm:$0xff] }
  0xb0   : > { %v935_v23 = vrot.slane %v934_v4, 1  ;;  %v942_v0 = vrot.slane %v941_v46, 1  ;;  %v949_v2 = vrot.slane %v948_v43, 1  ;;  %v1023_v25 = vsel %vm1022_vm1, %v1511_v3, %v1509_v15 }
  0xb1   : > { %v956_v14 = vrot.slane %v955_v57, 1  ;;  %v1025_v10 = vsel %vm1024_vm2, %v1513_v1, %v1023_v25  ;;  %v1057_v62 = vsel %vm1022_vm1, %v1663_v26, %v1661_v51  ;;  %v1064_v11 = vsel %vm1022_vm1, %v1701_v28, %v1699_v49  ;;  %v1988_v51 = vld [vmem:[#allocation18_spill] sm:$0xff]  ;;  %v1993_v25 = vld [vmem:[#allocation15_spill] sm:$0xff] }
  0xb2   : > { %v936_v37 = vmax.f32 %v934_v4, %v935_v23  ;;  %v943_v17 = vmax.f32 %v941_v46, %v942_v0  ;;  %v1775_v29 = vmax.f32 %v948_v43, %v949_v2  ;;  %v1036_v4 = vsel %vm1022_vm1, %v1549_v20, %v1547_v36  ;;  %v1989_v23 = vld [vmem:[#allocation24_spill] sm:$0xff]  ;;  %v1990_v49 = vld [vmem:[#allocation14_spill] sm:$0xff] }
  0xb3   : > { %v1777_v52 = vmax.f32 %v955_v57, %v956_v14  ;;  %v1043_v57 = vsel %vm1022_vm1, %v1587_v22, %v1585_v44  ;;  %v1050_v43 = vsel %vm1022_vm1, %v1625_v24, %v1623_v35  ;;  %v1027_v15 = vsel %vm1026_vm3, %v1515_v63, %v1025_v10  ;;  %v1976_v35 = vld [vmem:[#allocation3_spill] sm:$0xff] }
  0xb4   : > { %v1037_v3 = vsel %vm1024_vm2, %v1551_v41, %v1036_v4  ;;  %v1044_v1 = vsel %vm1024_vm2, %v1589_v47, %v1043_v57  ;;  %v1051_v36 = vsel %vm1024_vm2, %v1627_v40, %v1050_v43  ;;  %v1029_v20 = vsel %vm1028_vm4, %v1528_v61, %v1027_v15  ;;  %v1977_v40 = vld [vmem:[#allocation6_spill] sm:$0xff]  ;;  %v1991_v14 = vld [vmem:[#allocation19_spill] sm:$0xff]  ;;  %v1994_v4 = vld [vmem:[#allocation20_spill] sm:$0xff] }
  0xb5   : > { %v1038_v44 = vsel %vm1026_vm3, %v1553_v42, %v1037_v3  ;;  %v1045_v22 = vsel %vm1026_vm3, %v1591_v48, %v1044_v1  ;;  %v1052_v63 = vsel %vm1026_vm3, %v1629_v54, %v1051_v36  ;;  %v1031_v41 = vsel %vm1030_vm5, %v1530_v6, %v1029_v20  ;;  %v1978_v54 = vld [vmem:[#allocation9_spill] sm:$0xff]  ;;  %v1995_v57 = vld [vmem:[#allocation26_spill] sm:$0xff]  ;;  %v1996_v3 = vld [vmem:[#allocation16_spill] sm:$0xff] }
  0xb6   : > { %v1039_v61 = vsel %vm1028_vm4, %v1566_v8, %v1038_v44  ;;  %v1046_v42 = vsel %vm1028_vm4, %v1604_v60, %v1045_v22  ;;  %v1053_v47 = vsel %vm1028_vm4, %v1642_v13, %v1052_v63  ;;  %v1033_v48 = vsel %vm1032_vm6, %v1532_v16, %v1031_v41  ;;  %v1979_v8 = vld [vmem:[#allocation2_spill] sm:$0xff]  ;;  %v1980_v60 = vld [vmem:[#allocation4_spill] sm:$0xff]  ;;  %v1981_v13 = vld [vmem:[#allocation7_spill] sm:$0xff] }
  0xb7   : > { %v1040_v24 = vsel %vm1030_vm5, %v1976_v35, %v1039_v61  ;;  %v1047_v6 = vsel %vm1030_vm5, %v1977_v40, %v1046_v42  ;;  %v1054_v46 = vsel %vm1030_vm5, %v1978_v54, %v1053_v47  ;;  %v1035_v55 = vsel %vm1034_vm7, %v1979_v8, %v1033_v48  ;;  %v1982_v16 = vld [vmem:[#allocation10_spill] sm:$0xff]  ;;  %v1998_v20 = vld [vmem:[#allocation27_spill] sm:$0xff]  ;;  %v1999_v63 = vld [vmem:[#allocation17_spill] sm:$0xff] }
  0xb8   : > { %v1041_v56 = vsel %vm1032_vm6, %v1980_v60, %v1040_v24  ;;  %v1048_v12 = vsel %vm1032_vm6, %v1981_v13, %v1047_v6  ;;  %v1055_v58 = vsel %vm1032_vm6, %v1982_v16, %v1054_v46  ;;  %1093 = vst [vmem:[%s1813_s27] sm:$0xff] %v1035_v55  ;;  %v1058_v39 = vsel %vm1024_vm2, %v1986_v27, %v1057_v62  ;;  %v2000_v61 = vld [vmem:[#allocation22_spill] sm:$0xff]  ;;  %v2001_v47 = vld [vmem:[#allocation28_spill] sm:$0xff]  ;;  %v2002_v35 = vld [vmem:[#allocation23_spill] sm:$0xff] }
  0xb9   : > { %v1042_v50 = vsel %vm1034_vm7, %v1983_v45, %v1041_v56  ;;  %v1049_v18 = vsel %vm1034_vm7, %v1984_v53, %v1048_v12  ;;  %v1056_v9 = vsel %vm1034_vm7, %v1985_v33, %v1055_v58  ;;  %v1071_v38 = vsel %vm1022_vm1, %v1739_v30, %v1737_v59  ;;  %v1992_v30 = vld [vmem:[#allocation25_spill] sm:$0xff] }
  0xba   : > { %v1078_v34 = vsel %vm1022_vm1, %v915_v32, %v908_v7  ;;  %1094 = vst [vmem:[%s1813_s27 + $0x8] sm:$0xff] %v1042_v50  ;;  %v1059_v31 = vsel %vm1026_vm3, %v1987_v19, %v1058_v39  ;;  %v1065_v26 = vsel %vm1024_vm2, %v1988_v51, %v1064_v11  ;;  %v1072_v0 = vsel %vm1024_vm2, %v1989_v23, %v1071_v38  ;;  %v2003_v40 = vld [vmem:[#allocation29_spill] sm:$0xff] }
  0xbb   : > { %v1079_v2 = vsel %vm1024_vm2, %v922_v5, %v1078_v34  ;;  %1095 = vst [vmem:[%s1813_s27 + $0x10] sm:$0xff] %v1049_v18  ;;  %v1060_v28 = vsel %vm1028_vm4, %v1990_v49, %v1059_v31  ;;  %v1066_v59 = vsel %vm1026_vm3, %v1991_v14, %v1065_v26  ;;  %v1073_v7 = vsel %vm1026_vm3, %v1992_v30, %v1072_v0 }
  0xbc   : > { %v1080_v32 = vsel %vm1026_vm3, %v929_v21, %v1079_v2  ;;  %1096 = vst [vmem:[%s1813_s27 + $0x18] sm:$0xff] %v1056_v9  ;;  %v1061_v10 = vsel %vm1030_vm5, %v1993_v25, %v1060_v28  ;;  %v1067_v5 = vsel %vm1028_vm4, %v1994_v4, %v1066_v59  ;;  %v1074_v43 = vsel %vm1028_vm4, %v1995_v57, %v1073_v7  ;;  %v1997_v21 = vld [vmem:[#allocation21_spill] sm:$0xff] }
  0xbd   : > { %v1081_v15 = vsel %vm1028_vm4, %v936_v37, %v1080_v32  ;;  %v1062_v1 = vsel %vm1032_vm6, %v1996_v3, %v1061_v10  ;;  %v1068_v36 = vsel %vm1030_vm5, %v1997_v21, %v1067_v5  ;;  %v1075_v44 = vsel %vm1030_vm5, %v1998_v20, %v1074_v43 }
  0xbe   : > { %v1082_v22 = vsel %vm1030_vm5, %v943_v17, %v1081_v15  ;;  %v1063_v41 = vsel %vm1034_vm7, %v1999_v63, %v1062_v1  ;;  %v1069_v42 = vsel %vm1032_vm6, %v2000_v61, %v1068_v36  ;;  %v1076_v37 = vsel %vm1032_vm6, %v2001_v47, %v1075_v44 }
  0xbf   : > { %v1083_v48 = vsel %vm1032_vm6, %v1775_v29, %v1082_v22  ;;  %v1070_v24 = vsel %vm1034_vm7, %v2002_v35, %v1069_v42  ;;  %v1077_v6 = vsel %vm1034_vm7, %v2003_v40, %v1076_v37  ;;  %1097 = vst [vmem:[%s1813_s27 + $0x20] sm:$0xff] %v1063_v41 }
  0xc0   : > { %v1084_v17 = vsel %vm1034_vm7, %v1777_v52, %v1083_v48  ;;  %1098 = vst [vmem:[%s1813_s27 + $0x28] sm:$0xff] %v1070_v24 }
  0xc1   : > { %1099 = vst [vmem:[%s1813_s27 + $0x30] sm:$0xff] %v1077_v6 }
  0xc2   : > { %1100 = vst [vmem:[%s1813_s27 + $0x38] sm:$0xff] %v1084_v17 }
  0xc3 PF: > { %s13_s14 = sadd.s32 1, %s1331_s14   ;;  %s2004_s12 = smov %s1327_s13 }
  0xc4   : > { %p10_p5 = scmp.ge.s32.totalorder %s13_s14, 4   ;;  %s2005_s13 = smov %s2007_s15 }
  0xc6   :  { %12 = sbr.rel (!%p10_p5) target bundleno = 2 (0x2), region = 62 }

// kernel: unet_down_forward.6
= control target key start
LH: loop header
LB: loop body
LE: loop exit
PB: predicated region body
PF: predicated region fallthrough
CT: control target
= control target key end

     0   :  { %s3251_s18 = smov 0   ;;  %s3253_s19 = smov 0   ;;  %s3922_s0 = inlined_call_operand.vmem [shape: bf16[4,10,24,128], index: 0, kind: input, shape index: {}]   ;;  %s3923_s1 = inlined_call_operand.vmem [shape: bf16[9,128,128], index: 1, kind: input, shape index: {}]   ;;  %s3924_s2 = inlined_call_operand.vmem [shape: f32[1,128], index: 2, kind: input, shape index: {}]   ;;  %s3925_s3 = inlined_call_operand.vmem [shape: bf16[2,16,16,128], index: 3, kind: output, shape index: {0}]   ;;  %s3926_s4 = inlined_call_operand.vmem [shape: f32[4,1,128], index: 4, kind: output, shape index: {1}]   ;;  %s3927_s5 = inlined_call_operand.vmem [shape: f32[4,1,128], index: 5, kind: output, shape index: {2}]  }
   0x1   :  { %s3255_s20 = smov 0   ;;  %s3257_s21 = smov 0  }
   0x2   :  { %s3259_s22 = smov 0  }
   0x3 LB: > { %s25_s23 = sadd.s32 1, %s3211_s20  ;;  %s28_s24 = sadd.s32 1, %s3215_s21  ;;  %s3219_s22 = sphi %s3259_s22, %s16_s22   ;;  %s3215_s21 = sphi %s3257_s21, %s3931_s21   ;;  %s3211_s20 = sphi %s3255_s20, %s3930_s20   ;;  %s3207_s19 = sphi %s3253_s19, %s3929_s19   ;;  %s3203_s18 = sphi %s3251_s18, %s3928_s18  }
   0x4   : > { %p26_p0 = scmp.ge.s32.totalorder %s25_s23, 2  ;;  %p2406_p1 = scmp.ge.s32.totalorder %s3219_s22, 1 }
   0x5   : > { %p222_p2 = scmp.lt.s32.totalorder %s3219_s22, 5 }
   0x6   : > { %s3933_s23 = smov (%p26_p0, %s25_s23), 0  ;;  %s3935_s24 = smov (!%p26_p0, %s28_s24), %s3215_s21 }
   0x7   : > { %p223_p3 = pnand %p2406_p1, %p222_p2  ;;  %p30_p4 = scmp.ge.s32.totalorder %s3935_s24, 2 }
   0x8   : > { %s2407_s27 = sshll.u32 (!%p223_p3), %s3207_s19, 1  ;;  %p277_p6 = scmp.lt.s32.totalorder (!%p223_p3), %s3207_s19, 1 }
   0x9   : > { %s3937_s24 = smov (%p30_p4, %s3935_s24), 0  ;;  %226 = sbr.rel (%p223_p3) target bundleno = 484 (0x1e4), region = 32 }
   0xa   : > { %s268_s30 = sadd.s32 (!%p223_p3), %s3203_s18, %s2407_s27 }
   0xb   : > { %p269_p5 = scmp.lt.s32.totalorder (!%p223_p3), %s268_s30, 3 }
   0xe   : > { %v2896_v0 = vld [vmem:[%s3923_s1 + $0xf8] sm:$0xff]  ;;  %v2895_v1 = vld [vmem:[%s3923_s1 + $0xf0] sm:$0xff]  ;;  %v2894_v2 = vld [vmem:[%s3923_s1 + $0xe8] sm:$0xff]  ;;  %s3939_s30 = smov (!%p269_p5, %s268_s30), 3  ;;  %vm405_vm0 = vsmask.f32 7424 }
   0xf   : > { %1073 = vmatpush.bf16.msra.mxu0 %v2896_v0  ;;  %3079 = vmatpush.bf16.msra.mxu1 %v2896_v0  ;;  %v2893_v3 = vld [vmem:[%s3923_s1 + $0xe0] sm:$0xff]  ;;  %v2892_v4 = vld [vmem:[%s3923_s1 + $0xd8] sm:$0xff]  ;;  %s3103_s12 = smul.u32 120, %s3939_s30  ;;  %v2891_v5 = vld [vmem:[%s3923_s1 + $0xd0] sm:$0xff]  ;;  %vm534_vm1 = vcmask 1046528   ;;  %s3941_s19 = smov (!%p277_p6, %s3207_s19), 1 }
  0x10   : > { %3080 = vmatpush.bf16.msra.mxu2 %v2896_v0  ;;  %3081 = vmatpush.bf16.msra.mxu3 %v2896_v0  ;;  %v2890_v6 = vld [vmem:[%s3923_s1 + $0xc8] sm:$0xff]  ;;  %v2889_v15 = vld [vmem:[%s3923_s1 + $0xc0] sm:$0xff]  ;;  %v2912_v16 = vld [vmem:[%s3923_s1 + $0x178] sm:$0xff]  ;;  %s2411_s6 = sshll.u32 %s3941_s19, 5  ;;  %s291_s14 = scalar_lea.vmem %s3926_s4, %s3939_s30 }
  0x11   : > { %s3311_s17 = scalar_lea.vmem %s3922_s0, %s3103_s12  ;;  %v2872_v17 = vld [vmem:[%s3923_s1 + $0x38] sm:$0xff]  ;;  %v2911_v20 = vld [vmem:[%s3923_s1 + $0x170] sm:$0xff]  ;;  %v2910_v24 = vld [vmem:[%s3923_s1 + $0x168] sm:$0xff]  ;;  %s298_s25 = scalar_lea.vmem %s3927_s5, %s3939_s30 }
  0x12   : > { %v3317_v7 = vld [vmem:[%s3311_s17 + $0xc] sm:$0xff]   ;;  %v3323_v9 = vld [vmem:[%s3311_s17 + $0x24] sm:$0xff]   ;;  %v3329_v11 = vld [vmem:[%s3311_s17 + $0x3c] sm:$0xff]  }
  0x13   : > { %1074 = vmatpush.bf16.msra.mxu0 %v2895_v1  ;;  %3082 = vmatpush.bf16.msra.mxu1 %v2895_v1  ;;  %v3320_v8 = vld [vmem:[%s3311_s17 + $0xc] sm:$0xf0]  ;;  %v3326_v10 = vld [vmem:[%s3311_s17 + $0x24] sm:$0xf0]  ;;  %v3332_v12 = vld [vmem:[%s3311_s17 + $0x3c] sm:$0xf0] }
  0x14   : > { %3083 = vmatpush.bf16.msra.mxu2 %v2895_v1  ;;  %3084 = vmatpush.bf16.msra.mxu3 %v2895_v1  ;;  %v3335_v13 = vld [vmem:[%s3311_s17 + $0x54] sm:$0xff]   ;;  %v2870_v25 = vld [vmem:[%s3923_s1 + $0x28] sm:$0xff]  ;;  %v2909_v28 = vld [vmem:[%s3923_s1 + $0x160] sm:$0xff]  ;;  %v723_v48 = vshll.u32 %v3317_v7, 16  ;;  %v721_v56 = vshrl.u32 %v3317_v7, 16 }
  0x15   : > { %v3338_v14 = vld [vmem:[%s3311_s17 + $0x54] sm:$0xf0]  ;;  %v2871_v21 = vld [vmem:[%s3923_s1 + $0x30] sm:$0xff]  ;;  %v2902_v26 = vld [vmem:[%s3923_s1 + $0x128] sm:$0xff] }
  0x16   : > { %v2904_v18 = vld [vmem:[%s3923_s1 + $0x138] sm:$0xff]  ;;  %v2903_v22 = vld [vmem:[%s3923_s1 + $0x130] sm:$0xff]  ;;  %v2878_v27 = vld [vmem:[%s3923_s1 + $0x68] sm:$0xff]  ;;  %v725_v57 = vrot.slane %v723_v48, 1 }
  0x17   : > { %1075 = vmatpush.bf16.msra.mxu0 %v2894_v2  ;;  %3085 = vmatpush.bf16.msra.mxu1 %v2894_v2  ;;  %v2880_v19 = vld [vmem:[%s3923_s1 + $0x78] sm:$0xff]  ;;  %v2879_v23 = vld [vmem:[%s3923_s1 + $0x70] sm:$0xff]  ;;  %v2869_v29 = vld [vmem:[%s3923_s1 + $0x20] sm:$0xff] }
  0x18   : > { %3086 = vmatpush.bf16.msra.mxu2 %v2894_v2  ;;  %3087 = vmatpush.bf16.msra.mxu3 %v2894_v2  ;;  %v2901_v30 = vld [vmem:[%s3923_s1 + $0x120] sm:$0xff]  ;;  %v2908_v32 = vld [vmem:[%s3923_s1 + $0x158] sm:$0xff]  ;;  %v2431_v34 = vld [vmem:[%s3311_s17 + $0x14] sm:$0x1] }
  0x19   : > { %v2877_v31 = vld [vmem:[%s3923_s1 + $0x60] sm:$0xff]  ;;  %v2868_v33 = vld [vmem:[%s3923_s1 + $0x18] sm:$0xff]  ;;  %v317_v35 = vld [vmem:[%s3311_s17 + $0x8] sm:$0x1]  ;;  %v704_v42 = vunpack.c.l.b16 %v2431_v34 }
  0x1a   : > { %v3404_v36 = vld [vmem:[%s3311_s17 + $0x18] sm:$0xff]   ;;  %v3407_v37 = vld [vmem:[%s3311_s17 + $0x30] sm:$0xff]   ;;  %v3410_v38 = vld [vmem:[%s3311_s17 + $0x48] sm:$0xff]   ;;  %v389_v46 = vunpack.c.l.b16 %v317_v35 }
  0x1b   : > { %1076 = vmatpush.bf16.msra.mxu0 %v2893_v3  ;;  %3088 = vmatpush.bf16.msra.mxu1 %v2893_v3  ;;  %v3413_v39 = vld [vmem:[%s3311_s17 + $0x60] sm:$0xff]   ;;  %v2900_v40 = vld [vmem:[%s3923_s1 + $0x118] sm:$0xff]  ;;  %v2907_v43 = vld [vmem:[%s3923_s1 + $0x150] sm:$0xff]  ;;  %v712_v51 = vpack.c.b16 %v704_v42, %v704_v42  ;;  %v735_v34 = vshll.u32 %v3404_v36, 16  ;;  %v733_v48 = vshrl.u32 %v3404_v36, 16 }
  0x1c   : > { %3089 = vmatpush.bf16.msra.mxu2 %v2893_v3  ;;  %3090 = vmatpush.bf16.msra.mxu3 %v2893_v3  ;;  %v2876_v41 = vld [vmem:[%s3923_s1 + $0x58] sm:$0xff]  ;;  %v2867_v44 = vld [vmem:[%s3923_s1 + $0x10] sm:$0xff]  ;;  %v3146_v45 = vld [vmem:[%s3311_s17 + $0xc] sm:$0xe]  ;;  %v3449_v55 = vpack.c.b16 %v389_v46, %v389_v46 }
  0x1d   : > { %v3431_v47 = vld [vmem:[%s3311_s17] sm:$0xff]   ;;  %v2899_v49 = vld [vmem:[%s3923_s1 + $0x110] sm:$0xff]  ;;  %v2906_v52 = vld [vmem:[%s3923_s1 + $0x148] sm:$0xff]  ;;  %v728_v60 = vshll.u32 %v712_v51, 16  ;;  %v3147_v61 = vor.u32 %v3146_v45, %v3320_v8 }
  0x1e   : > { %v2875_v50 = vld [vmem:[%s3923_s1 + $0x50] sm:$0xff]  ;;  %v2866_v53 = vld [vmem:[%s3923_s1 + $0x8] sm:$0xff]  ;;  %v409_v54 = vshll.u32 %v3431_v47, 16  ;;  %v2905_v62 = vld [vmem:[%s3923_s1 + $0x140] sm:$0xff]  ;;  %v407_v0 = vshrl.u32 %v3431_v47, 16  ;;  %v414_v2 = vshll.u32 %v3449_v55, 16 }
  0x1f   : > { %1077 = vmatpush.bf16.msra.mxu0 %v2892_v4  ;;  %3091 = vmatpush.bf16.msra.mxu1 %v2892_v4  ;;  %v2898_v58 = vld [vmem:[%s3923_s1 + $0x108] sm:$0xff]  ;;  %v2865_v63 = vld [vmem:[%s3923_s1] sm:$0xff]  ;;  %v2920_v3 = vld [vmem:[%s3923_s1 + $0x1b8] sm:$0xff] }
  0x20   : > { %3092 = vmatpush.bf16.msra.mxu2 %v2892_v4  ;;  %3093 = vmatpush.bf16.msra.mxu3 %v2892_v4  ;;  %v2874_v59 = vld [vmem:[%s3923_s1 + $0x48] sm:$0xff]  ;;  %v411_v1 = vrot.slane %v409_v54, 1  ;;  %v2928_v4 = vld [vmem:[%s3923_s1 + $0x1f8] sm:$0xff]  ;;  %v2897_v8 = vld [vmem:[%s3923_s1 + $0x100] sm:$0xff] }
  0x21   : > { %v2926_v42 = vld [vmem:[%s3923_s1 + $0x1e8] sm:$0xff] }
  0x22   : > { %v2886_v46 = vld [vmem:[%s3923_s1 + $0xa8] sm:$0xff] }
  0x23   : > { %1078 = vmatpush.bf16.msra.mxu0 %v2891_v5  ;;  %3094 = vmatpush.bf16.msra.mxu1 %v2891_v5 }
  0x24   : > { %3095 = vmatpush.bf16.msra.mxu2 %v2891_v5  ;;  %3096 = vmatpush.bf16.msra.mxu3 %v2891_v5  ;;  %v3474_v5 = vld [vmem:[%s3311_s17 + $0xc] sm:$0xff]  }
  0x25   : > { %v421_v45 = vshll.u32 %v3474_v5, 16 }
  0x27   : > { %1079 = vmatpush.bf16.msra.mxu0 %v2890_v6  ;;  %3097 = vmatpush.bf16.msra.mxu1 %v2890_v6 }
  0x28   : > { %3098 = vmatpush.bf16.msra.mxu2 %v2890_v6  ;;  %3099 = vmatpush.bf16.msra.mxu3 %v2890_v6  ;;  %v3477_v6 = vld [vmem:[%s3311_s17 + $0xc] sm:$0xf0] }
  0x2b   : > { %1080 = vmatpush.bf16.msra.mxu0 %v2889_v15  ;;  %3100 = vmatpush.bf16.msra.mxu1 %v2889_v15 }
  0x2c   : > { %3101 = vmatpush.bf16.msra.mxu2 %v2889_v15  ;;  %3102 = vmatpush.bf16.msra.mxu3 %v2889_v15  ;;  %v2873_v15 = vld [vmem:[%s3923_s1 + $0x40] sm:$0xff] }
  0x2e   : > { %1081 = vmatmul.bf16.vlgmr.msra.gmra.mxu0 %v3317_v7  ;;  %1091 = vmatmul.bf16.vlgmr.msra.gmra.mxu1 %v3323_v9  ;;  %v726_v7 = vor.u32 %v725_v57, %v721_v56 }
  0x2f   : > { %1101 = vmatmul.bf16.vlgmr.msra.gmra.mxu2 %v3329_v11  ;;  %1111 = vmatmul.bf16.vlgmr.msra.gmra.mxu3 %v3335_v13 }
  0x30   : > { %1171 = vmatpush.bf16.msrb.mxu2 %v2912_v16  ;;  %1364 = vmatpush.bf16.msrb.mxu3 %v2872_v17  ;;  %v730_v16 = vrot.slane %v728_v60, 1  ;;  %v848_v17 = vrot.slane %v3147_v61, 1 }
  0x31   : > { %1122 = vmatpush.bf16.msrb.mxu1 %v2904_v18  ;;  %1413 = vmatpush.bf16.msrb.mxu0 %v2880_v19  ;;  %v849_v18 = vrot.slane %v712_v51, 1  ;;  %v412_v19 = vor.u32 %v411_v1, %v407_v0 }
  0x34   : > { %1172 = vmatpush.bf16.msrb.mxu2 %v2911_v20  ;;  %1365 = vmatpush.bf16.msrb.mxu3 %v2871_v21  ;;  %v416_v20 = vrot.slane %v414_v2, 1  ;;  %v2888_v21 = vld [vmem:[%s3923_s1 + $0xb8] sm:$0xff] }
  0x35   : > { %1123 = vmatpush.bf16.msrb.mxu1 %v2903_v22  ;;  %1414 = vmatpush.bf16.msrb.mxu0 %v2879_v23  ;;  %v2936_v22 = vld [vmem:[%s3923_s1 + $0x238] sm:$0xff]  ;;  %v2432_v23 = vld [vmem:[%s3311_s17 + $0x20] sm:$0x1] }
  0x38   : > { %1173 = vmatpush.bf16.msrb.mxu2 %v2910_v24  ;;  %1366 = vmatpush.bf16.msrb.mxu3 %v2870_v25  ;;  %v318_v24 = vld [vmem:[%s3311_s17 + $0x14] sm:$0x1] }
  0x39   : > { %1124 = vmatpush.bf16.msrb.mxu1 %v2902_v26  ;;  %1415 = vmatpush.bf16.msrb.mxu0 %v2878_v27  ;;  %v2919_v25 = vld [vmem:[%s3923_s1 + $0x1b0] sm:$0xff]  ;;  %v731_v27 = vsel %vm405_vm0, %v726_v7, %v730_v16  ;;  %v2917_v16 = vld [vmem:[%s3923_s1 + $0x1a0] sm:$0xff] }
  0x3a   : > { %v2927_v26 = vld [vmem:[%s3923_s1 + $0x1f0] sm:$0xff] }
  0x3c   : > { %1174 = vmatpush.bf16.msrb.mxu2 %v2909_v28  ;;  %1367 = vmatpush.bf16.msrb.mxu3 %v2869_v29  ;;  %v850_v28 = vsel %vm534_vm1, %v848_v17, %v849_v18  ;;  %v705_v29 = vunpack.c.l.b16 %v2432_v23  ;;  %v2925_v17 = vld [vmem:[%s3923_s1 + $0x1e0] sm:$0xff] }
  0x3d   : > { %1125 = vmatpush.bf16.msrb.mxu1 %v2901_v30  ;;  %1416 = vmatpush.bf16.msrb.mxu0 %v2877_v31  ;;  %v417_v30 = vsel %vm405_vm0, %v412_v19, %v416_v20  ;;  %v390_v31 = vunpack.c.l.b16 %v318_v24  ;;  %v2885_v18 = vld [vmem:[%s3923_s1 + $0xa0] sm:$0xff]  ;;  %v745_v20 = vshrl.u32 %v3323_v9, 16 }
  0x3e   : > { %1086 = vmatmul.bf16.gmra.mxu0 %v3404_v36  ;;  %1096 = vmatmul.bf16.gmra.mxu1 %v3407_v37  ;;  %v713_v35 = vpack.c.b16 %v705_v29, %v705_v29 }
  0x3f   : > { %1106 = vmatmul.bf16.gmra.mxu2 %v3410_v38  ;;  %1116 = vmatmul.bf16.gmra.mxu3 %v3413_v39 }
  0x40   : > { %1175 = vmatpush.bf16.msrb.mxu2 %v2908_v32  ;;  %1368 = vmatpush.bf16.msrb.mxu3 %v2868_v33  ;;  %v2887_v32 = vld [vmem:[%s3923_s1 + $0xb0] sm:$0xff] }
  0x41   : > { %1126 = vmatpush.bf16.msrb.mxu1 %v2900_v40  ;;  %1417 = vmatpush.bf16.msrb.mxu0 %v2876_v41  ;;  %v2935_v33 = vld [vmem:[%s3923_s1 + $0x230] sm:$0xff]  ;;  %v3044_v40 = vld [vmem:[%s3311_s17 + $0x18] sm:$0xf0]  ;;  %v2918_v41 = vld [vmem:[%s3923_s1 + $0x1a8] sm:$0xff] }
  0x44   : > { %1176 = vmatpush.bf16.msrb.mxu2 %v2907_v43  ;;  %1369 = vmatpush.bf16.msrb.mxu3 %v2867_v44  ;;  %v3045_v43 = vld [vmem:[%s3311_s17 + $0x18] sm:$0xe]  ;;  %v3518_v44 = vpack.c.b16 %v390_v31, %v390_v31 }
  0x45   : > { %1127 = vmatpush.bf16.msrb.mxu1 %v2899_v49  ;;  %1418 = vmatpush.bf16.msrb.mxu0 %v2875_v50  ;;  %v737_v49 = vrot.slane %v735_v34, 1  ;;  %v740_v50 = vshll.u32 %v713_v35, 16  ;;  %v3046_v51 = vor.u32 %v3045_v43, %v3044_v40  ;;  %v2916_v43 = vld [vmem:[%s3923_s1 + $0x198] sm:$0xff] }
  0x46   : > { %v426_v54 = vshll.u32 %v3518_v44, 16 }
  0x47   : > { %v3530_v56 = vor.u32 %v737_v49, %v733_v48  ;;  %v742_v57 = vrot.slane %v740_v50, 1  ;;  %v3048_v48 = vld [vmem:[%s3311_s17 + $0x30] sm:$0xe] }
  0x48   : > { %1177 = vmatpush.bf16.msrb.mxu2 %v2906_v52  ;;  %1370 = vmatpush.bf16.msrb.mxu3 %v2866_v53  ;;  %v419_v52 = vshrl.u32 %v3474_v5, 16  ;;  %v423_v53 = vrot.slane %v421_v45, 1  ;;  %v428_v61 = vrot.slane %v426_v54, 1  ;;  %v2924_v45 = vld [vmem:[%s3923_s1 + $0x1d8] sm:$0xff] }
  0x49   : > { %1128 = vmatpush.bf16.msrb.mxu1 %v2898_v58  ;;  %1419 = vmatpush.bf16.msrb.mxu0 %v2874_v59  ;;  %v851_v58 = vrot.slane %v3046_v51, 1  ;;  %v852_v59 = vrot.slane %v713_v35, 1  ;;  %v743_v0 = vsel %vm405_vm0, %v3530_v56, %v742_v57  ;;  %v2932_v51 = vld [vmem:[%s3923_s1 + $0x218] sm:$0xff] }
  0x4a   : > { %v424_v60 = vor.u32 %v423_v53, %v419_v52  ;;  %v757_v52 = vshrl.u32 %v3407_v37, 16 }
  0x4b   : > { %v853_v1 = vsel %vm534_vm1, %v851_v58, %v852_v59 }
  0x4c   : > { %1178 = vmatpush.bf16.msrb.mxu2 %v2905_v62  ;;  %1371 = vmatpush.bf16.msrb.mxu3 %v2865_v63  ;;  %v2433_v62 = vld [vmem:[%s3311_s17 + $0x2c] sm:$0x1]  ;;  %v319_v63 = vld [vmem:[%s3311_s17 + $0x20] sm:$0x1] }
  0x4d   : > { %1129 = vmatpush.bf16.msrb.mxu1 %v2897_v8  ;;  %1420 = vmatpush.bf16.msrb.mxu0 %v2873_v15  ;;  %v706_v2 = vunpack.c.l.b16 %v2433_v62  ;;  %v391_v7 = vunpack.c.l.b16 %v319_v63  ;;  %v747_v15 = vshll.u32 %v3323_v9, 16 }
  0x4f   : > { %1179 = vmatmul.bf16.vlgmr.msrb.gmra.mxu2 %v850_v28  ;;  %1372 = vmatmul.bf16.vlgmr.msrb.gmra.mxu3 %v3431_v47  ;;  %v2934_v47 = vld [vmem:[%s3923_s1 + $0x228] sm:$0xff]  ;;  %v714_v8 = vpack.c.b16 %v706_v2, %v706_v2  ;;  %v3550_v19 = vpack.c.b16 %v391_v7, %v391_v7 }
  0x50   : > { %1969 = vmatpush.bf16.msra.mxu2 %v2920_v3  ;;  %2018 = vmatpush.bf16.msra.mxu3 %v2928_v4  ;;  %v429_v3 = vsel %vm405_vm0, %v424_v60, %v428_v61  ;;  %v3149_v4 = vld [vmem:[%s3311_s17 + $0x24] sm:$0xe] }
  0x51   : > { %1462 = vmatpush.bf16.msra.mxu1 %v2888_v21  ;;  %2067 = vmatpush.bf16.msra.mxu0 %v2936_v22  ;;  %v749_v21 = vrot.slane %v747_v15, 1  ;;  %v752_v22 = vshll.u32 %v714_v8, 16  ;;  %v3150_v23 = vor.u32 %v3149_v4, %v3326_v10  ;;  %v438_v24 = vshll.u32 %v3550_v19, 16  ;;  %v321_v4 = vld [vmem:[%s3311_s17 + $0x38] sm:$0x1] }
  0x52   : > { %1130 = vmatmul.bf16.vlgmr.msrb.gmra.mxu1 %v731_v27  ;;  %1421 = vmatmul.bf16.vlgmr.msrb.gmra.mxu0 %v417_v30  ;;  %v855_v30 = vrot.slane %v714_v8, 1 }
  0x53   : > { %v750_v27 = vor.u32 %v749_v21, %v745_v20  ;;  %v754_v28 = vrot.slane %v752_v22, 1  ;;  %v854_v29 = vrot.slane %v3150_v23, 1  ;;  %v440_v31 = vrot.slane %v438_v24, 1  ;;  %v2915_v21 = vld [vmem:[%s3923_s1 + $0x190] sm:$0xff] }
  0x54   : > { %1970 = vmatpush.bf16.msra.mxu2 %v2919_v25  ;;  %2019 = vmatpush.bf16.msra.mxu3 %v2927_v26  ;;  %v307_v25 = vld [vmem:[%s3311_s17 + $0x24] sm:$0xff]   ;;  %v771_v20 = vshll.u32 %v3329_v11, 16  ;;  %v2923_v22 = vld [vmem:[%s3923_s1 + $0x1d0] sm:$0xff] }
  0x55   : > { %1463 = vmatpush.bf16.msra.mxu1 %v2887_v32  ;;  %2068 = vmatpush.bf16.msra.mxu0 %v2935_v33  ;;  %v3560_v26 = vld [vmem:[%s3311_s17 + $0x24] sm:$0xf0]  ;;  %v2434_v32 = vld [vmem:[%s3311_s17 + $0x38] sm:$0x1]  ;;  %v320_v33 = vld [vmem:[%s3311_s17 + $0x2c] sm:$0x1]  ;;  %v755_v9 = vsel %vm405_vm0, %v750_v27, %v754_v28  ;;  %v856_v34 = vsel %vm534_vm1, %v854_v29, %v855_v30  ;;  %v441_v10 = vsel %vm405_vm0, %v3530_v56, %v440_v31 }
  0x56   : > { %v707_v35 = vunpack.c.l.b16 %v2434_v32  ;;  %v392_v40 = vunpack.c.l.b16 %v320_v33  ;;  %v445_v50 = vshll.u32 %v307_v25, 16  ;;  %v443_v58 = vshrl.u32 %v307_v25, 16  ;;  %v2883_v23 = vld [vmem:[%s3923_s1 + $0x90] sm:$0xff]  ;;  %v311_v32 = vld [vmem:[%s3311_s17 + $0x3c] sm:$0xff]  }
  0x57   : > { %v769_v27 = vshrl.u32 %v3329_v11, 16  ;;  %v773_v28 = vrot.slane %v771_v20, 1  ;;  %v3614_v33 = vld [vmem:[%s3311_s17 + $0x3c] sm:$0xf0] }
  0x58   : > { %1971 = vmatpush.bf16.msra.mxu2 %v2918_v41  ;;  %2020 = vmatpush.bf16.msra.mxu3 %v2926_v42  ;;  %v759_v41 = vshll.u32 %v3407_v37, 16  ;;  %v715_v42 = vpack.c.b16 %v707_v35, %v707_v35  ;;  %v3581_v49 = vpack.c.b16 %v392_v40, %v392_v40  ;;  %v447_v59 = vrot.slane %v445_v50, 1  ;;  %v2914_v50 = vld [vmem:[%s3923_s1 + $0x188] sm:$0xff] }
  0x59   : > { %1464 = vmatpush.bf16.msra.mxu1 %v2886_v46  ;;  %2069 = vmatpush.bf16.msra.mxu0 %v2934_v47  ;;  %v2884_v46 = vld [vmem:[%s3923_s1 + $0x98] sm:$0xff]  ;;  %v3047_v47 = vld [vmem:[%s3311_s17 + $0x30] sm:$0xf0] }
  0x5a   : > { %v761_v53 = vrot.slane %v759_v41, 1  ;;  %v764_v54 = vshll.u32 %v715_v42, 16  ;;  %v3049_v57 = vor.u32 %v3048_v48, %v3047_v47  ;;  %v450_v60 = vshll.u32 %v3581_v49, 16  ;;  %v2436_v41 = vld [vmem:[%s3311_s17 + $0x50] sm:$0x1] }
  0x5b   : > { %v783_v47 = vshll.u32 %v3410_v38, 16 }
  0x5c   : > { %1972 = vmatpush.bf16.msra.mxu2 %v2917_v16  ;;  %2021 = vmatpush.bf16.msra.mxu3 %v2925_v17  ;;  %v762_v61 = vor.u32 %v761_v53, %v757_v52  ;;  %v766_v62 = vrot.slane %v764_v54, 1  ;;  %v857_v63 = vrot.slane %v3049_v57, 1  ;;  %v452_v2 = vrot.slane %v450_v60, 1  ;;  %v3152_v17 = vld [vmem:[%s3311_s17 + $0x3c] sm:$0xe] }
  0x5d   : > { %1465 = vmatpush.bf16.msra.mxu1 %v2885_v18  ;;  %v393_v18 = vunpack.c.l.b16 %v321_v4  ;;  %v3153_v30 = vor.u32 %v3152_v17, %v3332_v12  ;;  %v3050_v52 = vld [vmem:[%s3311_s17 + $0x48] sm:$0xf0]  ;;  %v3051_v53 = vld [vmem:[%s3311_s17 + $0x48] sm:$0xe]  ;;  %v469_v57 = vshll.u32 %v311_v32, 16  ;;  %v785_v60 = vrot.slane %v783_v47, 1 }
  0x5e   : > { %v767_v7 = vsel %vm405_vm0, %v762_v61, %v766_v62  ;;  %v3052_v62 = vor.u32 %v3051_v53, %v3050_v52  ;;  %v323_v17 = vld [vmem:[%s3311_s17 + $0x50] sm:$0x1]  ;;  %v2438_v47 = vld [vmem:[%s3311_s17 + $0x68] sm:$0x1] }
  0x5f   : > { %1184 = vmatmul.bf16.gmra.mxu2 %v853_v1  ;;  %1377 = vmatmul.bf16.gmra.mxu3 %v3474_v5  ;;  %v2933_v5 = vld [vmem:[%s3923_s1 + $0x220] sm:$0xff]  ;;  %v448_v1 = vor.u32 %v447_v59, %v443_v58  ;;  %v3604_v24 = vpack.c.b16 %v393_v18, %v393_v18  ;;  %v860_v35 = vrot.slane %v3153_v30, 1  ;;  %v2930_v58 = vld [vmem:[%s3923_s1 + $0x208] sm:$0xff]  ;;  %v781_v59 = vshrl.u32 %v3410_v38, 16 }
  0x60   : > { %2070 = vmatpush.bf16.msra.mxu0 %v2933_v5  ;;  %1973 = vmatpush.bf16.msra.mxu2 %v2916_v43  ;;  %v863_v4 = vrot.slane %v3052_v62, 1  ;;  %v711_v52 = vunpack.c.l.b16 %v2438_v47 }
  0x61   : > { %2022 = vmatpush.bf16.msra.mxu3 %v2924_v45  ;;  %1466 = vmatpush.bf16.msra.mxu1 %v2884_v46  ;;  %v453_v16 = vsel %vm405_vm0, %v448_v1, %v452_v2  ;;  %v462_v31 = vshll.u32 %v3604_v24, 16  ;;  %v709_v45 = vunpack.c.l.b16 %v2436_v41  ;;  %v786_v2 = vor.u32 %v785_v60, %v781_v59  ;;  %v315_v41 = vld [vmem:[%s3311_s17 + $0x54] sm:$0xff]   ;;  %v3053_v59 = vld [vmem:[%s3311_s17 + $0x60] sm:$0xf0]  ;;  %v3054_v60 = vld [vmem:[%s3311_s17 + $0x60] sm:$0xe] }
  0x62   : > { %1135 = vmatmul.bf16.gmra.mxu1 %v743_v0  ;;  %1426 = vmatmul.bf16.gmra.mxu0 %v429_v3  ;;  %v858_v0 = vrot.slane %v715_v42, 1  ;;  %v2435_v3 = vld [vmem:[%s3311_s17 + $0x44] sm:$0x1]  ;;  %v493_v62 = vshll.u32 %v315_v41, 16 }
  0x63   : > { %v708_v15 = vunpack.c.l.b16 %v2435_v3  ;;  %v464_v40 = vrot.slane %v462_v31, 1  ;;  %v322_v42 = vld [vmem:[%s3311_s17 + $0x44] sm:$0x1]  ;;  %v717_v48 = vpack.c.b16 %v709_v45, %v709_v45 }
  0x64   : > { %2071 = vmatpush.bf16.msra.mxu0 %v2932_v51  ;;  %v859_v8 = vsel %vm534_vm1, %v857_v63, %v858_v0  ;;  %1974 = vmatpush.bf16.msra.mxu2 %v2915_v21  ;;  %v394_v46 = vunpack.c.l.b16 %v322_v42  ;;  %v2922_v51 = vld [vmem:[%s3923_s1 + $0x1c8] sm:$0xff]  ;;  %v467_v63 = vshrl.u32 %v311_v32, 16  ;;  %v471_v0 = vrot.slane %v469_v57, 1  ;;  %v2881_v31 = vld [vmem:[%s3923_s1 + $0x80] sm:$0xff]  ;;  %v3667_v42 = vld [vmem:[%s3311_s17 + $0x54] sm:$0xf0] }
  0x65   : > { %v716_v5 = vpack.c.b16 %v708_v15, %v708_v15  ;;  %2023 = vmatpush.bf16.msra.mxu3 %v2923_v22  ;;  %1467 = vmatpush.bf16.msra.mxu1 %v2883_v23  ;;  %v465_v12 = vsel %vm405_vm0, %v762_v61, %v464_v40  ;;  %v788_v61 = vshll.u32 %v717_v48, 16  ;;  %v3155_v22 = vld [vmem:[%s3311_s17 + $0x54] sm:$0xe]  ;;  %v395_v23 = vunpack.c.l.b16 %v323_v17 }
  0x66   : > { %v3631_v54 = vpack.c.b16 %v394_v46, %v394_v46 }
  0x67   : > { %v776_v29 = vshll.u32 %v716_v5, 16  ;;  %v790_v3 = vrot.slane %v788_v61, 1  ;;  %v3654_v30 = vpack.c.b16 %v395_v23, %v395_v23 }
  0x68   : > { %1975 = vmatpush.bf16.msra.mxu2 %v2914_v50  ;;  %v474_v1 = vshll.u32 %v3631_v54, 16 }
  0x69   : > { %2024 = vmatpush.bf16.msra.mxu3 %v2922_v51  ;;  %v791_v18 = vsel %vm405_vm0, %v786_v2, %v790_v3  ;;  %v486_v40 = vshll.u32 %v3654_v30, 16  ;;  %v805_v3 = vshrl.u32 %v3413_v39, 16 }
  0x6a   : > { %v476_v15 = vrot.slane %v474_v1, 1 }
  0x6b   : > { %v488_v46 = vrot.slane %v486_v40, 1 }
  0x6d   : > { %v489_v53 = vsel %vm405_vm0, %v786_v2, %v488_v46 }
  0x6f   : > { %1189 = vmatmul.bf16.gmra.mxu2 %v856_v34  ;;  %1382 = vmatmul.bf16.gmra.mxu3 %v3404_v36  ;;  %v778_v34 = vrot.slane %v776_v29, 1  ;;  %v2921_v29 = vld [vmem:[%s3923_s1 + $0x1c0] sm:$0xff] }
  0x70   : > { %2025 = vmatpush.bf16.msra.mxu3 %v2921_v29 }
  0x72   : > { %1140 = vmatmul.bf16.gmra.mxu1 %v755_v9  ;;  %1431 = vmatmul.bf16.gmra.mxu0 %v441_v10  ;;  %v774_v9 = vor.u32 %v773_v28, %v769_v27  ;;  %v861_v10 = vrot.slane %v716_v5, 1  ;;  %v795_v27 = vshll.u32 %v3335_v13, 16  ;;  %v2913_v28 = vld [vmem:[%s3923_s1 + $0x180] sm:$0xff] }
  0x73   : > { %1976 = vmatpush.bf16.msra.mxu2 %v2913_v28 }
  0x74   : > { %v779_v11 = vsel %vm405_vm0, %v774_v9, %v778_v34  ;;  %v862_v43 = vsel %vm534_vm1, %v860_v35, %v861_v10  ;;  %v793_v9 = vshrl.u32 %v3335_v13, 16  ;;  %v797_v34 = vrot.slane %v795_v27, 1  ;;  %v324_v13 = vld [vmem:[%s3311_s17 + $0x5c] sm:$0x1] }
  0x75   : > { %v3156_v10 = vor.u32 %v3155_v22, %v3338_v14  ;;  %v396_v57 = vunpack.c.l.b16 %v324_v13 }
  0x77   : > { %v866_v45 = vrot.slane %v3156_v10, 1  ;;  %v3682_v61 = vpack.c.b16 %v396_v57, %v396_v57 }
  0x7f   : > { %1194 = vmatmul.bf16.gmra.mxu2 %v859_v8  ;;  %1387 = vmatmul.bf16.gmra.mxu3 %v307_v25  ;;  %v2931_v25 = vld [vmem:[%s3923_s1 + $0x210] sm:$0xff]  ;;  %v472_v8 = vor.u32 %v471_v0, %v467_v63 }
  0x80   : > { %2072 = vmatpush.bf16.msra.mxu0 %v2931_v25 }
  0x81   : > { %v477_v21 = vsel %vm405_vm0, %v472_v8, %v476_v15  ;;  %v491_v8 = vshrl.u32 %v315_v41, 16  ;;  %v495_v15 = vrot.slane %v493_v62, 1 }
  0x82   : > { %1145 = vmatmul.bf16.gmra.mxu1 %v767_v7  ;;  %1436 = vmatmul.bf16.gmra.mxu0 %v453_v16  ;;  %v864_v7 = vrot.slane %v717_v48, 1  ;;  %v2437_v16 = vld [vmem:[%s3311_s17 + $0x5c] sm:$0x1] }
  0x83   : > { %v710_v20 = vunpack.c.l.b16 %v2437_v16  ;;  %v498_v16 = vshll.u32 %v3682_v61, 16 }
  0x84   : > { %2073 = vmatpush.bf16.msra.mxu0 %v2930_v58  ;;  %v865_v5 = vsel %vm534_vm1, %v863_v4, %v864_v7  ;;  %v719_v58 = vpack.c.b16 %v711_v52, %v711_v52  ;;  %v3055_v7 = vor.u32 %v3054_v60, %v3053_v59  ;;  %v2704_v59 = vld [vmem:[%s3311_s17 + $0x2c] sm:$0x1] }
  0x85   : > { %v718_v25 = vpack.c.b16 %v710_v20, %v710_v20  ;;  %v500_v22 = vrot.slane %v498_v16, 1  ;;  %v3158_v16 = vld [vmem:[%s3311_s17 + $0xc] sm:$0xe] }
  0x86   : > { %v870_v20 = vrot.slane %v719_v58, 1 }
  0x87   : > { %v800_v35 = vshll.u32 %v718_v25, 16 }
  0x8f   : > { %1199 = vmatmul.bf16.gmra.mxu2 %v862_v43  ;;  %1392 = vmatmul.bf16.gmra.mxu3 %v3407_v37  ;;  %v2882_v37 = vld [vmem:[%s3923_s1 + $0x88] sm:$0xff]  ;;  %v802_v43 = vrot.slane %v800_v35, 1  ;;  %v3029_v35 = vld [vmem:[%s3311_s17] sm:$0xe] }
  0x90   : > { %1468 = vmatpush.bf16.msra.mxu1 %v2882_v37  ;;  %v807_v37 = vshll.u32 %v3413_v39, 16  ;;  %v2703_v39 = vld [vmem:[%s3311_s17 + $0x20] sm:$0x1] }
  0x92   : > { %1150 = vmatmul.bf16.gmra.mxu1 %v779_v11  ;;  %1441 = vmatmul.bf16.gmra.mxu0 %v465_v12  ;;  %v798_v11 = vor.u32 %v797_v34, %v793_v9  ;;  %v867_v12 = vrot.slane %v718_v25, 1  ;;  %v809_v4 = vrot.slane %v807_v37, 1  ;;  %v1600_v9 = vunpack.c.l.b16 %v2703_v39  ;;  %v3028_v34 = vld [vmem:[%s3311_s17] sm:$0xf0] }
  0x93   : > { %v3030_v47 = vor.u32 %v3029_v35, %v3028_v34 }
  0x94   : > { %1469 = vmatpush.bf16.msra.mxu1 %v2881_v31  ;;  %v803_v14 = vsel %vm405_vm0, %v798_v11, %v802_v43  ;;  %v868_v51 = vsel %vm534_vm1, %v866_v45, %v867_v12  ;;  %v810_v17 = vor.u32 %v809_v4, %v805_v3  ;;  %v1608_v10 = vpack.c.b16 %v1600_v9, %v1600_v9  ;;  %v3060_v43 = vld [vmem:[%s3311_s17 + $0x18] sm:$0xf0]  ;;  %v3061_v45 = vld [vmem:[%s3311_s17 + $0x18] sm:$0xe] }
  0x95   : > { %v535_v52 = vrot.slane %v3030_v47, 1 }
  0x96   : > { %v1624_v13 = vshll.u32 %v1608_v10, 16 }
  0x98   : > { %v1626_v57 = vrot.slane %v1624_v13, 1 }
  0x9f   : > { %1204 = vmatmul.bf16.gmra.mxu2 %v865_v5  ;;  %1397 = vmatmul.bf16.gmra.mxu3 %v311_v32  ;;  %v2929_v32 = vld [vmem:[%s3923_s1 + $0x200] sm:$0xff]  ;;  %v869_v5 = vrot.slane %v3055_v7, 1 }
  0xa0   : > { %2074 = vmatpush.bf16.msra.mxu0 %v2929_v32 }
  0xa1   : > { %v871_v31 = vsel %vm534_vm1, %v869_v5, %v870_v20 }
  0xa2   : > { %1155 = vmatmul.bf16.gmra.mxu1 %v791_v18  ;;  %1446 = vmatmul.bf16.gmra.mxu0 %v477_v21  ;;  %v496_v21 = vor.u32 %v495_v15, %v491_v8  ;;  %v1627_v15 = vsel %vm405_vm0, %v3530_v56, %v1626_v57 }
  0xa4   : > { %v501_v32 = vsel %vm405_vm0, %v496_v21, %v500_v22 }
  0xab   : > { %v3671_v48 = vpop.f32.mrf.mxu0  ;;  %v3673_v50 = vpop.f32.mrf.mxu1 }
  0xaf   : > { %1209 = vmatmul.bf16.gmra.mxu2 %v868_v51  ;;  %1402 = vmatmul.bf16.gmra.mxu3 %v3410_v38  ;;  %v812_v38 = vshll.u32 %v719_v58, 16  ;;  %v2689_v51 = vld [vmem:[%s3311_s17 + $0x24] sm:$0xff]   ;;  %v1745_v58 = vrot.slane %v1608_v10, 1 }
  0xb0   : > { %v1631_v5 = vshll.u32 %v2689_v51, 16 }
  0xb1   : > { %v814_v18 = vrot.slane %v812_v38, 1  ;;  %v1601_v38 = vunpack.c.l.b16 %v2704_v59 }
  0xb2   : > { %1160 = vmatmul.bf16.gmra.mxu1 %v803_v14  ;;  %1451 = vmatmul.bf16.gmra.mxu0 %v489_v53  ;;  %v3684_v63 = vpop.f32.mrf.mxu2  ;;  %v3686_v0 = vpop.f32.mrf.mxu3  ;;  %v3062_v14 = vor.u32 %v3061_v45, %v3060_v43  ;;  %v536_v53 = vrot.slane %v3449_v55, 1  ;;  %v1633_v56 = vrot.slane %v1631_v5, 1  ;;  %v539_v43 = vrot.slane %v3518_v44, 1 }
  0xb3   : > { %v3688_v1 = vpop.f32.mrf.mxu0  ;;  %v3690_v2 = vpop.f32.mrf.mxu1  ;;  %v815_v29 = vsel %vm405_vm0, %v810_v17, %v814_v18  ;;  %v3161_v17 = vld [vmem:[%s3311_s17 + $0x24] sm:$0xe]  ;;  %v1609_v18 = vpack.c.b16 %v1601_v38, %v1601_v38 }
  0xb4   : > { %v1744_v37 = vrot.slane %v3062_v14, 1  ;;  %v537_v4 = vsel %vm534_vm1, %v535_v52, %v536_v53  ;;  %v2705_v52 = vld [vmem:[%s3311_s17 + $0x38] sm:$0x1] }
  0xb5   : > { %v1748_v14 = vrot.slane %v1609_v18, 1  ;;  %v1602_v38 = vunpack.c.l.b16 %v2705_v52 }
  0xb6   : > { %v1746_v55 = vsel %vm534_vm1, %v1744_v37, %v1745_v58 }
  0xba   : > { %v3694_v23 = vpop.f32.mrf.mxu2  ;;  %v3696_v25 = vpop.f32.mrf.mxu3 }
  0xbb   : > { %v3699_v27 = vpop.f32.mrf.mxu0  ;;  %v3701_v28 = vpop.f32.mrf.mxu1 }
  0xbf   : > { %1214 = vmatmul.bf16.gmra.mxu2 %v871_v31  ;;  %1407 = vmatmul.bf16.gmra.mxu3 %v315_v41  ;;  %v3160_v41 = vld [vmem:[%s3311_s17 + $0x24] sm:$0xf0]  ;;  %v1636_v31 = vshll.u32 %v1609_v18, 16  ;;  %v3064_v18 = vld [vmem:[%s3311_s17 + $0x30] sm:$0xe] }
  0xc0   : > { %v3162_v35 = vor.u32 %v3161_v17, %v3160_v41 }
  0xc1   : > { %v1638_v47 = vrot.slane %v1636_v31, 1 }
  0xc2   : > { %1165 = vmatmul.bf16.gmra.mxu1 %v815_v29  ;;  %1456 = vmatmul.bf16.gmra.mxu0 %v501_v32  ;;  %v3708_v40 = vpop.f32.mrf.mxu2  ;;  %v3710_v11 = vpop.f32.mrf.mxu3  ;;  %v1629_v29 = vshrl.u32 %v2689_v51, 16  ;;  %v1747_v13 = vrot.slane %v3162_v35, 1 }
  0xc3   : > { %v3714_v12 = vpop.f32.mrf.mxu0  ;;  %v3716_v46 = vpop.f32.mrf.mxu1 }
  0xc4   : > { %v1634_v45 = vor.u32 %v1633_v56, %v1629_v29 }
  0xc6   : > { %v1639_v41 = vsel %vm405_vm0, %v1634_v45, %v1638_v47 }
  0xca   : > { %v3722_v60 = vpop.f32.mrf.mxu2  ;;  %v3724_v62 = vpop.f32.mrf.mxu3 }
  0xcf   : > { %v1131_v3 = vpop.f32.mrf.mxu1  ;;  %v1422_v8 = vpop.f32.mrf.mxu0  ;;  %1977 = vmatmul.bf16.vlgmr.msra.gmra.mxu2 %v3404_v36  ;;  %2026 = vmatmul.bf16.vlgmr.msra.gmra.mxu3 %v1627_v15  ;;  %v3031_v15 = vld [vmem:[%s3311_s17 + $0x18] sm:$0xf0] }
  0xd0   : > { %v1132_v7 = vadd.f32 %v1131_v3, %v3671_v48  ;;  %v3159_v48 = vor.u32 %v3158_v16, %v3477_v6  ;;  %v1749_v3 = vsel %vm534_vm1, %v1747_v13, %v1748_v14  ;;  %v1610_v16 = vpack.c.b16 %v1602_v38, %v1602_v38  ;;  %v3167_v38 = vld [vmem:[%s3311_s17 + $0x3c] sm:$0xe] }
  0xd2   : > { %1470 = vmatmul.bf16.vlgmr.msra.gmra.mxu1 %v537_v4  ;;  %2075 = vmatmul.bf16.vlgmr.msra.gmra.mxu0 %v1746_v55  ;;  %v1180_v20 = vpop.f32.mrf.mxu2  ;;  %v1373_v22 = vpop.f32.mrf.mxu3  ;;  %v538_v10 = vrot.slane %v3159_v48, 1  ;;  %v3057_v4 = vld [vmem:[%s3311_s17 + $0x30] sm:$0xff]   ;;  %v3032_v55 = vld [vmem:[%s3311_s17 + $0x18] sm:$0xe]  ;;  %v1648_v31 = vshll.u32 %v1610_v16, 16  ;;  %v1751_v14 = vrot.slane %v1610_v16, 1 }
  0xd3   : > { %v1181_v21 = vadd.f32 %v1180_v20, %v1132_v7 }
  0xd4   : > { %v1650_v47 = vrot.slane %v1648_v31, 1 }
  0xd5   : > { %v1374_v32 = vadd.f32 %v1373_v22, %v1181_v21  ;;  %v3033_v22 = vor.u32 %v3032_v55, %v3031_v15 }
  0xd7   : > { %v1133_v39 = vpop.f32.mrf.mxu1  ;;  %v1424_v34 = vpop.f32.mrf.mxu0  ;;  %v3736_v36 = vadd.f32 %v1422_v8, %v1374_v32  ;;  %v1643_v8 = vshll.u32 %v3057_v4, 16 }
  0xd8   : > { %v1134_v9 = vadd.f32 %v1133_v39, %v3688_v1  ;;  %v540_v1 = vsel %vm534_vm1, %v538_v10, %v539_v43  ;;  %v1641_v39 = vshrl.u32 %v3057_v4, 16  ;;  %v541_v10 = vrot.slane %v3033_v22, 1 }
  0xd9   : > { %v542_v43 = vrot.slane %v3550_v19, 1 }
  0xda   : > { %v1182_v6 = vpop.f32.mrf.mxu2  ;;  %v1375_v57 = vpop.f32.mrf.mxu3 }
  0xdb   : > { %v1183_v53 = vadd.f32 %v1182_v6, %v1134_v9  ;;  %v2693_v9 = vld [vmem:[%s3311_s17 + $0x3c] sm:$0xff]   ;;  %v2706_v6 = vld [vmem:[%s3311_s17 + $0x44] sm:$0x1] }
  0xdc   : > { %v1655_v15 = vshll.u32 %v2693_v9, 16 }
  0xdd   : > { %v1376_v58 = vadd.f32 %v1375_v57, %v1183_v53 }
  0xdf   : > { %v1136_v37 = vpop.f32.mrf.mxu1  ;;  %v1427_v59 = vpop.f32.mrf.mxu0  ;;  %1982 = vmatmul.bf16.gmra.mxu2 %v2689_v51  ;;  %v3745_v7 = vadd.f32 %v1424_v34, %v1376_v58  ;;  %2031 = vmatmul.bf16.gmra.mxu3 %v1639_v41  ;;  %v1645_v51 = vrot.slane %v1643_v8, 1  ;;  %v3166_v34 = vld [vmem:[%s3311_s17 + $0x3c] sm:$0xf0] }
  0xe0   : > { %v1137_v44 = vadd.f32 %v1136_v37, %v3699_v27  ;;  %v3063_v27 = vld [vmem:[%s3311_s17 + $0x30] sm:$0xf0]  ;;  %v543_v37 = vsel %vm534_vm1, %v541_v10, %v542_v43 }
  0xe1   : > { %v3065_v32 = vor.u32 %v3064_v18, %v3063_v27  ;;  %v1646_v45 = vor.u32 %v1645_v51, %v1641_v39  ;;  %v3168_v51 = vor.u32 %v3167_v38, %v3166_v34 }
  0xe2   : > { %1475 = vmatmul.bf16.gmra.mxu1 %v540_v1  ;;  %2080 = vmatmul.bf16.gmra.mxu0 %v1749_v3  ;;  %v1185_v17 = vpop.f32.mrf.mxu2  ;;  %v1378_v20 = vpop.f32.mrf.mxu3  ;;  %v1603_v1 = vunpack.c.l.b16 %v2706_v6  ;;  %v3164_v3 = vld [vmem:[%s3311_s17 + $0x24] sm:$0xe] }
  0xe3   : > { %v1186_v5 = vadd.f32 %v1185_v17, %v1137_v44  ;;  %v1750_v13 = vrot.slane %v3065_v32, 1  ;;  %v1651_v19 = vsel %vm405_vm0, %v1646_v45, %v1650_v47  ;;  %v1753_v10 = vrot.slane %v3168_v51, 1  ;;  %v2707_v45 = vld [vmem:[%s3311_s17 + $0x50] sm:$0x1] }
  0xe4   : > { %v1611_v55 = vpack.c.b16 %v1603_v1, %v1603_v1 }
  0xe5   : > { %v1379_v48 = vadd.f32 %v1378_v20, %v1186_v5  ;;  %v1653_v5 = vshrl.u32 %v2693_v9, 16  ;;  %v1657_v20 = vrot.slane %v1655_v15, 1 }
  0xe6   : > { %v1754_v43 = vrot.slane %v1611_v55, 1 }
  0xe7   : > { %v1138_v21 = vpop.f32.mrf.mxu1  ;;  %v1429_v56 = vpop.f32.mrf.mxu0  ;;  %v3754_v35 = vadd.f32 %v1427_v59, %v1379_v48  ;;  %v1752_v59 = vsel %vm534_vm1, %v1750_v13, %v1751_v14  ;;  %v1658_v31 = vor.u32 %v1657_v20, %v1653_v5  ;;  %v2697_v20 = vld [vmem:[%s3311_s17 + $0x54] sm:$0xff]  }
  0xe8   : > { %v1139_v29 = vadd.f32 %v1138_v21, %v3714_v12  ;;  %v1660_v21 = vshll.u32 %v1611_v55, 16 }
  0xea   : > { %v1187_v52 = vpop.f32.mrf.mxu2  ;;  %v1380_v12 = vpop.f32.mrf.mxu3  ;;  %v1662_v32 = vrot.slane %v1660_v21, 1  ;;  %v3172_v21 = vld [vmem:[%s3311_s17 + $0x54] sm:$0xf0] }
  0xeb   : > { %v1188_v53 = vadd.f32 %v1187_v52, %v1139_v29 }
  0xec   : > { %v1663_v34 = vsel %vm405_vm0, %v1658_v31, %v1662_v32 }
  0xed   : > { %v1381_v41 = vadd.f32 %v1380_v12, %v1188_v53  ;;  %v1755_v53 = vsel %vm534_vm1, %v1753_v10, %v1754_v43  ;;  %v3058_v12 = vld [vmem:[%s3311_s17 + $0x48] sm:$0xff]   ;;  %v2708_v10 = vld [vmem:[%s3311_s17 + $0x5c] sm:$0x1] }
  0xee   : > { %v1667_v1 = vshll.u32 %v3058_v12, 16 }
  0xef   : > { %v1141_v57 = vpop.f32.mrf.mxu1  ;;  %v1432_v44 = vpop.f32.mrf.mxu0  ;;  %1987 = vmatmul.bf16.gmra.mxu2 %v3057_v4  ;;  %v3764_v8 = vadd.f32 %v1429_v56, %v1381_v41  ;;  %2036 = vmatmul.bf16.gmra.mxu3 %v1651_v19  ;;  %v545_v56 = vrot.slane %v3581_v49, 1  ;;  %v3034_v41 = vld [vmem:[%s3311_s17 + $0x30] sm:$0xf0] }
  0xf0   : > { %v1142_v58 = vadd.f32 %v1141_v57, %v3673_v50  ;;  %v3165_v50 = vor.u32 %v3164_v3, %v3560_v26  ;;  %v1604_v57 = vunpack.c.l.b16 %v2707_v45 }
  0xf2   : > { %1480 = vmatmul.bf16.gmra.mxu1 %v543_v37  ;;  %2085 = vmatmul.bf16.gmra.mxu0 %v1752_v59  ;;  %v1190_v16 = vpop.f32.mrf.mxu2  ;;  %v1383_v27 = vpop.f32.mrf.mxu3  ;;  %v544_v29 = vrot.slane %v3165_v50, 1  ;;  %v3067_v59 = vld [vmem:[%s3311_s17 + $0x48] sm:$0xe] }
  0xf3   : > { %v1191_v17 = vadd.f32 %v1190_v16, %v1142_v58  ;;  %v3035_v58 = vld [vmem:[%s3311_s17 + $0x30] sm:$0xe]  ;;  %v1665_v16 = vshrl.u32 %v3058_v12, 16 }
  0xf4   : > { %v3036_v55 = vor.u32 %v3035_v58, %v3034_v41 }
  0xf5   : > { %v1384_v22 = vadd.f32 %v1383_v27, %v1191_v17  ;;  %v1669_v17 = vrot.slane %v1667_v1, 1 }
  0xf7   : > { %v1143_v18 = vpop.f32.mrf.mxu1  ;;  %v1434_v4 = vpop.f32.mrf.mxu0  ;;  %v3768_v48 = vadd.f32 %v1432_v44, %v1384_v22  ;;  %v1612_v44 = vpack.c.b16 %v1604_v57, %v1604_v57  ;;  %v1670_v51 = vor.u32 %v1669_v17, %v1665_v16  ;;  %v551_v17 = vrot.slane %v3631_v54, 1 }
  0xf8   : > { %v1144_v39 = vadd.f32 %v1143_v18, %v3690_v2  ;;  %v546_v2 = vsel %vm534_vm1, %v544_v29, %v545_v56 }
  0xf9   : > { %v1672_v50 = vshll.u32 %v1612_v44, 16  ;;  %v1757_v31 = vrot.slane %v1612_v44, 1 }
  0xfa   : > { %v1192_v26 = vpop.f32.mrf.mxu2  ;;  %v1385_v13 = vpop.f32.mrf.mxu3 }
  0xfb   : > { %v1193_v47 = vadd.f32 %v1192_v26, %v1144_v39  ;;  %v547_v39 = vrot.slane %v3036_v55, 1  ;;  %v1674_v29 = vrot.slane %v1672_v50, 1 }
  0xfd   : > { %v1386_v6 = vadd.f32 %v1385_v13, %v1193_v47 }
  0xff   : > { %v1146_v14 = vpop.f32.mrf.mxu1  ;;  %v1437_v52 = vpop.f32.mrf.mxu0  ;;  %1992 = vmatmul.bf16.gmra.mxu2 %v2693_v9  ;;  %v3777_v37 = vadd.f32 %v1434_v4, %v1386_v6  ;;  %2041 = vmatmul.bf16.gmra.mxu3 %v1663_v34  ;;  %v548_v4 = vrot.slane %v3604_v24, 1  ;;  %v3170_v34 = vld [vmem:[%s3311_s17 + $0x3c] sm:$0xe]  ;;  %v1605_v24 = vunpack.c.l.b16 %v2708_v10  ;;  %v3173_v6 = vld [vmem:[%s3311_s17 + $0x54] sm:$0xe] }
 0x100   : > { %v1147_v49 = vadd.f32 %v1146_v14, %v3701_v28  ;;  %v3066_v28 = vld [vmem:[%s3311_s17 + $0x48] sm:$0xf0]  ;;  %v1675_v14 = vsel %vm405_vm0, %v1670_v51, %v1674_v29 }
 0x101   : > { %v3068_v5 = vor.u32 %v3067_v59, %v3066_v28  ;;  %v549_v45 = vsel %vm534_vm1, %v547_v39, %v548_v4  ;;  %v1613_v57 = vpack.c.b16 %v1605_v24, %v1605_v24  ;;  %v1677_v28 = vshrl.u32 %v2697_v20, 16 }
 0x102   : > { %1485 = vmatmul.bf16.gmra.mxu1 %v546_v2  ;;  %2090 = vmatmul.bf16.gmra.mxu0 %v1755_v53  ;;  %v1195_v19 = vpop.f32.mrf.mxu2  ;;  %v1388_v38 = vpop.f32.mrf.mxu3 }
 0x103   : > { %v1196_v3 = vadd.f32 %v1195_v19, %v1147_v49  ;;  %v1756_v56 = vrot.slane %v3068_v5, 1  ;;  %v3171_v19 = vor.u32 %v3170_v34, %v3614_v33  ;;  %v1760_v50 = vrot.slane %v1613_v57, 1  ;;  %v2709_v5 = vld [vmem:[%s3311_s17 + $0x68] sm:$0x1] }
 0x105   : > { %v1389_v9 = vadd.f32 %v1388_v38, %v1196_v3  ;;  %v1758_v2 = vsel %vm534_vm1, %v1756_v56, %v1757_v31  ;;  %v550_v16 = vrot.slane %v3171_v19, 1  ;;  %v3059_v31 = vld [vmem:[%s3311_s17 + $0x60] sm:$0xff]   ;;  %v3178_v19 = vld [vmem:[%s3311_s17 + $0x6c] sm:$0xf0] }
 0x107   : > { %v1148_v15 = vpop.f32.mrf.mxu1  ;;  %v1439_v18 = vpop.f32.mrf.mxu0  ;;  %v3786_v22 = vadd.f32 %v1437_v52, %v1389_v9  ;;  %v1679_v52 = vshll.u32 %v2697_v20, 16 }
 0x108   : > { %v1149_v27 = vadd.f32 %v1148_v15, %v3716_v46  ;;  %v3174_v15 = vor.u32 %v3173_v6, %v3172_v21  ;;  %v552_v21 = vsel %vm534_vm1, %v550_v16, %v551_v17 }
 0x109   : > { %v1681_v59 = vrot.slane %v1679_v52, 1 }
 0x10a   : > { %v1197_v32 = vpop.f32.mrf.mxu2  ;;  %v1390_v46 = vpop.f32.mrf.mxu3 }
 0x10b   : > { %v1198_v43 = vadd.f32 %v1197_v32, %v1149_v27  ;;  %v1606_v32 = vunpack.c.l.b16 %v2709_v5 }
 0x10d   : > { %v1391_v47 = vadd.f32 %v1390_v46, %v1198_v43  ;;  %v3037_v43 = vld [vmem:[%s3311_s17 + $0x48] sm:$0xf0]  ;;  %v3038_v46 = vld [vmem:[%s3311_s17 + $0x48] sm:$0xe] }
 0x10e   : > { %v3039_v6 = vor.u32 %v3038_v46, %v3037_v43 }
 0x10f   : > { %v1151_v26 = vpop.f32.mrf.mxu1  ;;  %v1442_v13 = vpop.f32.mrf.mxu0  ;;  %1997 = vmatmul.bf16.gmra.mxu2 %v3058_v12  ;;  %v3795_v49 = vadd.f32 %v1439_v18, %v1391_v47  ;;  %2046 = vmatmul.bf16.gmra.mxu3 %v1675_v14  ;;  %v1684_v12 = vshll.u32 %v1613_v57, 16  ;;  %v1759_v18 = vrot.slane %v3174_v15, 1  ;;  %v1614_v47 = vpack.c.b16 %v1606_v32, %v1606_v32  ;;  %v3069_v14 = vld [vmem:[%s3311_s17 + $0x60] sm:$0xf0] }
 0x110   : > { %v1152_v53 = vadd.f32 %v1151_v26, %v3684_v63  ;;  %v1682_v63 = vor.u32 %v1681_v59, %v1677_v28  ;;  %v1691_v26 = vshll.u32 %v3059_v31, 16  ;;  %v553_v28 = vrot.slane %v3039_v6, 1 }
 0x111   : > { %v1686_v27 = vrot.slane %v1684_v12, 1  ;;  %v554_v59 = vrot.slane %v3654_v30, 1  ;;  %v1763_v16 = vrot.slane %v1614_v47, 1  ;;  %v557_v6 = vrot.slane %v3682_v61, 1 }
 0x112   : > { %1490 = vmatmul.bf16.gmra.mxu1 %v549_v45  ;;  %2095 = vmatmul.bf16.gmra.mxu0 %v1758_v2  ;;  %v1200_v1 = vpop.f32.mrf.mxu2  ;;  %v1393_v58 = vpop.f32.mrf.mxu3  ;;  %v3070_v2 = vld [vmem:[%s3311_s17 + $0x60] sm:$0xe] }
 0x113   : > { %v1201_v41 = vadd.f32 %v1200_v1, %v1152_v53  ;;  %v1687_v54 = vsel %vm405_vm0, %v1682_v63, %v1686_v27  ;;  %v1693_v53 = vrot.slane %v1691_v26, 1  ;;  %v2710_v63 = vld [vmem:[%s3311_s17 + $0x74] sm:$0x1] }
 0x115   : > { %v1394_v3 = vadd.f32 %v1393_v58, %v1201_v41  ;;  %v1696_v41 = vshll.u32 %v1614_v47, 16  ;;  %v3071_v58 = vor.u32 %v3070_v2, %v3069_v14 }
 0x117   : > { %v1153_v44 = vpop.f32.mrf.mxu1  ;;  %v1444_v38 = vpop.f32.mrf.mxu0  ;;  %v3799_v55 = vadd.f32 %v1442_v13, %v1394_v3  ;;  %v1698_v12 = vrot.slane %v1696_v41, 1  ;;  %v1762_v15 = vrot.slane %v3071_v58, 1 }
 0x118   : > { %v1154_v9 = vadd.f32 %v1153_v44, %v3694_v23  ;;  %v1761_v23 = vsel %vm534_vm1, %v1759_v18, %v1760_v50  ;;  %v2701_v44 = vld [vmem:[%s3311_s17 + $0x6c] sm:$0xff]   ;;  %v555_v50 = vsel %vm534_vm1, %v553_v28, %v554_v59 }
 0x119   : > { %v1764_v30 = vsel %vm534_vm1, %v1762_v15, %v1763_v16 }
 0x11a   : > { %v1202_v33 = vpop.f32.mrf.mxu2  ;;  %v1395_v4 = vpop.f32.mrf.mxu3 }
 0x11b   : > { %v1203_v39 = vadd.f32 %v1202_v33, %v1154_v9 }
 0x11d   : > { %v1396_v29 = vadd.f32 %v1395_v4, %v1203_v39  ;;  %v3176_v4 = vld [vmem:[%s3311_s17 + $0x54] sm:$0xe] }
 0x11e   : > { %v3177_v26 = vor.u32 %v3176_v4, %v3667_v42 }
 0x11f   : > { %v1156_v51 = vpop.f32.mrf.mxu1  ;;  %v1447_v56 = vpop.f32.mrf.mxu0  ;;  %2002 = vmatmul.bf16.gmra.mxu2 %v2697_v20  ;;  %v3808_v10 = vadd.f32 %v1444_v38, %v1396_v29  ;;  %2051 = vmatmul.bf16.gmra.mxu3 %v1687_v54  ;;  %v1689_v20 = vshrl.u32 %v3059_v31, 16  ;;  %v1703_v29 = vshll.u32 %v2701_v44, 16 }
 0x120   : > { %v1157_v45 = vadd.f32 %v1156_v51, %v3708_v40  ;;  %v1607_v51 = vunpack.c.l.b16 %v2710_v63 }
 0x121   : > { %v1694_v3 = vor.u32 %v1693_v53, %v1689_v20  ;;  %v1705_v47 = vrot.slane %v1703_v29, 1 }
 0x122   : > { %1495 = vmatmul.bf16.gmra.mxu1 %v552_v21  ;;  %2100 = vmatmul.bf16.gmra.mxu0 %v1761_v23  ;;  %v1205_v13 = vpop.f32.mrf.mxu2  ;;  %v1398_v24 = vpop.f32.mrf.mxu3  ;;  %v1615_v54 = vpack.c.b16 %v1607_v51, %v1607_v51 }
 0x123   : > { %v1206_v34 = vadd.f32 %v1205_v13, %v1157_v45  ;;  %v1699_v39 = vsel %vm405_vm0, %v1694_v3, %v1698_v12  ;;  %v1701_v45 = vshrl.u32 %v2701_v44, 16 }
 0x124   : > { %v1708_v2 = vshll.u32 %v1615_v54, 16 }
 0x125   : > { %v1399_v57 = vadd.f32 %v1398_v24, %v1206_v34  ;;  %v556_v24 = vrot.slane %v3177_v26, 1 }
 0x126   : > { %v1710_v20 = vrot.slane %v1708_v2, 1 }
 0x127   : > { %v1158_v52 = vpop.f32.mrf.mxu1  ;;  %v1449_v1 = vpop.f32.mrf.mxu0  ;;  %v3817_v40 = vadd.f32 %v1447_v56, %v1399_v57  ;;  %v1766_v57 = vrot.slane %v1615_v54, 1  ;;  %v558_v28 = vsel %vm534_vm1, %v556_v24, %v557_v6 }
 0x128   : > { %v1159_v38 = vadd.f32 %v1158_v52, %v3722_v60  ;;  %v3179_v60 = vld [vmem:[%s3311_s17 + $0x6c] sm:$0xe]  ;;  %v1706_v52 = vor.u32 %v1705_v47, %v1701_v45  ;;  %s2409_s17 = sshll.u32 %s3203_s18, 3 }
 0x129   : > { %p279_p7 = scmp.lt.s32.totalorder %s2409_s17, 15 }
 0x12a   : > { %v1207_v17 = vpop.f32.mrf.mxu2  ;;  %v1400_v27 = vpop.f32.mrf.mxu3 }
 0x12b   : > { %v1208_v9 = vadd.f32 %v1207_v17, %v1159_v38  ;;  %s3943_s17 = smov (!%p279_p7, %s2409_s17), 15 }
 0x12c   : > { %s2410_s29 = sshll.u32 %s3943_s17, 1 }
 0x12d   : > { %v1401_v33 = vadd.f32 %v1400_v27, %v1208_v9  ;;  %s283_s8 = sadd.s32 %s2411_s6, %s2410_s29 }
 0x12e   : > { %s2412_s9 = sshll.u32 %s283_s8, 2 }
 0x12f   : > { %v1161_v18 = vpop.f32.mrf.mxu1  ;;  %v1452_v5 = vpop.f32.mrf.mxu0  ;;  %2007 = vmatmul.bf16.gmra.mxu2 %v3059_v31  ;;  %v3827_v21 = vadd.f32 %v1449_v1, %v1401_v33  ;;  %2056 = vmatmul.bf16.gmra.mxu3 %v1699_v39  ;;  %v3180_v31 = vor.u32 %v3179_v60, %v3178_v19  ;;  %v1711_v19 = vsel %vm405_vm0, %v1706_v52, %v1710_v20  ;;  %s3861_s11 = scalar_lea.vmem %s3925_s3, %s2412_s9 }
 0x130   : > { %v1162_v56 = vadd.f32 %v1161_v18, %v3686_v0 }
 0x131   : > { %v1765_v53 = vrot.slane %v3180_v31, 1 }
 0x132   : > { %1500 = vmatmul.bf16.gmra.mxu1 %v555_v50  ;;  %2105 = vmatmul.bf16.gmra.mxu0 %v1764_v30  ;;  %v1210_v23 = vpop.f32.mrf.mxu2  ;;  %v1403_v43 = vpop.f32.mrf.mxu3 }
 0x133   : > { %v1211_v32 = vadd.f32 %v1210_v23, %v1162_v56  ;;  %v1767_v38 = vsel %vm534_vm1, %v1765_v53, %v1766_v57 }
 0x135   : > { %v1404_v13 = vadd.f32 %v1403_v43, %v1211_v32  ;;  %v3853_v43 = vld [vmem:[%s3924_s2] ss:$0 sm:$0xff] }
 0x137   : > { %v1163_v46 = vpop.f32.mrf.mxu1  ;;  %v1454_v14 = vpop.f32.mrf.mxu0  ;;  %v3831_v34 = vadd.f32 %v1452_v5, %v1404_v13 }
 0x138   : > { %v1164_v0 = vadd.f32 %v1163_v46, %v3696_v25 }
 0x13a   : > { %v1212_v1 = vpop.f32.mrf.mxu2  ;;  %v1405_v42 = vpop.f32.mrf.mxu3 }
 0x13b   : > { %v1213_v41 = vadd.f32 %v1212_v1, %v1164_v0 }
 0x13d   : > { %v1406_v59 = vadd.f32 %v1405_v42, %v1213_v41 }
 0x13f   : > { %v1166_v58 = vpop.f32.mrf.mxu1  ;;  %v1457_v3 = vpop.f32.mrf.mxu0  ;;  %2012 = vmatmul.bf16.gmra.mxu2 %v2701_v44  ;;  %v3838_v61 = vadd.f32 %v1454_v14, %v1406_v59  ;;  %2061 = vmatmul.bf16.gmra.mxu3 %v1711_v19 }
 0x140   : > { %v1167_v25 = vadd.f32 %v1166_v58, %v3710_v11 }
 0x142   : > { %1505 = vmatmul.bf16.gmra.mxu1 %v558_v28  ;;  %2110 = vmatmul.bf16.gmra.mxu0 %v1767_v38  ;;  %v1215_v12 = vpop.f32.mrf.mxu2  ;;  %v1408_v16 = vpop.f32.mrf.mxu3 }
 0x143   : > { %v1216_v15 = vadd.f32 %v1215_v12, %v1167_v25 }
 0x145   : > { %v1409_v63 = vadd.f32 %v1408_v16, %v1216_v15 }
 0x147   : > { %v1168_v17 = vpop.f32.mrf.mxu1  ;;  %v1459_v9 = vpop.f32.mrf.mxu0  ;;  %v3841_v27 = vadd.f32 %v1457_v3, %v1409_v63 }
 0x148   : > { %v1169_v18 = vadd.f32 %v1168_v17, %v3724_v62 }
 0x14a   : > { %v1217_v44 = vpop.f32.mrf.mxu2  ;;  %v1410_v33 = vpop.f32.mrf.mxu3 }
 0x14b   : > { %v1218_v50 = vadd.f32 %v1217_v44, %v1169_v18 }
 0x14d   : > { %v1411_v39 = vadd.f32 %v1410_v33, %v1218_v50 }
 0x14f   : > { %v1471_v5 = vpop.f32.mrf.mxu1  ;;  %v2076_v30 = vpop.f32.mrf.mxu0  ;;  %v3845_v11 = vadd.f32 %v1459_v9, %v1411_v39 }
 0x150   : > { %v1472_v54 = vadd.f32 %v1471_v5, %v3736_v36 }
 0x152   : > { %v1978_v4 = vpop.f32.mrf.mxu2  ;;  %v2027_v51 = vpop.f32.mrf.mxu3 }
 0x153   : > { %v2028_v60 = vadd.f32 %v2027_v51, %v1978_v4 }
 0x155   : > { %v2077_v62 = vadd.f32 %v2076_v30, %v2028_v60 }
 0x157   : > { %v1473_v29 = vpop.f32.mrf.mxu1  ;;  %v2078_v56 = vpop.f32.mrf.mxu0  ;;  %v2116_v32 = vadd.f32 %v2077_v62, %v1472_v54 }
 0x158   : > { %v1474_v13 = vadd.f32 %v1473_v29, %v3745_v7 }
 0x159   : > { %v2136_v2 = vadd.f32 %v3853_v43, %v2116_v32 }
 0x15a   : > { %v1980_v23 = vpop.f32.mrf.mxu2  ;;  %v2029_v46 = vpop.f32.mrf.mxu3 }
 0x15b   : > { %v2030_v26 = vadd.f32 %v2029_v46, %v1980_v23  ;;  %v2206_v6 = vmul.f32 %v2136_v2, %v2136_v2 }
 0x15d   : > { %v2079_v14 = vadd.f32 %v2078_v56, %v2030_v26 }
 0x15f   : > { %v1476_v45 = vpop.f32.mrf.mxu1  ;;  %v2081_v47 = vpop.f32.mrf.mxu0  ;;  %v2117_v36 = vadd.f32 %v2079_v14, %v1474_v13 }
 0x160   : > { %v1477_v42 = vadd.f32 %v1476_v45, %v3754_v35 }
 0x161   : > { %v2137_v31 = vadd.f32 %v3853_v43, %v2117_v36 }
 0x162   : > { %v1983_v24 = vpop.f32.mrf.mxu2  ;;  %v2032_v52 = vpop.f32.mrf.mxu3 }
 0x163   : > { %v2988_v0 = vpack.c.bf16 %v2137_v31, %v2136_v2  ;;  %v2184_v20 = vadd.f32 %v2137_v31, %v2136_v2  ;;  %v2207_v53 = vmul.f32 %v2137_v31, %v2137_v31  ;;  %v2033_v7 = vadd.f32 %v2032_v52, %v1983_v24 }
 0x165   : > { %2989 = vst [vmem:[%s3861_s11] sm:$0xff] %v2988_v0   ;;  %v2222_v41 = vadd.f32 %v2207_v53, %v2206_v6  ;;  %v2082_v58 = vadd.f32 %v2081_v47, %v2033_v7 }
 0x167   : > { %v1478_v57 = vpop.f32.mrf.mxu1  ;;  %v2083_v1 = vpop.f32.mrf.mxu0  ;;  %v2118_v28 = vadd.f32 %v2082_v58, %v1477_v42 }
 0x168   : > { %v1479_v63 = vadd.f32 %v1478_v57, %v3764_v8 }
 0x169   : > { %v2138_v59 = vadd.f32 %v3853_v43, %v2118_v28 }
 0x16a   : > { %v1985_v3 = vpop.f32.mrf.mxu2  ;;  %v2034_v19 = vpop.f32.mrf.mxu3 }
 0x16b   : > { %v2185_v38 = vadd.f32 %v2184_v20, %v2138_v59  ;;  %v2208_v25 = vmul.f32 %v2138_v59, %v2138_v59  ;;  %v2035_v12 = vadd.f32 %v2034_v19, %v1985_v3 }
 0x16d   : > { %v2223_v17 = vadd.f32 %v2222_v41, %v2208_v25  ;;  %v2084_v9 = vadd.f32 %v2083_v1, %v2035_v12 }
 0x16f   : > { %v1481_v15 = vpop.f32.mrf.mxu1  ;;  %v2086_v16 = vpop.f32.mrf.mxu0  ;;  %v2119_v18 = vadd.f32 %v2084_v9, %v1479_v63 }
 0x170   : > { %v1482_v29 = vadd.f32 %v1481_v15, %v3768_v48 }
 0x171   : > { %v2139_v44 = vadd.f32 %v3853_v43, %v2119_v18 }
 0x172   : > { %v1988_v35 = vpop.f32.mrf.mxu2  ;;  %v2037_v50 = vpop.f32.mrf.mxu3 }
 0x173   : > { %v2993_v33 = vpack.c.bf16 %v2139_v44, %v2138_v59  ;;  %v2186_v5 = vadd.f32 %v2185_v38, %v2139_v44  ;;  %v2209_v39 = vmul.f32 %v2139_v44, %v2139_v44  ;;  %v2038_v30 = vadd.f32 %v2037_v50, %v1988_v35 }
 0x175   : > { %3072 = vst [vmem:[%s3861_s11 + $0x8] sm:$0xff] %v2993_v33   ;;  %v2224_v60 = vadd.f32 %v2223_v17, %v2209_v39  ;;  %v2087_v56 = vadd.f32 %v2086_v16, %v2038_v30 }
 0x177   : > { %v1483_v4 = vpop.f32.mrf.mxu1  ;;  %v2088_v51 = vpop.f32.mrf.mxu0  ;;  %v2120_v62 = vadd.f32 %v2087_v56, %v1482_v29 }
 0x178   : > { %v1484_v14 = vadd.f32 %v1483_v4, %v3777_v37 }
 0x179   : > { %v2140_v8 = vadd.f32 %v3853_v43, %v2120_v62 }
 0x17a   : > { %v1990_v54 = vpop.f32.mrf.mxu2  ;;  %v2039_v23 = vpop.f32.mrf.mxu3 }
 0x17b   : > { %v2187_v32 = vadd.f32 %v2186_v5, %v2140_v8  ;;  %v2210_v46 = vmul.f32 %v2140_v8, %v2140_v8  ;;  %v2040_v26 = vadd.f32 %v2039_v23, %v1990_v54 }
 0x17d   : > { %v2225_v13 = vadd.f32 %v2224_v60, %v2210_v46  ;;  %v2089_v2 = vadd.f32 %v2088_v51, %v2040_v26 }
 0x17f   : > { %v1486_v45 = vpop.f32.mrf.mxu1  ;;  %v2091_v47 = vpop.f32.mrf.mxu0  ;;  %v2121_v36 = vadd.f32 %v2089_v2, %v1484_v14 }
 0x180   : > { %v1487_v1 = vadd.f32 %v1486_v45, %v3786_v22 }
 0x181   : > { %v2141_v31 = vadd.f32 %v3853_v43, %v2121_v36 }
 0x182   : > { %v1993_v48 = vpop.f32.mrf.mxu2  ;;  %v2042_v24 = vpop.f32.mrf.mxu3 }
 0x183   : > { %v2998_v6 = vpack.c.bf16 %v2141_v31, %v2140_v8  ;;  %v2188_v52 = vadd.f32 %v2187_v32, %v2141_v31  ;;  %v2211_v0 = vmul.f32 %v2141_v31, %v2141_v31  ;;  %v2043_v20 = vadd.f32 %v2042_v24, %v1993_v48 }
 0x185   : > { %3073 = vst [vmem:[%s3861_s11 + $0x10] sm:$0xff] %v2998_v6   ;;  %v2226_v57 = vadd.f32 %v2225_v13, %v2211_v0  ;;  %v2092_v41 = vadd.f32 %v2091_v47, %v2043_v20 }
 0x187   : > { %v1488_v53 = vpop.f32.mrf.mxu1  ;;  %v2093_v7 = vpop.f32.mrf.mxu0  ;;  %v2122_v42 = vadd.f32 %v2092_v41, %v1487_v1 }
 0x188   : > { %v1489_v15 = vadd.f32 %v1488_v53, %v3795_v49 }
 0x189   : > { %v2142_v37 = vadd.f32 %v3853_v43, %v2122_v42 }
 0x18a   : > { %v1995_v58 = vpop.f32.mrf.mxu2  ;;  %v2044_v28 = vpop.f32.mrf.mxu3 }
 0x18b   : > { %v2189_v59 = vadd.f32 %v2188_v52, %v2142_v37  ;;  %v2212_v3 = vmul.f32 %v2142_v37, %v2142_v37  ;;  %v2045_v19 = vadd.f32 %v2044_v28, %v1995_v58 }
 0x18d   : > { %v2227_v12 = vadd.f32 %v2226_v57, %v2212_v3  ;;  %v2094_v16 = vadd.f32 %v2093_v7, %v2045_v19 }
 0x18f   : > { %v1491_v38 = vpop.f32.mrf.mxu1  ;;  %v2096_v25 = vpop.f32.mrf.mxu0  ;;  %v2123_v17 = vadd.f32 %v2094_v16, %v1489_v15 }
 0x190   : > { %v1492_v30 = vadd.f32 %v1491_v38, %v3799_v55 }
 0x191   : > { %v2143_v63 = vadd.f32 %v3853_v43, %v2123_v17 }
 0x192   : > { %v1998_v22 = vpop.f32.mrf.mxu2  ;;  %v2047_v9 = vpop.f32.mrf.mxu3 }
 0x193   : > { %v3003_v18 = vpack.c.bf16 %v2143_v63, %v2142_v37  ;;  %v2190_v44 = vadd.f32 %v2189_v59, %v2143_v63  ;;  %v2213_v35 = vmul.f32 %v2143_v63, %v2143_v63  ;;  %v2048_v50 = vadd.f32 %v2047_v9, %v1998_v22 }
 0x195   : > { %3074 = vst [vmem:[%s3861_s11 + $0x18] sm:$0xff] %v3003_v18   ;;  %v2228_v39 = vadd.f32 %v2227_v12, %v2213_v35  ;;  %v2097_v4 = vadd.f32 %v2096_v25, %v2048_v50 }
 0x197   : > { %v1493_v33 = vpop.f32.mrf.mxu1  ;;  %v2098_v5 = vpop.f32.mrf.mxu0  ;;  %v2124_v51 = vadd.f32 %v2097_v4, %v1492_v30 }
 0x198   : > { %v1494_v46 = vadd.f32 %v1493_v33, %v3808_v10 }
 0x199   : > { %v2144_v49 = vadd.f32 %v3853_v43, %v2124_v51 }
 0x19a   : > { %v2000_v60 = vpop.f32.mrf.mxu2  ;;  %v2049_v29 = vpop.f32.mrf.mxu3 }
 0x19b   : > { %v2191_v56 = vadd.f32 %v2190_v44, %v2144_v49  ;;  %v2214_v62 = vmul.f32 %v2144_v49, %v2144_v49  ;;  %v2050_v8 = vadd.f32 %v2049_v29, %v2000_v60 }
 0x19d   : > { %v2229_v32 = vadd.f32 %v2228_v39, %v2214_v62  ;;  %v2099_v26 = vadd.f32 %v2098_v5, %v2050_v8 }
 0x19f   : > { %v1496_v54 = vpop.f32.mrf.mxu1  ;;  %v2101_v23 = vpop.f32.mrf.mxu0  ;;  %v2125_v45 = vadd.f32 %v2099_v26, %v1494_v46 }
 0x1a0   : > { %v1497_v52 = vadd.f32 %v1496_v54, %v3817_v40 }
 0x1a1   : > { %v2145_v47 = vadd.f32 %v3853_v43, %v2125_v45 }
 0x1a2   : > { %v2003_v55 = vpop.f32.mrf.mxu2  ;;  %v2052_v13 = vpop.f32.mrf.mxu3 }
 0x1a3   : > { %v3008_v14 = vpack.c.bf16 %v2145_v47, %v2144_v49  ;;  %v2192_v2 = vadd.f32 %v2191_v56, %v2145_v47  ;;  %v2215_v36 = vmul.f32 %v2145_v47, %v2145_v47  ;;  %v2053_v31 = vadd.f32 %v2052_v13, %v2003_v55 }
 0x1a5   : > { %3075 = vst [vmem:[%s3861_s11 + $0x20] sm:$0xff] %v3008_v14   ;;  %v2230_v6 = vadd.f32 %v2229_v32, %v2215_v36  ;;  %v2102_v0 = vadd.f32 %v2101_v23, %v2053_v31 }
 0x1a7   : > { %v1498_v48 = vpop.f32.mrf.mxu1  ;;  %v2103_v24 = vpop.f32.mrf.mxu0  ;;  %v2126_v20 = vadd.f32 %v2102_v0, %v1497_v52 }
 0x1a8   : > { %v1499_v58 = vadd.f32 %v1498_v48, %v3827_v21 }
 0x1a9   : > { %v2146_v10 = vadd.f32 %v3853_v43, %v2126_v20 }
 0x1aa   : > { %v2005_v53 = vpop.f32.mrf.mxu2  ;;  %v2054_v7 = vpop.f32.mrf.mxu3 }
 0x1ab   : > { %v2193_v57 = vadd.f32 %v2192_v2, %v2146_v10  ;;  %v2216_v1 = vmul.f32 %v2146_v10, %v2146_v10  ;;  %v2055_v41 = vadd.f32 %v2054_v7, %v2005_v53 }
 0x1ad   : > { %v2231_v37 = vadd.f32 %v2230_v6, %v2216_v1  ;;  %v2104_v28 = vadd.f32 %v2103_v24, %v2055_v41 }
 0x1af   : > { %v1501_v42 = vpop.f32.mrf.mxu1  ;;  %v2106_v59 = vpop.f32.mrf.mxu0  ;;  %v2127_v3 = vadd.f32 %v2104_v28, %v1499_v58 }
 0x1b0   : > { %v1502_v63 = vadd.f32 %v1501_v42, %v3831_v34 }
 0x1b1   : > { %v2147_v19 = vadd.f32 %v3853_v43, %v2127_v3 }
 0x1b2   : > { %v2008_v40 = vpop.f32.mrf.mxu2  ;;  %v2057_v38 = vpop.f32.mrf.mxu3 }
 0x1b3   : > { %v3013_v25 = vpack.c.bf16 %v2147_v19, %v2146_v10  ;;  %v2194_v12 = vadd.f32 %v2193_v57, %v2147_v19  ;;  %v2217_v15 = vmul.f32 %v2147_v19, %v2147_v19  ;;  %v2058_v16 = vadd.f32 %v2057_v38, %v2008_v40 }
 0x1b5   : > { %3076 = vst [vmem:[%s3861_s11 + $0x28] sm:$0xff] %v3013_v25   ;;  %v2232_v17 = vadd.f32 %v2231_v37, %v2217_v15  ;;  %v2107_v22 = vadd.f32 %v2106_v59, %v2058_v16 }
 0x1b7   : > { %v1503_v9 = vpop.f32.mrf.mxu1  ;;  %v2128_v18 = vadd.f32 %v2107_v22, %v1502_v63  ;;  %v2108_v44 = vpop.f32.mrf.mxu0 }
 0x1b8   : > { %v1504_v4 = vadd.f32 %v1503_v9, %v3838_v61 }
 0x1b9   : > { %v2148_v21 = vadd.f32 %v3853_v43, %v2128_v18 }
 0x1ba   : > { %v2010_v35 = vpop.f32.mrf.mxu2  ;;  %v2059_v50 = vpop.f32.mrf.mxu3 }
 0x1bb   : > { %v2195_v33 = vadd.f32 %v2194_v12, %v2148_v21  ;;  %v2218_v5 = vmul.f32 %v2148_v21, %v2148_v21  ;;  %v2060_v39 = vadd.f32 %v2059_v50, %v2010_v35 }
 0x1bd   : > { %v2233_v30 = vadd.f32 %v2232_v17, %v2218_v5  ;;  %v2109_v51 = vadd.f32 %v2108_v44, %v2060_v39 }
 0x1bf   : > { %v2129_v49 = vadd.f32 %v2109_v51, %v1504_v4  ;;  %v1506_v60 = vpop.f32.mrf.mxu1  ;;  %v2111_v56 = vpop.f32.mrf.mxu0 }
 0x1c0   : > { %v1507_v26 = vadd.f32 %v1506_v60, %v3841_v27 }
 0x1c1   : > { %v2149_v34 = vadd.f32 %v3853_v43, %v2129_v49 }
 0x1c2   : > { %v2013_v29 = vpop.f32.mrf.mxu2  ;;  %v2062_v62 = vpop.f32.mrf.mxu3 }
 0x1c3   : > { %v3018_v8 = vpack.c.bf16 %v2149_v34, %v2148_v21  ;;  %v2196_v54 = vadd.f32 %v2195_v33, %v2149_v34  ;;  %v2219_v23 = vmul.f32 %v2149_v34, %v2149_v34  ;;  %v2063_v32 = vadd.f32 %v2062_v62, %v2013_v29 }
 0x1c5   : > { %3077 = vst [vmem:[%s3861_s11 + $0x30] sm:$0xff] %v3018_v8   ;;  %v2234_v46 = vadd.f32 %v2233_v30, %v2219_v23  ;;  %v2112_v45 = vadd.f32 %v2111_v56, %v2063_v32 }
 0x1c7   : > { %v2130_v47 = vadd.f32 %v2112_v45, %v1507_v26  ;;  %v1508_v13 = vpop.f32.mrf.mxu1  ;;  %v2113_v48 = vpop.f32.mrf.mxu0 }
 0x1c8   : > { %v1509_v6 = vadd.f32 %v1508_v13, %v3845_v11 }
 0x1c9   : > { %v2150_v61 = vadd.f32 %v3853_v43, %v2130_v47 }
 0x1ca   : > { %v2015_v55 = vpop.f32.mrf.mxu2  ;;  %v2064_v14 = vpop.f32.mrf.mxu3 }
 0x1cb   : > { %v2197_v2 = vadd.f32 %v2196_v54, %v2150_v61  ;;  %v2220_v36 = vmul.f32 %v2150_v61, %v2150_v61  ;;  %v2065_v31 = vadd.f32 %v2064_v14, %v2015_v55 }
 0x1cd   : > { %v2235_v24 = vadd.f32 %v2234_v46, %v2220_v36  ;;  %v2114_v52 = vadd.f32 %v2113_v48, %v2065_v31 }
 0x1cf   : > { %v2131_v0 = vadd.f32 %v2114_v52, %v1509_v6 }
 0x1d1   : > { %v2151_v27 = vadd.f32 %v3853_v43, %v2131_v0 }
 0x1d3   : > { %v3023_v20 = vpack.c.bf16 %v2151_v27, %v2150_v61  ;;  %v2198_v10 = vadd.f32 %v2197_v2, %v2151_v27  ;;  %v2221_v53 = vmul.f32 %v2151_v27, %v2151_v27 }
 0x1d5   : > { %3078 = vst [vmem:[%s3861_s11 + $0x38] sm:$0xff] %v3023_v20   ;;  %v2199_v7 = vrot.slane %v2198_v10, 4  ;;  %v2236_v57 = vadd.f32 %v2235_v24, %v2221_v53 }
 0x1d7   : > { %v2200_v1 = vadd.f32 %v2199_v7, %v2198_v10  ;;  %v2237_v41 = vrot.slane %v2236_v57, 4 }
 0x1d9   : > { %v2201_v42 = vrot.slane %v2200_v1, 2  ;;  %v2238_v37 = vadd.f32 %v2237_v41, %v2236_v57 }
 0x1db   : > { %v2202_v58 = vadd.f32 %v2201_v42, %v2200_v1  ;;  %v2239_v28 = vrot.slane %v2238_v37, 2 }
 0x1dd   : > { %v2203_v59 = vrot.slane %v2202_v58, 1  ;;  %v2240_v11 = vadd.f32 %v2239_v28, %v2238_v37 }
 0x1df   : > { %v2204_v43 = vadd.f32 %v2203_v59, %v2202_v58  ;;  %v2241_v3 = vrot.slane %v2240_v11, 1 }
 0x1e1   : > { %2205 = vst [vmem:[%s291_s14] sm:$0x1] %v2204_v43  ;;  %v2242_v19 = vadd.f32 %v2241_v3, %v2240_v11 }
 0x1e3   : > { %2243 = vst [vmem:[%s298_s25] sm:$0x1] %v2242_v19 }
 0x1e4 PF: > { %s16_s22 = sadd.s32 1, %s3219_s22   ;;  %s3928_s18 = smov %s3211_s20 }
 0x1e5   : > { %p13_p8 = scmp.ge.s32.totalorder %s16_s22, 6   ;;  %s3929_s19 = smov %s3215_s21 }
 0x1e6   : > { %s3930_s20 = smov %s3933_s23  ;;  %s3931_s21 = smov %s3937_s24 }
 0x1e7   :  { %15 = sbr.rel (!%p13_p8) target bundleno = 3 (0x3), region = 90 }

</bundles_post_ra>
